<compile_context>
chip_gen: v5e
topology: v5e:2x2
jax: 0.10.0
libtpu: 0.0.40
codegen_flags: <defaults>
</compile_context>

<pallas_src>
import functools
import math

import jax
import jax.numpy as jnp
import numpy as np
from jax import lax
from jax.experimental import pallas as pl
from jax.experimental.pallas import tpu as pltpu


def _mm(a, w):
    """a @ w on the MXU with f32 accumulation. `w` is pre-transposed to (in, out)."""
    return jnp.dot(a.astype(w.dtype), w, preferred_element_type=jnp.float32)


def transformer_block_kernel(*refs, num_heads, num_layers, seq_len, batch_block,
                             has_conv):
    """Whole TransformerBlock forward for one chunk of `batch_block` images.

    refs, in order:
      x_ref               (bb*S, C1)     input rows (row = local_batch*S + spatial)
      [wc_t, bc]          (C1, C2), (1, C2)          1x1 conv with BN folded (if has_conv)
      wl_t, bl            (C2, C2), (1, C2)          positional Linear (pre-transposed)
      wqkv_t, bqkv        (L, C2, 3C2), (L, 1, 3C2)  q/k/v folded into MHA in_proj,
                                                     attention scale folded into q part
      wo_t, bo            (L, C2, C2), (L, 1, C2)    MHA out_proj (pre-transposed)
      wffn_t              (L, C2, C2)                fc2@fc1 folded (pre-transposed)
      o_ref               (bb*S, C2)     output rows
    """
    it = iter(refs)
    x_ref = next(it)
    if has_conv:
        wc_ref, bc_ref = next(it), next(it)
    wl_ref, bl_ref = next(it), next(it)
    wqkv_ref, bqkv_ref = next(it), next(it)
    wo_ref, bo_ref = next(it), next(it)
    wffn_ref = next(it)
    o_ref = next(it)

    S = seq_len
    BB = batch_block
    H = num_heads
    E = wl_ref.shape[0]
    D = E // H
    rows = BB * S

    x = x_ref[...]                                          # (BB*S, C1), compute dtype
    cdt = x.dtype

    if has_conv:
        # Conv(c1, c2): 1x1 conv (bias=False) + folded BatchNorm + SiLU (exact).
        y = _mm(x, wc_ref[...]) + bc_ref[...].astype(jnp.float32)
        y = y / (1.0 + jnp.exp(-y))                         # SiLU = y * sigmoid(y)
    else:
        y = x.astype(jnp.float32)

    # p + self.linear(p): learned positional encoding.
    cur = y + _mm(y, wl_ref[...]) + bl_ref[...].astype(jnp.float32)   # (BB*S, E) f32

    # Layer loop is Python-unrolled (small L); see TODO(synk) above for large L.
    for layer in range(num_layers):
        # Folded (scaled) q/k/v + in_proj: one (BB*S, E) @ (E, 3E) matmul.
        qkv = _mm(cur, wqkv_ref[layer]) + bqkv_ref[layer].astype(jnp.float32)
        wo_l = wo_ref[layer]                                           # (E, E)

        # out_proj accumulated directly per head: no VMEM scratch, no masked
        # 8-lane column stores, no concatenate.
        x1 = cur + bo_ref[layer].astype(jnp.float32)                   # (BB*S, E)
        for h in range(H):
            c0 = h * D
            # (BB*S, D) -> (BB, S, D): leading-dim reshape only (tile-aligned).
            qh = qkv[:, c0:c0 + D].astype(cdt).reshape(BB, S, D)       # scale pre-folded
            kh = qkv[:, E + c0:E + c0 + D].astype(cdt).reshape(BB, S, D)
            vh = qkv[:, 2 * E + c0:2 * E + c0 + D].astype(cdt).reshape(BB, S, D)

            # Batched q @ k^T over the batch dim (no activation transpose).
            s = lax.dot_general(qh, kh, (((2,), (2,)), ((0,), (0,))),
                                preferred_element_type=jnp.float32)    # (BB, S, S)
            m = jnp.max(s, axis=-1, keepdims=True)
            p = jnp.exp(s - m)
            denom = jnp.sum(p, axis=-1, keepdims=True)
            o_h = lax.dot_general(p.astype(cdt), vh, (((2,), (1,)), ((0,), (0,))),
                                  preferred_element_type=jnp.float32)  # (BB, S, D)
            # Exact softmax normalization (approx reciprocal tripped tolerance).
            o_h = (o_h / denom).reshape(rows, D)

            x1 = x1 + jnp.dot(o_h.astype(cdt), wo_l[c0:c0 + D, :],
                              preferred_element_type=jnp.float32)      # (BB*S, E)

        # fc2(fc1(x1)) + x1, with W_ffn = fc2.weight @ fc1.weight folded offline.
        cur = _mm(x1, wffn_ref[layer]) + x1

    o_ref[...] = cur.astype(o_ref.dtype)


def fold_params(raw, num_heads, compute_dtype=jnp.float32):
    """One-time algebraic folds + pre-transposes (exact up to fp32 rounding)."""
    out = {}
    conv = raw.get("conv")
    if conv is not None:
        inv = conv["gamma"] / jnp.sqrt(conv["var"] + conv["eps"])
        wc_fold = conv["w"] * inv[:, None]                     # (C2, C1)
        shift = conv["beta"] - conv["mean"] * inv              # (C2,)
        out["wc_t"] = wc_fold.T.astype(compute_dtype)          # (C1, C2)
        out["bc"] = shift.reshape(1, -1).astype(compute_dtype)

    out["wl_t"] = raw["wl"].T.astype(compute_dtype)
    out["bl"] = raw["bl"].reshape(1, -1).astype(compute_dtype)

    wqkv_l, bqkv_l, wo_l, bo_l, wffn_l = [], [], [], [], []
    for (wq, wk, wv, wi, bi, wo_w, bo_b, w1, w2) in raw["layers"]:
        E = wq.shape[0]
        D = E // num_heads
        scale = 1.0 / math.sqrt(D)
        # q2 = (x @ wq.T) @ wi_q.T + bi_q  ==  x @ (wi_q @ wq).T + bi_q, etc.
        # 1/sqrt(D) attention scale folded into the q-part weight AND bias.
        w_eff = jnp.concatenate([(wi[0:E] @ wq) * scale,
                                 wi[E:2 * E] @ wk,
                                 wi[2 * E:3 * E] @ wv], axis=0)    # (3E, E)
        b_eff = jnp.concatenate([bi[0:E] * scale, bi[E:2 * E], bi[2 * E:3 * E]])
        wqkv_l.append(w_eff.T)                                     # (E, 3E)
        bqkv_l.append(b_eff.reshape(1, 3 * E))
        wo_l.append(wo_w.T)
        bo_l.append(bo_b.reshape(1, E))
        wffn_l.append((w2 @ w1).T)                                 # (E, E)

    out["wqkv_t"] = jnp.stack(wqkv_l).astype(compute_dtype)
    out["bqkv"] = jnp.stack(bqkv_l).astype(compute_dtype)
    out["wo_t"] = jnp.stack(wo_l).astype(compute_dtype)
    out["bo"] = jnp.stack(bo_l).astype(compute_dtype)
    out["wffn_t"] = jnp.stack(wffn_l).astype(compute_dtype)
    return out


def transformer_block(x_bchw, raw_params, num_heads, *, batch_block=None,
                      compute_dtype=jnp.float32):
    """x_bchw: (B, C1, W, H) float32. Returns (B, C2, W, H)."""
    B, C1, W, Hs = x_bchw.shape
    has_conv = raw_params.get("conv") is not None
    C2 = raw_params["wl"].shape[0]
    if not has_conv:
        assert C1 == C2, "TransformerBlock has no conv only when c1 == c2"
    assert C2 % num_heads == 0
    S = W * Hs
    L = len(raw_params["layers"])
    bb = B if batch_block is None else batch_block       # set B//2 on v7x megacore
    assert B % bb == 0
    rows = bb * S

    f = fold_params(raw_params, num_heads, compute_dtype)
    weight_args = []
    if has_conv:
        weight_args += [f["wc_t"], f["bc"]]
    weight_args += [f["wl_t"], f["bl"], f["wqkv_t"], f["bqkv"],
                    f["wo_t"], f["bo"], f["wffn_t"]]

    # (B, C1, W, H) -> (B*S, C1); row = b*S + (w*H + h), matching flatten(2).permute(2,0,1).
    x2d = jnp.transpose(x_bchw, (0, 2, 3, 1)).reshape(B * S, C1).astype(compute_dtype)

    def full_spec(a):
        nd = a.ndim
        return pl.BlockSpec(a.shape, lambda i, nd=nd: (0,) * nd)

    in_specs = [pl.BlockSpec((rows, C1), lambda i: (i, 0))]
    in_specs += [full_spec(a) for a in weight_args]

    # Advisory cost estimate (in_proj + scores + PV + out_proj + folded FFN).
    per_layer_row = 2 * 3 * C2 * C2 + 4 * S * C2 + 2 * C2 * C2 + 2 * C2 * C2
    flops = B * S * ((2 * C1 * C2 if has_conv else 0) + 2 * C2 * C2 + L * per_layer_row)
    transcendentals = B * S * ((C2 if has_conv else 0) + L * num_heads * S)
    weight_bytes = sum(int(np.prod(a.shape)) * a.dtype.itemsize for a in weight_args)
    bytes_accessed = (x2d.size * x2d.dtype.itemsize
                      + B * S * C2 * np.dtype(x_bchw.dtype).itemsize + weight_bytes)

    out2d = pl.pallas_call(
        functools.partial(transformer_block_kernel,
                          num_heads=num_heads, num_layers=L, seq_len=S,
                          batch_block=bb, has_conv=has_conv),
        out_shape=jax.ShapeDtypeStruct((B * S, C2), x_bchw.dtype),
        grid_spec=pltpu.PrefetchScalarGridSpec(
            num_scalar_prefetch=0,
            grid=(B // bb,),
            in_specs=in_specs,
            out_specs=pl.BlockSpec((rows, C2), lambda i: (i, 0)),
        ),
        compiler_params=pltpu.CompilerParams(
            dimension_semantics=("parallel",)),
        cost_estimate=pl.CostEstimate(
            flops=int(flops), transcendentals=int(transcendentals),
            bytes_accessed=int(bytes_accessed)),
    )(x2d, *weight_args)

    # (B*S, C2) -> (B, C2, W, H), matching .permute(1, 2, 0).reshape(b, c2, w, h).
    return jnp.transpose(out2d.reshape(B, S, C2), (0, 2, 1)).reshape(B, C2, W, Hs)


def make_raw_params(key, c1, c2, num_heads, num_layers):
    keys = iter(jax.random.split(key, 8 + 9 * num_layers))
    raw = {}
    if c1 != c2:
        raw["conv"] = dict(
            w=jax.random.normal(next(keys), (c2, c1), jnp.float32) / np.sqrt(c1),
            gamma=1.0 + 0.1 * jax.random.normal(next(keys), (c2,), jnp.float32),
            beta=0.1 * jax.random.normal(next(keys), (c2,), jnp.float32),
            mean=0.1 * jax.random.normal(next(keys), (c2,), jnp.float32),
            var=jnp.abs(1.0 + 0.1 * jax.random.normal(next(keys), (c2,), jnp.float32)),
            eps=1e-5,
        )
    raw["wl"] = jax.random.normal(next(keys), (c2, c2), jnp.float32) / np.sqrt(c2)
    raw["bl"] = 0.02 * jax.random.normal(next(keys), (c2,), jnp.float32)
    s = 1.0 / np.sqrt(c2)
    layers = []
    for _ in range(num_layers):
        wq = jax.random.normal(next(keys), (c2, c2), jnp.float32) * s
        wk = jax.random.normal(next(keys), (c2, c2), jnp.float32) * s
        wv = jax.random.normal(next(keys), (c2, c2), jnp.float32) * s
        wi = jax.random.normal(next(keys), (3 * c2, c2), jnp.float32) * s
        bi = 0.02 * jax.random.normal(next(keys), (3 * c2,), jnp.float32)
        wo = jax.random.normal(next(keys), (c2, c2), jnp.float32) * s
        bo = 0.02 * jax.random.normal(next(keys), (c2,), jnp.float32)
        w1 = jax.random.normal(next(keys), (c2, c2), jnp.float32) * s
        w2 = jax.random.normal(next(keys), (c2, c2), jnp.float32) * s
        layers.append((wq, wk, wv, wi, bi, wo, bo, w1, w2))
    raw["layers"] = layers
    return raw


def reference_block(x_bchw, raw, num_heads):
    """Pure-JAX reference mirroring the PyTorch TransformerBlock forward (eval)."""
    x = x_bchw
    B, _, W, Hs = x.shape
    conv = raw.get("conv")
    if conv is not None:
        y = jnp.einsum('bchw,oc->bohw', x, conv["w"])
        inv = conv["gamma"] / jnp.sqrt(conv["var"] + conv["eps"])
        y = y * inv[None, :, None, None] + (conv["beta"] - conv["mean"] * inv)[None, :, None, None]
        x = y * jax.nn.sigmoid(y)                            # SiLU
    C2 = x.shape[1]
    S = W * Hs
    p = x.reshape(B, C2, S).transpose(2, 0, 1)               # flatten(2).permute(2,0,1)
    p = p + p @ raw["wl"].T + raw["bl"]
    H, D = num_heads, C2 // num_heads
    for (wq, wk, wv, wi, bi, wo, bo, w1, w2) in raw["layers"]:
        q, k, v = p @ wq.T, p @ wk.T, p @ wv.T
        q2 = q @ wi[0:C2].T + bi[0:C2]
        k2 = k @ wi[C2:2 * C2].T + bi[C2:2 * C2]
        v2 = v @ wi[2 * C2:].T + bi[2 * C2:]

        def split(t):                                        # (S,B,E) -> (B,H,S,D)
            return t.reshape(S, B, H, D).transpose(1, 2, 0, 3)

        qh, kh, vh = split(q2) / np.sqrt(D), split(k2), split(v2)
        sc = jnp.einsum('bhsd,bhtd->bhst', qh, kh)
        pr = jax.nn.softmax(sc, axis=-1)
        at = jnp.einsum('bhst,bhtd->bhsd', pr, vh).transpose(2, 0, 1, 3).reshape(S, B, C2)
        x1 = at @ wo.T + bo + p
        p = (x1 @ w1.T) @ w2.T + x1
    return p.transpose(1, 2, 0).reshape(B, C2, W, Hs)


if __name__ == "__main__":
    B, C1, C2, W, Hs = 2, 16, 32, 4, 4          # x: (2, 16, 4, 4), seq = W*H = 16
    NUM_HEADS, NUM_LAYERS = 4, 2

    root = jax.random.PRNGKey(0)
    kx, kp = jax.random.split(root)
    x = jax.random.normal(kx, (B, C1, W, Hs), jnp.float32)
    raw = make_raw_params(kp, C1, C2, NUM_HEADS, NUM_LAYERS)

    # On v6e/v7x pass compute_dtype=jnp.bfloat16 (MXU-rate operands, f32 accumulate)
    # and on v7x batch_block=B//2 to shard the batch across the two TensorCores.
    out = transformer_block(x, raw, NUM_HEADS)
    out = jax.block_until_ready(out)

    ref = reference_block(x, raw, NUM_HEADS)
    # Exact softmax normalization now; remaining diffs are weight-fold / summation
    # rounding-order at f32 level.
    np.testing.assert_allclose(np.asarray(out), np.asarray(ref), rtol=1e-2, atol=1e-2)

    print("KERNEL_OK")
</pallas_src>

<mosaic_0001>
module attributes {stable_mosaic.version = 11 : i64} {
  func.func @transformer_block_kernel(%arg0: i32, %arg1: memref<32x16xf32, #tpu.memory_space<vmem>>, %arg2: memref<16x32xf32, #tpu.memory_space<vmem>>, %arg3: memref<1x32xf32, #tpu.memory_space<vmem>>, %arg4: memref<32x32xf32, #tpu.memory_space<vmem>>, %arg5: memref<1x32xf32, #tpu.memory_space<vmem>>, %arg6: memref<2x32x96xf32, #tpu.memory_space<vmem>>, %arg7: memref<2x1x96xf32, #tpu.memory_space<vmem>>, %arg8: memref<2x32x32xf32, #tpu.memory_space<vmem>>, %arg9: memref<2x1x32xf32, #tpu.memory_space<vmem>>, %arg10: memref<2x32x32xf32, #tpu.memory_space<vmem>>, %arg11: memref<32x32xf32, #tpu.memory_space<vmem>>) attributes {dimension_semantics = [#tpu.dimension_semantics<parallel>], iteration_bounds = array<i64: 1>, scalar_prefetch = 0 : i64, scratch_operands = 0 : i64, tpu.core_type = #tpu.core_type<tc>, window_params = [{transform_indices = @transform_0, window_bounds = array<i64: 32, 16>}, {pipeline_mode = #tpu.pipeline_mode<synchronous>, transform_indices = @transform_1, window_bounds = array<i64: 16, 32>}, {pipeline_mode = #tpu.pipeline_mode<synchronous>, transform_indices = @transform_2, window_bounds = array<i64: 1, 32>}, {pipeline_mode = #tpu.pipeline_mode<synchronous>, transform_indices = @transform_3, window_bounds = array<i64: 32, 32>}, {pipeline_mode = #tpu.pipeline_mode<synchronous>, transform_indices = @transform_4, window_bounds = array<i64: 1, 32>}, {pipeline_mode = #tpu.pipeline_mode<synchronous>, transform_indices = @transform_5, window_bounds = array<i64: 2, 32, 96>}, {pipeline_mode = #tpu.pipeline_mode<synchronous>, transform_indices = @transform_6, window_bounds = array<i64: 2, 1, 96>}, {pipeline_mode = #tpu.pipeline_mode<synchronous>, transform_indices = @transform_7, window_bounds = array<i64: 2, 32, 32>}, {pipeline_mode = #tpu.pipeline_mode<synchronous>, transform_indices = @transform_8, window_bounds = array<i64: 2, 1, 32>}, {pipeline_mode = #tpu.pipeline_mode<synchronous>, transform_indices = @transform_9, window_bounds = array<i64: 2, 32, 32>}, {transform_indices = @transform_10, window_bounds = array<i64: 32, 32>}]} {
    %c0 = arith.constant 0 : index
    %c0_0 = arith.constant 0 : index
    %0 = vector.load %arg1[%c0, %c0_0] : memref<32x16xf32, #tpu.memory_space<vmem>>, vector<32x16xf32>
    %c0_1 = arith.constant 0 : index
    %c0_2 = arith.constant 0 : index
    %1 = vector.load %arg2[%c0_1, %c0_2] : memref<16x32xf32, #tpu.memory_space<vmem>>, vector<16x32xf32>
    %cst = arith.constant dense<0.000000e+00> : vector<32x32xf32>
    %2 = tpu.matmul %0, %1, %cst {dimension_numbers = #tpu.dot_dimension_numbers<[1], [0], [0], [1], [0, 0, 1, 1], [], []>} : vector<32x16xf32>, vector<16x32xf32>, vector<32x32xf32> -> vector<32x32xf32>
    %c0_3 = arith.constant 0 : index
    %c0_4 = arith.constant 0 : index
    %3 = vector.load %arg3[%c0_3, %c0_4] : memref<1x32xf32, #tpu.memory_space<vmem>>, vector<1x32xf32>
    %4 = vector.broadcast %3 : vector<1x32xf32> to vector<32x32xf32>
    %5 = arith.addf %2, %4 : vector<32x32xf32>
    %cst_5 = arith.constant 0.000000e+00 : f32
    %6 = vector.broadcast %cst_5 : f32 to vector<32x32xf32>
    %7 = arith.subf %6, %5 : vector<32x32xf32>
    %8 = math.exp %7 : vector<32x32xf32>
    %cst_6 = arith.constant 1.000000e+00 : f32
    %9 = vector.broadcast %cst_6 : f32 to vector<32x32xf32>
    %10 = arith.addf %9, %8 : vector<32x32xf32>
    %11 = arith.divf %5, %10 : vector<32x32xf32>
    %c0_7 = arith.constant 0 : index
    %c0_8 = arith.constant 0 : index
    %12 = vector.load %arg4[%c0_7, %c0_8] : memref<32x32xf32, #tpu.memory_space<vmem>>, vector<32x32xf32>
    %cst_9 = arith.constant dense<0.000000e+00> : vector<32x32xf32>
    %13 = tpu.matmul %11, %12, %cst_9 {dimension_numbers = #tpu.dot_dimension_numbers<[1], [0], [0], [1], [0, 0, 1, 1], [], []>} : vector<32x32xf32>, vector<32x32xf32>, vector<32x32xf32> -> vector<32x32xf32>
    %14 = arith.addf %11, %13 : vector<32x32xf32>
    %c0_10 = arith.constant 0 : index
    %c0_11 = arith.constant 0 : index
    %15 = vector.load %arg5[%c0_10, %c0_11] : memref<1x32xf32, #tpu.memory_space<vmem>>, vector<1x32xf32>
    %16 = vector.broadcast %15 : vector<1x32xf32> to vector<32x32xf32>
    %17 = arith.addf %14, %16 : vector<32x32xf32>
    %c0_12 = arith.constant 0 : index
    %c0_13 = arith.constant 0 : index
    %c0_14 = arith.constant 0 : index
    %18 = vector.load %arg6[%c0_12, %c0_13, %c0_14] : memref<2x32x96xf32, #tpu.memory_space<vmem>>, vector<1x32x96xf32>
    %19 = vector.shape_cast %18 : vector<1x32x96xf32> to vector<32x96xf32>
    %cst_15 = arith.constant dense<0.000000e+00> : vector<32x96xf32>
    %20 = tpu.matmul %17, %19, %cst_15 {dimension_numbers = #tpu.dot_dimension_numbers<[1], [0], [0], [1], [0, 0, 1, 1], [], []>} : vector<32x32xf32>, vector<32x96xf32>, vector<32x96xf32> -> vector<32x96xf32>
    %c0_16 = arith.constant 0 : index
    %c0_17 = arith.constant 0 : index
    %c0_18 = arith.constant 0 : index
    %21 = vector.load %arg7[%c0_16, %c0_17, %c0_18] : memref<2x1x96xf32, #tpu.memory_space<vmem>>, vector<1x1x96xf32>
    %22 = vector.shape_cast %21 : vector<1x1x96xf32> to vector<1x96xf32>
    %23 = vector.broadcast %22 : vector<1x96xf32> to vector<32x96xf32>
    %24 = arith.addf %20, %23 : vector<32x96xf32>
    %c0_19 = arith.constant 0 : index
    %c0_20 = arith.constant 0 : index
    %c0_21 = arith.constant 0 : index
    %25 = vector.load %arg8[%c0_19, %c0_20, %c0_21] : memref<2x32x32xf32, #tpu.memory_space<vmem>>, vector<1x32x32xf32>
    %26 = vector.shape_cast %25 : vector<1x32x32xf32> to vector<32x32xf32>
    %c0_22 = arith.constant 0 : index
    %c0_23 = arith.constant 0 : index
    %c0_24 = arith.constant 0 : index
    %27 = vector.load %arg9[%c0_22, %c0_23, %c0_24] : memref<2x1x32xf32, #tpu.memory_space<vmem>>, vector<1x1x32xf32>
    %28 = vector.shape_cast %27 : vector<1x1x32xf32> to vector<1x32xf32>
    %29 = vector.broadcast %28 : vector<1x32xf32> to vector<32x32xf32>
    %30 = arith.addf %17, %29 : vector<32x32xf32>
    %31 = vector.extract_strided_slice %24 {offsets = [0, 0], sizes = [32, 8], strides = [1, 1]} : vector<32x96xf32> to vector<32x8xf32>
    %32 = vector.shape_cast %31 : vector<32x8xf32> to vector<2x16x8xf32>
    %33 = vector.extract_strided_slice %24 {offsets = [0, 32], sizes = [32, 8], strides = [1, 1]} : vector<32x96xf32> to vector<32x8xf32>
    %34 = vector.shape_cast %33 : vector<32x8xf32> to vector<2x16x8xf32>
    %35 = vector.extract_strided_slice %24 {offsets = [0, 64], sizes = [32, 8], strides = [1, 1]} : vector<32x96xf32> to vector<32x8xf32>
    %36 = vector.shape_cast %35 : vector<32x8xf32> to vector<2x16x8xf32>
    %cst_25 = arith.constant dense<0.000000e+00> : vector<2x16x16xf32>
    %37 = tpu.matmul %32, %34, %cst_25 {dimension_numbers = #tpu.dot_dimension_numbers<[2], [2], [1], [1], [0, 0, 0, 1, 1, 1], [0], [0]>} : vector<2x16x8xf32>, vector<2x16x8xf32>, vector<2x16x16xf32> -> vector<2x16x16xf32>
    %cst_26 = arith.constant dense<0xFF800000> : vector<2x16xf32>
    %38 = vector.multi_reduction <maximumf>, %37, %cst_26 [2] : vector<2x16x16xf32> to vector<2x16xf32>
    %39 = vector.shape_cast %38 : vector<2x16xf32> to vector<2x16x1xf32>
    %40 = vector.broadcast %39 : vector<2x16x1xf32> to vector<2x16x16xf32>
    %41 = arith.subf %37, %40 : vector<2x16x16xf32>
    %42 = math.exp %41 : vector<2x16x16xf32>
    %cst_27 = arith.constant dense<0.000000e+00> : vector<2x16xf32>
    %43 = vector.multi_reduction <add>, %42, %cst_27 [2] : vector<2x16x16xf32> to vector<2x16xf32>
    %44 = vector.shape_cast %43 : vector<2x16xf32> to vector<2x16x1xf32>
    %cst_28 = arith.constant dense<0.000000e+00> : vector<2x16x8xf32>
    %45 = tpu.matmul %42, %36, %cst_28 {dimension_numbers = #tpu.dot_dimension_numbers<[2], [1], [1], [2], [0, 0, 0, 1, 1, 2], [0], [0]>} : vector<2x16x16xf32>, vector<2x16x8xf32>, vector<2x16x8xf32> -> vector<2x16x8xf32>
    %46 = vector.broadcast %44 : vector<2x16x1xf32> to vector<2x16x8xf32>
    %47 = arith.divf %45, %46 : vector<2x16x8xf32>
    %48 = vector.shape_cast %47 : vector<2x16x8xf32> to vector<32x8xf32>
    %49 = vector.extract_strided_slice %26 {offsets = [0, 0], sizes = [8, 32], strides = [1, 1]} : vector<32x32xf32> to vector<8x32xf32>
    %cst_29 = arith.constant dense<0.000000e+00> : vector<32x32xf32>
    %50 = tpu.matmul %48, %49, %cst_29 {dimension_numbers = #tpu.dot_dimension_numbers<[1], [0], [0], [1], [0, 0, 1, 1], [], []>} : vector<32x8xf32>, vector<8x32xf32>, vector<32x32xf32> -> vector<32x32xf32>
    %51 = arith.addf %30, %50 : vector<32x32xf32>
    %52 = vector.extract_strided_slice %24 {offsets = [0, 8], sizes = [32, 8], strides = [1, 1]} : vector<32x96xf32> to vector<32x8xf32>
    %53 = vector.shape_cast %52 : vector<32x8xf32> to vector<2x16x8xf32>
    %54 = vector.extract_strided_slice %24 {offsets = [0, 40], sizes = [32, 8], strides = [1, 1]} : vector<32x96xf32> to vector<32x8xf32>
    %55 = vector.shape_cast %54 : vector<32x8xf32> to vector<2x16x8xf32>
    %56 = vector.extract_strided_slice %24 {offsets = [0, 72], sizes = [32, 8], strides = [1, 1]} : vector<32x96xf32> to vector<32x8xf32>
    %57 = vector.shape_cast %56 : vector<32x8xf32> to vector<2x16x8xf32>
    %cst_30 = arith.constant dense<0.000000e+00> : vector<2x16x16xf32>
    %58 = tpu.matmul %53, %55, %cst_30 {dimension_numbers = #tpu.dot_dimension_numbers<[2], [2], [1], [1], [0, 0, 0, 1, 1, 1], [0], [0]>} : vector<2x16x8xf32>, vector<2x16x8xf32>, vector<2x16x16xf32> -> vector<2x16x16xf32>
    %cst_31 = arith.constant dense<0xFF800000> : vector<2x16xf32>
    %59 = vector.multi_reduction <maximumf>, %58, %cst_31 [2] : vector<2x16x16xf32> to vector<2x16xf32>
    %60 = vector.shape_cast %59 : vector<2x16xf32> to vector<2x16x1xf32>
    %61 = vector.broadcast %60 : vector<2x16x1xf32> to vector<2x16x16xf32>
    %62 = arith.subf %58, %61 : vector<2x16x16xf32>
    %63 = math.exp %62 : vector<2x16x16xf32>
    %cst_32 = arith.constant dense<0.000000e+00> : vector<2x16xf32>
    %64 = vector.multi_reduction <add>, %63, %cst_32 [2] : vector<2x16x16xf32> to vector<2x16xf32>
    %65 = vector.shape_cast %64 : vector<2x16xf32> to vector<2x16x1xf32>
    %cst_33 = arith.constant dense<0.000000e+00> : vector<2x16x8xf32>
    %66 = tpu.matmul %63, %57, %cst_33 {dimension_numbers = #tpu.dot_dimension_numbers<[2], [1], [1], [2], [0, 0, 0, 1, 1, 2], [0], [0]>} : vector<2x16x16xf32>, vector<2x16x8xf32>, vector<2x16x8xf32> -> vector<2x16x8xf32>
    %67 = vector.broadcast %65 : vector<2x16x1xf32> to vector<2x16x8xf32>
    %68 = arith.divf %66, %67 : vector<2x16x8xf32>
    %69 = vector.shape_cast %68 : vector<2x16x8xf32> to vector<32x8xf32>
    %70 = vector.extract_strided_slice %26 {offsets = [8, 0], sizes = [8, 32], strides = [1, 1]} : vector<32x32xf32> to vector<8x32xf32>
    %cst_34 = arith.constant dense<0.000000e+00> : vector<32x32xf32>
    %71 = tpu.matmul %69, %70, %cst_34 {dimension_numbers = #tpu.dot_dimension_numbers<[1], [0], [0], [1], [0, 0, 1, 1], [], []>} : vector<32x8xf32>, vector<8x32xf32>, vector<32x32xf32> -> vector<32x32xf32>
    %72 = arith.addf %51, %71 : vector<32x32xf32>
    %73 = vector.extract_strided_slice %24 {offsets = [0, 16], sizes = [32, 8], strides = [1, 1]} : vector<32x96xf32> to vector<32x8xf32>
    %74 = vector.shape_cast %73 : vector<32x8xf32> to vector<2x16x8xf32>
    %75 = vector.extract_strided_slice %24 {offsets = [0, 48], sizes = [32, 8], strides = [1, 1]} : vector<32x96xf32> to vector<32x8xf32>
    %76 = vector.shape_cast %75 : vector<32x8xf32> to vector<2x16x8xf32>
    %77 = vector.extract_strided_slice %24 {offsets = [0, 80], sizes = [32, 8], strides = [1, 1]} : vector<32x96xf32> to vector<32x8xf32>
    %78 = vector.shape_cast %77 : vector<32x8xf32> to vector<2x16x8xf32>
    %cst_35 = arith.constant dense<0.000000e+00> : vector<2x16x16xf32>
    %79 = tpu.matmul %74, %76, %cst_35 {dimension_numbers = #tpu.dot_dimension_numbers<[2], [2], [1], [1], [0, 0, 0, 1, 1, 1], [0], [0]>} : vector<2x16x8xf32>, vector<2x16x8xf32>, vector<2x16x16xf32> -> vector<2x16x16xf32>
    %cst_36 = arith.constant dense<0xFF800000> : vector<2x16xf32>
    %80 = vector.multi_reduction <maximumf>, %79, %cst_36 [2] : vector<2x16x16xf32> to vector<2x16xf32>
    %81 = vector.shape_cast %80 : vector<2x16xf32> to vector<2x16x1xf32>
    %82 = vector.broadcast %81 : vector<2x16x1xf32> to vector<2x16x16xf32>
    %83 = arith.subf %79, %82 : vector<2x16x16xf32>
    %84 = math.exp %83 : vector<2x16x16xf32>
    %cst_37 = arith.constant dense<0.000000e+00> : vector<2x16xf32>
    %85 = vector.multi_reduction <add>, %84, %cst_37 [2] : vector<2x16x16xf32> to vector<2x16xf32>
    %86 = vector.shape_cast %85 : vector<2x16xf32> to vector<2x16x1xf32>
    %cst_38 = arith.constant dense<0.000000e+00> : vector<2x16x8xf32>
    %87 = tpu.matmul %84, %78, %cst_38 {dimension_numbers = #tpu.dot_dimension_numbers<[2], [1], [1], [2], [0, 0, 0, 1, 1, 2], [0], [0]>} : vector<2x16x16xf32>, vector<2x16x8xf32>, vector<2x16x8xf32> -> vector<2x16x8xf32>
    %88 = vector.broadcast %86 : vector<2x16x1xf32> to vector<2x16x8xf32>
    %89 = arith.divf %87, %88 : vector<2x16x8xf32>
    %90 = vector.shape_cast %89 : vector<2x16x8xf32> to vector<32x8xf32>
    %91 = vector.extract_strided_slice %26 {offsets = [16, 0], sizes = [8, 32], strides = [1, 1]} : vector<32x32xf32> to vector<8x32xf32>
    %cst_39 = arith.constant dense<0.000000e+00> : vector<32x32xf32>
    %92 = tpu.matmul %90, %91, %cst_39 {dimension_numbers = #tpu.dot_dimension_numbers<[1], [0], [0], [1], [0, 0, 1, 1], [], []>} : vector<32x8xf32>, vector<8x32xf32>, vector<32x32xf32> -> vector<32x32xf32>
    %93 = arith.addf %72, %92 : vector<32x32xf32>
    %94 = vector.extract_strided_slice %24 {offsets = [0, 24], sizes = [32, 8], strides = [1, 1]} : vector<32x96xf32> to vector<32x8xf32>
    %95 = vector.shape_cast %94 : vector<32x8xf32> to vector<2x16x8xf32>
    %96 = vector.extract_strided_slice %24 {offsets = [0, 56], sizes = [32, 8], strides = [1, 1]} : vector<32x96xf32> to vector<32x8xf32>
    %97 = vector.shape_cast %96 : vector<32x8xf32> to vector<2x16x8xf32>
    %98 = vector.extract_strided_slice %24 {offsets = [0, 88], sizes = [32, 8], strides = [1, 1]} : vector<32x96xf32> to vector<32x8xf32>
    %99 = vector.shape_cast %98 : vector<32x8xf32> to vector<2x16x8xf32>
    %cst_40 = arith.constant dense<0.000000e+00> : vector<2x16x16xf32>
    %100 = tpu.matmul %95, %97, %cst_40 {dimension_numbers = #tpu.dot_dimension_numbers<[2], [2], [1], [1], [0, 0, 0, 1, 1, 1], [0], [0]>} : vector<2x16x8xf32>, vector<2x16x8xf32>, vector<2x16x16xf32> -> vector<2x16x16xf32>
    %cst_41 = arith.constant dense<0xFF800000> : vector<2x16xf32>
    %101 = vector.multi_reduction <maximumf>, %100, %cst_41 [2] : vector<2x16x16xf32> to vector<2x16xf32>
    %102 = vector.shape_cast %101 : vector<2x16xf32> to vector<2x16x1xf32>
    %103 = vector.broadcast %102 : vector<2x16x1xf32> to vector<2x16x16xf32>
    %104 = arith.subf %100, %103 : vector<2x16x16xf32>
    %105 = math.exp %104 : vector<2x16x16xf32>
    %cst_42 = arith.constant dense<0.000000e+00> : vector<2x16xf32>
    %106 = vector.multi_reduction <add>, %105, %cst_42 [2] : vector<2x16x16xf32> to vector<2x16xf32>
    %107 = vector.shape_cast %106 : vector<2x16xf32> to vector<2x16x1xf32>
    %cst_43 = arith.constant dense<0.000000e+00> : vector<2x16x8xf32>
    %108 = tpu.matmul %105, %99, %cst_43 {dimension_numbers = #tpu.dot_dimension_numbers<[2], [1], [1], [2], [0, 0, 0, 1, 1, 2], [0], [0]>} : vector<2x16x16xf32>, vector<2x16x8xf32>, vector<2x16x8xf32> -> vector<2x16x8xf32>
    %109 = vector.broadcast %107 : vector<2x16x1xf32> to vector<2x16x8xf32>
    %110 = arith.divf %108, %109 : vector<2x16x8xf32>
    %111 = vector.shape_cast %110 : vector<2x16x8xf32> to vector<32x8xf32>
    %112 = vector.extract_strided_slice %26 {offsets = [24, 0], sizes = [8, 32], strides = [1, 1]} : vector<32x32xf32> to vector<8x32xf32>
    %cst_44 = arith.constant dense<0.000000e+00> : vector<32x32xf32>
    %113 = tpu.matmul %111, %112, %cst_44 {dimension_numbers = #tpu.dot_dimension_numbers<[1], [0], [0], [1], [0, 0, 1, 1], [], []>} : vector<32x8xf32>, vector<8x32xf32>, vector<32x32xf32> -> vector<32x32xf32>
    %114 = arith.addf %93, %113 : vector<32x32xf32>
    %c0_45 = arith.constant 0 : index
    %c0_46 = arith.constant 0 : index
    %c0_47 = arith.constant 0 : index
    %115 = vector.load %arg10[%c0_45, %c0_46, %c0_47] : memref<2x32x32xf32, #tpu.memory_space<vmem>>, vector<1x32x32xf32>
    %116 = vector.shape_cast %115 : vector<1x32x32xf32> to vector<32x32xf32>
    %cst_48 = arith.constant dense<0.000000e+00> : vector<32x32xf32>
    %117 = tpu.matmul %114, %116, %cst_48 {dimension_numbers = #tpu.dot_dimension_numbers<[1], [0], [0], [1], [0, 0, 1, 1], [], []>} : vector<32x32xf32>, vector<32x32xf32>, vector<32x32xf32> -> vector<32x32xf32>
    %118 = arith.addf %117, %114 : vector<32x32xf32>
    %c1 = arith.constant 1 : index
    %c0_49 = arith.constant 0 : index
    %c0_50 = arith.constant 0 : index
    %119 = vector.load %arg6[%c1, %c0_49, %c0_50] : memref<2x32x96xf32, #tpu.memory_space<vmem>>, vector<1x32x96xf32>
    %120 = vector.shape_cast %119 : vector<1x32x96xf32> to vector<32x96xf32>
    %cst_51 = arith.constant dense<0.000000e+00> : vector<32x96xf32>
    %121 = tpu.matmul %118, %120, %cst_51 {dimension_numbers = #tpu.dot_dimension_numbers<[1], [0], [0], [1], [0, 0, 1, 1], [], []>} : vector<32x32xf32>, vector<32x96xf32>, vector<32x96xf32> -> vector<32x96xf32>
    %c1_52 = arith.constant 1 : index
    %c0_53 = arith.constant 0 : index
    %c0_54 = arith.constant 0 : index
    %122 = vector.load %arg7[%c1_52, %c0_53, %c0_54] : memref<2x1x96xf32, #tpu.memory_space<vmem>>, vector<1x1x96xf32>
    %123 = vector.shape_cast %122 : vector<1x1x96xf32> to vector<1x96xf32>
    %124 = vector.broadcast %123 : vector<1x96xf32> to vector<32x96xf32>
    %125 = arith.addf %121, %124 : vector<32x96xf32>
    %c1_55 = arith.constant 1 : index
    %c0_56 = arith.constant 0 : index
    %c0_57 = arith.constant 0 : index
    %126 = vector.load %arg8[%c1_55, %c0_56, %c0_57] : memref<2x32x32xf32, #tpu.memory_space<vmem>>, vector<1x32x32xf32>
    %127 = vector.shape_cast %126 : vector<1x32x32xf32> to vector<32x32xf32>
    %c1_58 = arith.constant 1 : index
    %c0_59 = arith.constant 0 : index
    %c0_60 = arith.constant 0 : index
    %128 = vector.load %arg9[%c1_58, %c0_59, %c0_60] : memref<2x1x32xf32, #tpu.memory_space<vmem>>, vector<1x1x32xf32>
    %129 = vector.shape_cast %128 : vector<1x1x32xf32> to vector<1x32xf32>
    %130 = vector.broadcast %129 : vector<1x32xf32> to vector<32x32xf32>
    %131 = arith.addf %118, %130 : vector<32x32xf32>
    %132 = vector.extract_strided_slice %125 {offsets = [0, 0], sizes = [32, 8], strides = [1, 1]} : vector<32x96xf32> to vector<32x8xf32>
    %133 = vector.shape_cast %132 : vector<32x8xf32> to vector<2x16x8xf32>
    %134 = vector.extract_strided_slice %125 {offsets = [0, 32], sizes = [32, 8], strides = [1, 1]} : vector<32x96xf32> to vector<32x8xf32>
    %135 = vector.shape_cast %134 : vector<32x8xf32> to vector<2x16x8xf32>
    %136 = vector.extract_strided_slice %125 {offsets = [0, 64], sizes = [32, 8], strides = [1, 1]} : vector<32x96xf32> to vector<32x8xf32>
    %137 = vector.shape_cast %136 : vector<32x8xf32> to vector<2x16x8xf32>
    %cst_61 = arith.constant dense<0.000000e+00> : vector<2x16x16xf32>
    %138 = tpu.matmul %133, %135, %cst_61 {dimension_numbers = #tpu.dot_dimension_numbers<[2], [2], [1], [1], [0, 0, 0, 1, 1, 1], [0], [0]>} : vector<2x16x8xf32>, vector<2x16x8xf32>, vector<2x16x16xf32> -> vector<2x16x16xf32>
    %cst_62 = arith.constant dense<0xFF800000> : vector<2x16xf32>
    %139 = vector.multi_reduction <maximumf>, %138, %cst_62 [2] : vector<2x16x16xf32> to vector<2x16xf32>
    %140 = vector.shape_cast %139 : vector<2x16xf32> to vector<2x16x1xf32>
    %141 = vector.broadcast %140 : vector<2x16x1xf32> to vector<2x16x16xf32>
    %142 = arith.subf %138, %141 : vector<2x16x16xf32>
    %143 = math.exp %142 : vector<2x16x16xf32>
    %cst_63 = arith.constant dense<0.000000e+00> : vector<2x16xf32>
    %144 = vector.multi_reduction <add>, %143, %cst_63 [2] : vector<2x16x16xf32> to vector<2x16xf32>
    %145 = vector.shape_cast %144 : vector<2x16xf32> to vector<2x16x1xf32>
    %cst_64 = arith.constant dense<0.000000e+00> : vector<2x16x8xf32>
    %146 = tpu.matmul %143, %137, %cst_64 {dimension_numbers = #tpu.dot_dimension_numbers<[2], [1], [1], [2], [0, 0, 0, 1, 1, 2], [0], [0]>} : vector<2x16x16xf32>, vector<2x16x8xf32>, vector<2x16x8xf32> -> vector<2x16x8xf32>
    %147 = vector.broadcast %145 : vector<2x16x1xf32> to vector<2x16x8xf32>
    %148 = arith.divf %146, %147 : vector<2x16x8xf32>
    %149 = vector.shape_cast %148 : vector<2x16x8xf32> to vector<32x8xf32>
    %150 = vector.extract_strided_slice %127 {offsets = [0, 0], sizes = [8, 32], strides = [1, 1]} : vector<32x32xf32> to vector<8x32xf32>
    %cst_65 = arith.constant dense<0.000000e+00> : vector<32x32xf32>
    %151 = tpu.matmul %149, %150, %cst_65 {dimension_numbers = #tpu.dot_dimension_numbers<[1], [0], [0], [1], [0, 0, 1, 1], [], []>} : vector<32x8xf32>, vector<8x32xf32>, vector<32x32xf32> -> vector<32x32xf32>
    %152 = arith.addf %131, %151 : vector<32x32xf32>
    %153 = vector.extract_strided_slice %125 {offsets = [0, 8], sizes = [32, 8], strides = [1, 1]} : vector<32x96xf32> to vector<32x8xf32>
    %154 = vector.shape_cast %153 : vector<32x8xf32> to vector<2x16x8xf32>
    %155 = vector.extract_strided_slice %125 {offsets = [0, 40], sizes = [32, 8], strides = [1, 1]} : vector<32x96xf32> to vector<32x8xf32>
    %156 = vector.shape_cast %155 : vector<32x8xf32> to vector<2x16x8xf32>
    %157 = vector.extract_strided_slice %125 {offsets = [0, 72], sizes = [32, 8], strides = [1, 1]} : vector<32x96xf32> to vector<32x8xf32>
    %158 = vector.shape_cast %157 : vector<32x8xf32> to vector<2x16x8xf32>
    %cst_66 = arith.constant dense<0.000000e+00> : vector<2x16x16xf32>
    %159 = tpu.matmul %154, %156, %cst_66 {dimension_numbers = #tpu.dot_dimension_numbers<[2], [2], [1], [1], [0, 0, 0, 1, 1, 1], [0], [0]>} : vector<2x16x8xf32>, vector<2x16x8xf32>, vector<2x16x16xf32> -> vector<2x16x16xf32>
    %cst_67 = arith.constant dense<0xFF800000> : vector<2x16xf32>
    %160 = vector.multi_reduction <maximumf>, %159, %cst_67 [2] : vector<2x16x16xf32> to vector<2x16xf32>
    %161 = vector.shape_cast %160 : vector<2x16xf32> to vector<2x16x1xf32>
    %162 = vector.broadcast %161 : vector<2x16x1xf32> to vector<2x16x16xf32>
    %163 = arith.subf %159, %162 : vector<2x16x16xf32>
    %164 = math.exp %163 : vector<2x16x16xf32>
    %cst_68 = arith.constant dense<0.000000e+00> : vector<2x16xf32>
    %165 = vector.multi_reduction <add>, %164, %cst_68 [2] : vector<2x16x16xf32> to vector<2x16xf32>
    %166 = vector.shape_cast %165 : vector<2x16xf32> to vector<2x16x1xf32>
    %cst_69 = arith.constant dense<0.000000e+00> : vector<2x16x8xf32>
    %167 = tpu.matmul %164, %158, %cst_69 {dimension_numbers = #tpu.dot_dimension_numbers<[2], [1], [1], [2], [0, 0, 0, 1, 1, 2], [0], [0]>} : vector<2x16x16xf32>, vector<2x16x8xf32>, vector<2x16x8xf32> -> vector<2x16x8xf32>
    %168 = vector.broadcast %166 : vector<2x16x1xf32> to vector<2x16x8xf32>
    %169 = arith.divf %167, %168 : vector<2x16x8xf32>
    %170 = vector.shape_cast %169 : vector<2x16x8xf32> to vector<32x8xf32>
    %171 = vector.extract_strided_slice %127 {offsets = [8, 0], sizes = [8, 32], strides = [1, 1]} : vector<32x32xf32> to vector<8x32xf32>
    %cst_70 = arith.constant dense<0.000000e+00> : vector<32x32xf32>
    %172 = tpu.matmul %170, %171, %cst_70 {dimension_numbers = #tpu.dot_dimension_numbers<[1], [0], [0], [1], [0, 0, 1, 1], [], []>} : vector<32x8xf32>, vector<8x32xf32>, vector<32x32xf32> -> vector<32x32xf32>
    %173 = arith.addf %152, %172 : vector<32x32xf32>
    %174 = vector.extract_strided_slice %125 {offsets = [0, 16], sizes = [32, 8], strides = [1, 1]} : vector<32x96xf32> to vector<32x8xf32>
    %175 = vector.shape_cast %174 : vector<32x8xf32> to vector<2x16x8xf32>
    %176 = vector.extract_strided_slice %125 {offsets = [0, 48], sizes = [32, 8], strides = [1, 1]} : vector<32x96xf32> to vector<32x8xf32>
    %177 = vector.shape_cast %176 : vector<32x8xf32> to vector<2x16x8xf32>
    %178 = vector.extract_strided_slice %125 {offsets = [0, 80], sizes = [32, 8], strides = [1, 1]} : vector<32x96xf32> to vector<32x8xf32>
    %179 = vector.shape_cast %178 : vector<32x8xf32> to vector<2x16x8xf32>
    %cst_71 = arith.constant dense<0.000000e+00> : vector<2x16x16xf32>
    %180 = tpu.matmul %175, %177, %cst_71 {dimension_numbers = #tpu.dot_dimension_numbers<[2], [2], [1], [1], [0, 0, 0, 1, 1, 1], [0], [0]>} : vector<2x16x8xf32>, vector<2x16x8xf32>, vector<2x16x16xf32> -> vector<2x16x16xf32>
    %cst_72 = arith.constant dense<0xFF800000> : vector<2x16xf32>
    %181 = vector.multi_reduction <maximumf>, %180, %cst_72 [2] : vector<2x16x16xf32> to vector<2x16xf32>
    %182 = vector.shape_cast %181 : vector<2x16xf32> to vector<2x16x1xf32>
    %183 = vector.broadcast %182 : vector<2x16x1xf32> to vector<2x16x16xf32>
    %184 = arith.subf %180, %183 : vector<2x16x16xf32>
    %185 = math.exp %184 : vector<2x16x16xf32>
    %cst_73 = arith.constant dense<0.000000e+00> : vector<2x16xf32>
    %186 = vector.multi_reduction <add>, %185, %cst_73 [2] : vector<2x16x16xf32> to vector<2x16xf32>
    %187 = vector.shape_cast %186 : vector<2x16xf32> to vector<2x16x1xf32>
    %cst_74 = arith.constant dense<0.000000e+00> : vector<2x16x8xf32>
    %188 = tpu.matmul %185, %179, %cst_74 {dimension_numbers = #tpu.dot_dimension_numbers<[2], [1], [1], [2], [0, 0, 0, 1, 1, 2], [0], [0]>} : vector<2x16x16xf32>, vector<2x16x8xf32>, vector<2x16x8xf32> -> vector<2x16x8xf32>
    %189 = vector.broadcast %187 : vector<2x16x1xf32> to vector<2x16x8xf32>
    %190 = arith.divf %188, %189 : vector<2x16x8xf32>
    %191 = vector.shape_cast %190 : vector<2x16x8xf32> to vector<32x8xf32>
    %192 = vector.extract_strided_slice %127 {offsets = [16, 0], sizes = [8, 32], strides = [1, 1]} : vector<32x32xf32> to vector<8x32xf32>
    %cst_75 = arith.constant dense<0.000000e+00> : vector<32x32xf32>
    %193 = tpu.matmul %191, %192, %cst_75 {dimension_numbers = #tpu.dot_dimension_numbers<[1], [0], [0], [1], [0, 0, 1, 1], [], []>} : vector<32x8xf32>, vector<8x32xf32>, vector<32x32xf32> -> vector<32x32xf32>
    %194 = arith.addf %173, %193 : vector<32x32xf32>
    %195 = vector.extract_strided_slice %125 {offsets = [0, 24], sizes = [32, 8], strides = [1, 1]} : vector<32x96xf32> to vector<32x8xf32>
    %196 = vector.shape_cast %195 : vector<32x8xf32> to vector<2x16x8xf32>
    %197 = vector.extract_strided_slice %125 {offsets = [0, 56], sizes = [32, 8], strides = [1, 1]} : vector<32x96xf32> to vector<32x8xf32>
    %198 = vector.shape_cast %197 : vector<32x8xf32> to vector<2x16x8xf32>
    %199 = vector.extract_strided_slice %125 {offsets = [0, 88], sizes = [32, 8], strides = [1, 1]} : vector<32x96xf32> to vector<32x8xf32>
    %200 = vector.shape_cast %199 : vector<32x8xf32> to vector<2x16x8xf32>
    %cst_76 = arith.constant dense<0.000000e+00> : vector<2x16x16xf32>
    %201 = tpu.matmul %196, %198, %cst_76 {dimension_numbers = #tpu.dot_dimension_numbers<[2], [2], [1], [1], [0, 0, 0, 1, 1, 1], [0], [0]>} : vector<2x16x8xf32>, vector<2x16x8xf32>, vector<2x16x16xf32> -> vector<2x16x16xf32>
    %cst_77 = arith.constant dense<0xFF800000> : vector<2x16xf32>
    %202 = vector.multi_reduction <maximumf>, %201, %cst_77 [2] : vector<2x16x16xf32> to vector<2x16xf32>
    %203 = vector.shape_cast %202 : vector<2x16xf32> to vector<2x16x1xf32>
    %204 = vector.broadcast %203 : vector<2x16x1xf32> to vector<2x16x16xf32>
    %205 = arith.subf %201, %204 : vector<2x16x16xf32>
    %206 = math.exp %205 : vector<2x16x16xf32>
    %cst_78 = arith.constant dense<0.000000e+00> : vector<2x16xf32>
    %207 = vector.multi_reduction <add>, %206, %cst_78 [2] : vector<2x16x16xf32> to vector<2x16xf32>
    %208 = vector.shape_cast %207 : vector<2x16xf32> to vector<2x16x1xf32>
    %cst_79 = arith.constant dense<0.000000e+00> : vector<2x16x8xf32>
    %209 = tpu.matmul %206, %200, %cst_79 {dimension_numbers = #tpu.dot_dimension_numbers<[2], [1], [1], [2], [0, 0, 0, 1, 1, 2], [0], [0]>} : vector<2x16x16xf32>, vector<2x16x8xf32>, vector<2x16x8xf32> -> vector<2x16x8xf32>
    %210 = vector.broadcast %208 : vector<2x16x1xf32> to vector<2x16x8xf32>
    %211 = arith.divf %209, %210 : vector<2x16x8xf32>
    %212 = vector.shape_cast %211 : vector<2x16x8xf32> to vector<32x8xf32>
    %213 = vector.extract_strided_slice %127 {offsets = [24, 0], sizes = [8, 32], strides = [1, 1]} : vector<32x32xf32> to vector<8x32xf32>
    %cst_80 = arith.constant dense<0.000000e+00> : vector<32x32xf32>
    %214 = tpu.matmul %212, %213, %cst_80 {dimension_numbers = #tpu.dot_dimension_numbers<[1], [0], [0], [1], [0, 0, 1, 1], [], []>} : vector<32x8xf32>, vector<8x32xf32>, vector<32x32xf32> -> vector<32x32xf32>
    %215 = arith.addf %194, %214 : vector<32x32xf32>
    %c1_81 = arith.constant 1 : index
    %c0_82 = arith.constant 0 : index
    %c0_83 = arith.constant 0 : index
    %216 = vector.load %arg10[%c1_81, %c0_82, %c0_83] : memref<2x32x32xf32, #tpu.memory_space<vmem>>, vector<1x32x32xf32>
    %217 = vector.shape_cast %216 : vector<1x32x32xf32> to vector<32x32xf32>
    %cst_84 = arith.constant dense<0.000000e+00> : vector<32x32xf32>
    %218 = tpu.matmul %215, %217, %cst_84 {dimension_numbers = #tpu.dot_dimension_numbers<[1], [0], [0], [1], [0, 0, 1, 1], [], []>} : vector<32x32xf32>, vector<32x32xf32>, vector<32x32xf32> -> vector<32x32xf32>
    %219 = arith.addf %218, %215 : vector<32x32xf32>
    %c0_85 = arith.constant 0 : index
    %c0_86 = arith.constant 0 : index
    %220 = vector.load %arg11[%c0_85, %c0_86] : memref<32x32xf32, #tpu.memory_space<vmem>>, vector<32x32xf32>
    tpu.vector_store %arg11[%c0_85, %c0_86], %219 {strides = array<i32>} : memref<32x32xf32, #tpu.memory_space<vmem>>, vector<32x32xf32>,
    return
  }
  func.func @transform_0(%arg0: i32) -> (i32, i32) {
    %c0_i32 = arith.constant 0 : i32
    %c0_i32_0 = arith.constant 0 : i32
    return %arg0, %c0_i32 : i32, i32
  }
  func.func @transform_1(%arg0: i32) -> (i32, i32) {
    %c0_i32 = arith.constant 0 : i32
    %c0_i32_0 = arith.constant 0 : i32
    %c0_i32_1 = arith.constant 0 : i32
    return %c0_i32, %c0_i32_0 : i32, i32
  }
  func.func @transform_2(%arg0: i32) -> (i32, i32) {
    %c0_i32 = arith.constant 0 : i32
    %c0_i32_0 = arith.constant 0 : i32
    %c0_i32_1 = arith.constant 0 : i32
    return %c0_i32, %c0_i32_0 : i32, i32
  }
  func.func @transform_3(%arg0: i32) -> (i32, i32) {
    %c0_i32 = arith.constant 0 : i32
    %c0_i32_0 = arith.constant 0 : i32
    %c0_i32_1 = arith.constant 0 : i32
    return %c0_i32, %c0_i32_0 : i32, i32
  }
  func.func @transform_4(%arg0: i32) -> (i32, i32) {
    %c0_i32 = arith.constant 0 : i32
    %c0_i32_0 = arith.constant 0 : i32
    %c0_i32_1 = arith.constant 0 : i32
    return %c0_i32, %c0_i32_0 : i32, i32
  }
  func.func @transform_5(%arg0: i32) -> (i32, i32, i32) {
    %c0_i32 = arith.constant 0 : i32
    %c0_i32_0 = arith.constant 0 : i32
    %c0_i32_1 = arith.constant 0 : i32
    %c0_i32_2 = arith.constant 0 : i32
    return %c0_i32, %c0_i32_0, %c0_i32_1 : i32, i32, i32
  }
  func.func @transform_6(%arg0: i32) -> (i32, i32, i32) {
    %c0_i32 = arith.constant 0 : i32
    %c0_i32_0 = arith.constant 0 : i32
    %c0_i32_1 = arith.constant 0 : i32
    %c0_i32_2 = arith.constant 0 : i32
    return %c0_i32, %c0_i32_0, %c0_i32_1 : i32, i32, i32
  }
  func.func @transform_7(%arg0: i32) -> (i32, i32, i32) {
    %c0_i32 = arith.constant 0 : i32
    %c0_i32_0 = arith.constant 0 : i32
    %c0_i32_1 = arith.constant 0 : i32
    %c0_i32_2 = arith.constant 0 : i32
    return %c0_i32, %c0_i32_0, %c0_i32_1 : i32, i32, i32
  }
  func.func @transform_8(%arg0: i32) -> (i32, i32, i32) {
    %c0_i32 = arith.constant 0 : i32
    %c0_i32_0 = arith.constant 0 : i32
    %c0_i32_1 = arith.constant 0 : i32
    %c0_i32_2 = arith.constant 0 : i32
    return %c0_i32, %c0_i32_0, %c0_i32_1 : i32, i32, i32
  }
  func.func @transform_9(%arg0: i32) -> (i32, i32, i32) {
    %c0_i32 = arith.constant 0 : i32
    %c0_i32_0 = arith.constant 0 : i32
    %c0_i32_1 = arith.constant 0 : i32
    %c0_i32_2 = arith.constant 0 : i32
    return %c0_i32, %c0_i32_0, %c0_i32_1 : i32, i32, i32
  }
  func.func @transform_10(%arg0: i32) -> (i32, i32) {
    %c0_i32 = arith.constant 0 : i32
    %c0_i32_0 = arith.constant 0 : i32
    return %arg0, %c0_i32 : i32, i32
  }
}

</mosaic_0001>

<bundles_post_ra>
// kernel: tpu_custom_call.1
= control target key start
LH: loop header
LB: loop body
LE: loop exit
PB: predicated region body
PF: predicated region fallthrough
CT: control target
= control target key end

     0   :  { %15 = vsyncpa [#allocation3], 0  ;;  %s4194_s0 = inlined_call_operand.vmem [shape: f32[32,16], index: 0, kind: input, shape index: {}]   ;;  %s4195_s1 = inlined_call_operand.vmem [shape: f32[16,32], index: 1, kind: input, shape index: {}]   ;;  %s4196_s2 = inlined_call_operand.hbm [shape: f32[1,32], index: 2, kind: input, shape index: {}]   ;;  %s4197_s3 = inlined_call_operand.vmem [shape: f32[32,32], index: 3, kind: input, shape index: {}]   ;;  %s4198_s4 = inlined_call_operand.hbm [shape: f32[1,32], index: 4, kind: input, shape index: {}]   ;;  %s4199_s5 = inlined_call_operand.hbm [shape: f32[2,32,96], index: 5, kind: input, shape index: {}]   ;;  %s4200_s6 = inlined_call_operand.vmem [shape: f32[2,1,96], index: 6, kind: input, shape index: {}]   ;;  %s4201_s7 = inlined_call_operand.hbm [shape: f32[2,32,32], index: 7, kind: input, shape index: {}]   ;;  %s4202_s8 = inlined_call_operand.vmem [shape: f32[2,1,32], index: 8, kind: input, shape index: {}]   ;;  %s4203_s9 = inlined_call_operand.hbm [shape: f32[2,32,32], index: 9, kind: input, shape index: {}]   ;;  %s4204_s10 = inlined_call_operand.hbm [shape: f32[32,32], index: 10, kind: output, shape index: {}]  }
   0x1   :  { %16 = vsyncpa [#allocation6], 0 }
   0x2   :  { %17 = vsyncpa [#allocation9], 0  ;;  %s41_s15 = sshll.u32 %s4198_s4, 4  ;;  %s42_s15 = int_to_ptr.hbm [resolvable:$true] %s41_s15 }
   0x3   :  { %18 = vsyncpa [#allocation4], 0  ;;  %s3402_s16 = smov [#allocation5]   ;;  %s66_s20 = sshll.u32 %s4201_s7, 4  ;;  %s67_s20 = int_to_ptr.hbm [resolvable:$true] %s66_s20 }
   0x4   :  { %s43_s17 = sshll.u32 %s3402_s16, 4  ;;  %s3403_s21 = smov [#allocation8]   ;;  %s44_s17 = int_to_ptr.vmem [resolvable:$true] %s43_s17 }
   0x5   :  { %46 = dma.hbm_to_vmem [thread:$0]  %s42_s15, 16, %s44_s17, [#allocation6]  }
   0x6   :  { %s68_s22 = sshll.u32 %s3403_s21, 4  ;;  %s28_s25 = sshll.u32 %s4196_s2, 4  ;;  %s69_s22 = int_to_ptr.vmem [resolvable:$true] %s68_s22  ;;  %s29_s25 = int_to_ptr.hbm [resolvable:$true] %s28_s25 }
   0x7   :  { %s3404_s4 = smov 128   ;;  %s3405_s26 = smov 8  }
   0x8   :  { %74 = dma.hbm_to_vmem [thread:$0]  %s67_s20, 1024, %s69_s22, [#allocation9], %s3404_s4, %s3404_s4, %s3405_s26  }
   0x9   :  { %s51_s29 = sshll.u32 %s4199_s5, 4  ;;  %s3406_s7 = smov [#allocation2]   ;;  %s52_s29 = int_to_ptr.hbm [resolvable:$true] %s51_s29 }
   0xa   :  { %s30_s30 = sshll.u32 %s3406_s7, 4  ;;  %s3407_s11 = smov [#allocation7]   ;;  %s31_s30 = int_to_ptr.vmem [resolvable:$true] %s30_s30 }
   0xb   :  { %33 = dma.hbm_to_vmem [thread:$0]  %s29_s25, 16, %s31_s30, [#allocation3]  }
   0xc   :  { %s53_s12 = sshll.u32 %s3407_s11, 4  ;;  %s81_s14 = sshll.u32 %s4203_s9, 4  ;;  %s54_s12 = int_to_ptr.vmem [resolvable:$true] %s53_s12  ;;  %s82_s14 = int_to_ptr.hbm [resolvable:$true] %s81_s14 }
   0xd   :  { %59 = dma.hbm_to_vmem [thread:$0]  %s52_s29, 1024, %s54_s12, [#allocation6], %s3404_s4, %s3404_s4, %s3405_s26  }
   0xe   :  { %s3408_s15 = smov [#allocation10]  }
   0xf   :  { %s83_s16 = sshll.u32 %s3408_s15, 4  ;;  %s84_s16 = int_to_ptr.vmem [resolvable:$true] %s83_s16 }
  0x10   :  { %89 = dma.hbm_to_vmem [thread:$0]  %s82_s14, 1024, %s84_s16, [#allocation9], %s3404_s4, %s3404_s4, %s3405_s26  }
  0x11   :  { %3394 = dma.done.wait [#allocation3], 16  }
  0x12   :  { %3395 = vsyncadd [#allocation3], 4294967280 }
  0x13   :  { %3396 = dma.done.wait [#allocation6], 1040  }
  0x14   :  { %3397 = vsyncadd [#allocation6], 4294966256 }
  0x15   :  { %3398 = dma.done.wait [#allocation9], 2048  }
  0x16   :  { %3399 = vsyncadd [#allocation9], 4294965248  ;;  %v115_v0 = vld [vmem:[%s4195_s1 + $0x8] sm:$0xff]  ;;  %v114_v1 = vld [vmem:[%s4195_s1] sm:$0xff]  ;;  %vm120_vm0 = vcmask 130048   ;;  %vm242_vm5 = vcmask 261120  }
  0x17   :  { %147 = vmatpush.msra.mxu0 %v115_v0  ;;  %v110_v2 = vld [vmem:[%s4194_s0] sm:$0xff]  ;;  %v111_v3 = vld [vmem:[%s4194_s0 + $0x8] sm:$0xff]  ;;  %v112_v4 = vld [vmem:[%s4194_s0 + $0x10] sm:$0xff]  ;;  %s3409_s15 = smov 96   ;;  %s3410_s16 = smov 64  }
  0x18   :  { %v113_v5 = vld [vmem:[%s4194_s0 + $0x18] sm:$0xff]  ;;  %v3100_v7 = vld [vmem:[#allocation2] ss:$0 sm:$0xff]  ;;  %v240_v8 = vld [vmem:[%s4197_s3 + $0x10] sm:$0xff]  ;;  %s3411_s5 = smov 120   ;;  %s3412_s9 = smov 88  }
  0x19   :  { %148 = vmatpush.msra.mxu0 %v114_v1  ;;  %v241_v6 = vld [vmem:[%s4197_s3 + $0x18] sm:$0xff]  ;;  %v239_v9 = vld [vmem:[%s4197_s3 + $0x8] sm:$0xff]  ;;  %v238_v12 = vld [vmem:[%s4197_s3] sm:$0xff]  ;;  %s3413_s17 = smov 80   ;;  %s3414_s18 = smov 112  }
  0x1a   :  { %2843 = vmatmul.msk.f32.vlgmr.msra.gmra.mxu0 %vm120_vm0, %v110_v2  ;;  %267 = vmatpush.msra.mxu1 %v241_v6  ;;  %v299_v36 = vld [vmem:[#allocation7 + $0x18] sm:$0xff]  ;;  %s3415_s19 = smov 56   ;;  %s3416_s20 = smov 72  }
  0x1b   :  { %2997 = vmatpush.msra.mxu2 %v241_v6  ;;  %s3417_s21 = smov 104   ;;  %s3418_s22 = smov 48  }
  0x1c   :  { %268 = vmatpush.msra.mxu1 %v240_v8  ;;  %s3419_s23 = smov 40   ;;  %s2828_s7 = sshll.u32 %s4204_s10, 4  ;;  %s2829_s7 = int_to_ptr.hbm [resolvable:$true] %s2828_s7 }
  0x1d   :  { %2998 = vmatpush.msra.mxu2 %v240_v8 }
  0x1e   :  { %269 = vmatpush.msra.mxu1 %v239_v9 }
  0x1f   :  { %2999 = vmatpush.msra.mxu2 %v239_v9 }
  0x20   :  { %270 = vmatpush.msra.mxu1 %v238_v12 }
  0x21   :  { %3000 = vmatpush.msra.mxu2 %v238_v12 }
  0x22   :  { %2844 = vmatmul.msk.f32.gmra.mxu0 %vm120_vm0, %v111_v3 }
  0x23   :  { %328 = vmatpush.msrb.mxu2 %v299_v36  ;;  %v3102_v36 = vld [vmem:[%s4200_s6] ss:$0 sm:$0xff] }
  0x2a   :  { %2845 = vmatmul.msk.f32.gmra.mxu0 %vm120_vm0, %v112_v4 }
  0x32   :  { %2846 = vmatmul.msk.f32.gmra.mxu0 %vm120_vm0, %v113_v5 }
  0x97   :  { %v150_v10 = vpop.f32.mrf.mxu0 }
  0x98   :  { %v151_v11 = vadd.f32 %v3100_v7, %v150_v10 }
  0x9a   :  { %v162_v13 = vsub.f32 0.0, %v151_v11 }
  0x9c   :  { %v166_v14 = vmul.f32 1.442695, %v162_v13 }
  0x9e   :  { %3106 = vpow2.f32 %v166_v14 }
  0x9f   :  { %v153_v15 = vpop.f32.mrf.mxu0 }
  0xa0   :  { %v3534_v16 = vadd.f32 %v3100_v7, %v153_v15 }
  0xa2   :  { %v163_v17 = vsub.f32 0.0, %v3534_v16 }
  0xa4   :  { %v3107_v18 = vpop.eup %3106  ;;  %v168_v19 = vmul.f32 1.442695, %v163_v17  ;;  %v297_v17 = vld [vmem:[#allocation7 + $0x8] sm:$0xff] }
  0xa5   :  { %v174_v20 = vadd.f32 1.0, %v3107_v18  ;;  %v296_v18 = vld [vmem:[#allocation7] sm:$0xff] }
  0xa6   :  { %3108 = vpow2.f32 %v168_v19  ;;  %v3101_v19 = vld [vmem:[#allocation5] ss:$0 sm:$0xff] }
  0xa7   :  { %3110 = vrcp.f32 %v174_v20  ;;  %v156_v21 = vpop.f32.mrf.mxu0  ;;  %v189_v32 = vand.u32 2147483648, %v174_v20  ;;  %v187_v34 = vand.u32 2147483647, %v174_v20  ;;  %vm183_vm2 = vweird.f32 %v174_v20 }
  0xa8   :  { %v3537_v22 = vadd.f32 %v3100_v7, %v156_v21 }
  0xa9   :  { %v190_v41 = vor.u32 1.1754944e-38, %v189_v32  ;;  %vm188_vm4 = vcmp.eq.f32.partialorder %v187_v34, 8.507059e+37 }
  0xaa   :  { %v164_v23 = vsub.f32 0.0, %v3537_v22 }
  0xac   :  { %v3109_v24 = vpop.eup %3108  ;;  %v170_v25 = vmul.f32 1.442695, %v164_v23 }
  0xad   :  { %v3111_v26 = vpop.eup %3110  ;;  %v175_v27 = vadd.f32 1.0, %v3109_v24 }
  0xae   :  { %v179_v28 = vmul.f32 %v3111_v26, %v174_v20  ;;  %3112 = vpow2.f32 %v170_v25  ;;  %vm184_vm1 = vweird.f32 %v3111_v26 }
  0xaf   :  { %3114 = vrcp.f32 %v175_v27  ;;  %v159_v29 = vpop.f32.mrf.mxu0  ;;  %vm185_vm3 = vmor %vm183_vm2, %vm184_vm1  ;;  %v204_v48 = vand.u32 2147483648, %v175_v27  ;;  %v202_v50 = vand.u32 2147483647, %v175_v27  ;;  %vm198_vm7 = vweird.f32 %v175_v27 }
  0xb0   :  { %v180_v30 = vsub.f32 1.0, %v179_v28  ;;  %v3540_v31 = vadd.f32 %v3100_v7, %v159_v29  ;;  %v3561_v29 = vld [vmem:[%s4202_s8] ss:$0 sm:$0xff] }
  0xb1   :  { %v205_v54 = vor.u32 1.1754944e-38, %v204_v48  ;;  %vm203_vm9 = vcmp.eq.f32.partialorder %v202_v50, 8.507059e+37 }
  0xb2   :  { %v181_v33 = vmul.f32 %v3111_v26, %v180_v30  ;;  %v165_v35 = vsub.f32 0.0, %v3540_v31 }
  0xb4   :  { %v3113_v37 = vpop.eup %3112  ;;  %v182_v38 = vadd.f32 %v3111_v26, %v181_v33  ;;  %v172_v39 = vmul.f32 1.442695, %v165_v35 }
  0xb5   :  { %v3115_v40 = vpop.eup %3114  ;;  %v176_v42 = vadd.f32 1.0, %v3113_v37 }
  0xb6   :  { %v186_v43 = vsel %vm185_vm3, %v3111_v26, %v182_v38  ;;  %v194_v44 = vmul.f32 %v3115_v40, %v175_v27  ;;  %3116 = vpow2.f32 %v172_v39  ;;  %vm199_vm6 = vweird.f32 %v3115_v40 }
  0xb7   :  { %v191_v45 = vsel %vm188_vm4, %v190_v41, %v186_v43  ;;  %3118 = vrcp.f32 %v176_v42  ;;  %vm200_vm8 = vmor %vm198_vm7, %vm199_vm6  ;;  %vm213_vm10 = vweird.f32 %v176_v42  ;;  %v219_v59 = vand.u32 2147483648, %v176_v42 }
  0xb8   :  { %v192_v46 = vmul.f32 %v191_v45, %v151_v11  ;;  %v195_v47 = vsub.f32 1.0, %v194_v44  ;;  %v217_v62 = vand.u32 2147483647, %v176_v42  ;;  %vm363_vm3 = vcmask 64512  }
  0xb9   :  { %v220_v0 = vor.u32 1.1754944e-38, %v219_v59 }
  0xba   :  { %v196_v49 = vmul.f32 %v3115_v40, %v195_v47  ;;  %2847 = vmatmul.msk.f32.vlgmr.msra.gmra.mxu1 %vm242_vm5, %v192_v46  ;;  %vm218_vm13 = vcmp.eq.f32.partialorder %v217_v62, 8.507059e+37 }
  0xbc   :  { %v3117_v51 = vpop.eup %3116  ;;  %v197_v52 = vadd.f32 %v3115_v40, %v196_v49 }
  0xbd   :  { %v3119_v53 = vpop.eup %3118  ;;  %v177_v55 = vadd.f32 1.0, %v3117_v51 }
  0xbe   :  { %v201_v56 = vsel %vm200_vm8, %v3115_v40, %v197_v52  ;;  %v209_v57 = vmul.f32 %v3119_v53, %v176_v42  ;;  %vm214_vm11 = vweird.f32 %v3119_v53 }
  0xbf   :  { %v206_v58 = vsel %vm203_vm9, %v205_v54, %v201_v56  ;;  %3120 = vrcp.f32 %v177_v55  ;;  %vm215_vm12 = vmor %vm213_vm10, %vm214_vm11  ;;  %vm228_vm14 = vweird.f32 %v177_v55  ;;  %v234_v6 = vand.u32 2147483648, %v177_v55 }
  0xc0   :  { %v207_v60 = vmul.f32 %v206_v58, %v3534_v16  ;;  %v210_v61 = vsub.f32 1.0, %v209_v57  ;;  %v232_v9 = vand.u32 2147483647, %v177_v55  ;;  %v298_v16 = vld [vmem:[#allocation7 + $0x10] sm:$0xff] }
  0xc1   :  { %v235_v11 = vor.u32 1.1754944e-38, %v234_v6  ;;  %329 = vmatpush.msrb.mxu2 %v298_v16 }
  0xc2   :  { %v211_v63 = vmul.f32 %v3119_v53, %v210_v61  ;;  %2848 = vmatmul.msk.f32.gmra.mxu1 %vm242_vm5, %v207_v60  ;;  %vm233_vm2 = vcmp.eq.f32.partialorder %v232_v9, 8.507059e+37 }
  0xc3   :  { %330 = vmatpush.msrb.mxu2 %v297_v17 }
  0xc4   :  { %v212_v1 = vadd.f32 %v3119_v53, %v211_v63 }
  0xc5   :  { %v3121_v2 = vpop.eup %3120  ;;  %331 = vmatpush.msrb.mxu2 %v296_v18 }
  0xc6   :  { %v216_v3 = vsel %vm215_vm12, %v3119_v53, %v212_v1  ;;  %v224_v4 = vmul.f32 %v3121_v2, %v177_v55  ;;  %vm229_vm15 = vweird.f32 %v3121_v2 }
  0xc7   :  { %v221_v5 = vsel %vm218_vm13, %v220_v0, %v216_v3  ;;  %vm230_vm1 = vmor %vm228_vm14, %vm229_vm15 }
  0xc8   :  { %v222_v7 = vmul.f32 %v221_v5, %v3537_v22  ;;  %v225_v8 = vsub.f32 1.0, %v224_v4 }
  0xca   :  { %v226_v10 = vmul.f32 %v3121_v2, %v225_v8  ;;  %2849 = vmatmul.msk.f32.vlgmr.msra.gmra.mxu2 %vm242_vm5, %v222_v7 }
  0xcc   :  { %v227_v12 = vadd.f32 %v3121_v2, %v226_v10 }
  0xce   :  { %v231_v13 = vsel %vm230_vm1, %v3121_v2, %v227_v12 }
  0xcf   :  { %v236_v14 = vsel %vm233_vm2, %v235_v11, %v231_v13 }
  0xd0   :  { %v237_v15 = vmul.f32 %v236_v14, %v3540_v31 }
  0xd2   :  { %2850 = vmatmul.msk.f32.gmra.mxu2 %vm242_vm5, %v237_v15 }
 0x137   :  { %v272_v20 = vpop.f32.mrf.mxu1 }
 0x138   :  { %v284_v21 = vadd.f32 %v272_v20, %v192_v46 }
 0x13a   :  { %v3550_v22 = vadd.f32 %v3101_v19, %v284_v21 }
 0x13c   :  { %2851 = vmatmul.msk.f32.vlgmr.msrb.gmra.mxu2 %vm242_vm5, %v3550_v22 }
 0x13f   :  { %v275_v23 = vpop.f32.mrf.mxu1 }
 0x140   :  { %v285_v24 = vadd.f32 %v275_v23, %v207_v60 }
 0x142   :  { %v3554_v25 = vadd.f32 %v3101_v19, %v285_v24 }
 0x144   :  { %2852 = vmatmul.msk.f32.gmra.mxu2 %vm242_vm5, %v3554_v25 }
 0x14d   :  { %v278_v26 = vpop.f32.mrf.mxu2 }
 0x14e   :  { %v286_v27 = vadd.f32 %v278_v26, %v222_v7 }
 0x150   :  { %v294_v28 = vadd.f32 %v3101_v19, %v286_v27 }
 0x152   :  { %2853 = vmatmul.msk.f32.gmra.mxu2 %vm242_vm5, %v294_v28  ;;  %v3565_v30 = vadd.f32 %v3561_v29, %v294_v28 }
 0x155   :  { %v281_v31 = vpop.f32.mrf.mxu2 }
 0x156   :  { %v287_v32 = vadd.f32 %v281_v31, %v237_v15 }
 0x158   :  { %v295_v33 = vadd.f32 %v3101_v19, %v287_v32 }
 0x15a   :  { %2854 = vmatmul.msk.f32.gmra.mxu2 %vm242_vm5, %v295_v33  ;;  %v3569_v34 = vadd.f32 %v3561_v29, %v295_v33 }
 0x1bf   :  { %v333_v35 = vpop.f32.mrf.mxu2 }
 0x1c0   :  { %v3578_v39 = vadd.f32 %v3102_v36, %v333_v35 }
 0x1c7   :  { %v336_v37 = vpop.f32.mrf.mxu2 }
 0x1c8   :  { %v3574_v38 = vadd.f32 %v3102_v36, %v336_v37 }
 0x1ca   :  { %361 = vrot.lane.b32.xlu0 %v3574_v38, %s3409_s15  ;;  %v3584_v41 = vpack.i.bf16 %v3578_v39, %v3574_v38 }
 0x1d2   :  { %359 = vrot.lane.b32.xlu0 %v3578_v39, %s3409_s15 }
 0x1d5   :  { %v339_v40 = vpop.f32.mrf.mxu2 }
 0x1d6   :  { %v3594_v44 = vadd.f32 %v3102_v36, %v339_v40 }
 0x1da   :  { %3021 = vrot.lane.b32.xlu0 %v3584_v41, %s3410_s16 }
 0x1dd   :  { %v342_v42 = vpop.f32.mrf.mxu2 }
 0x1de   :  { %v3588_v43 = vadd.f32 %v3102_v36, %v342_v42 }
 0x1e0   :  { %399 = vrot.lane.b32.xlu1 %v3588_v43, %s3409_s15  ;;  %v3628_v63 = vpack.i.bf16 %v3594_v44, %v3588_v43 }
 0x1e2   :  { %643 = vrot.lane.b32.xlu0 %v3578_v39, %s3411_s5 }
 0x1e8   :  { %397 = vrot.lane.b32.xlu1 %v3594_v44, %s3409_s15 }
 0x1ea   :  { %684 = vrot.lane.b32.xlu0 %v3588_v43, %s3411_s5 }
 0x1f0   :  { %649 = vrot.lane.b32.xlu1 %v3574_v38, %s3412_s9 }
 0x1f8   :  { %645 = vrot.lane.b32.xlu1 %v3574_v38, %s3411_s5 }
 0x200   :  { %688 = vrot.lane.b32.xlu1 %v3588_v43, %s3412_s9 }
 0x23c   :  { %v362_v45 = vpop.permute.xlu0 %361 }
 0x23d   :  { %2855 = vmatpush.xpose.msk.msra.mxu3 %vm363_vm3, %v362_v45 }
 0x244   :  { %v360_v46 = vpop.permute.xlu0 %359 }
 0x245   :  { %2856 = vmatpush.xpose.msk.msra.mxu3 %vm363_vm3, %v360_v46 }
 0x248   :  { %2857 = vmatmul.msk.f32.vlgmr.msra.gmra.mxu3 %vm363_vm3, %v3578_v39 }
 0x24c   :  { %v3022_v48 = vpop.permute.xlu0 %3021 }
 0x24d   :  { %v3023_v49 = vunpack.i.l.bf16 %v3022_v48  ;;  %v3024_v51 = vunpack.i.h.bf16 %v3022_v48 }
 0x250   :  { %2858 = vmatmul.msk.f32.gmra.mxu3 %vm363_vm3, %v3574_v38 }
 0x252   :  { %v400_v47 = vpop.permute.xlu1 %399 }
 0x253   :  { %2859 = vmatpush.xpose.msk.msrb.mxu3 %vm363_vm3, %v400_v47 }
 0x254   :  { %v644_v3 = vpop.permute.xlu0 %643 }
 0x25a   :  { %v398_v50 = vpop.permute.xlu1 %397 }
 0x25b   :  { %2860 = vmatpush.xpose.msk.msrb.mxu3 %vm363_vm3, %v398_v50  ;;  %v345_v50 = vld [vmem:[#allocation8] sm:$0xff] }
 0x25c   :  { %v685_v8 = vpop.permute.xlu0 %684  ;;  %625 = vmatpush.msra.mxu2 %v345_v50 }
 0x25e   :  { %2861 = vmatmul.msk.f32.vlgmr.msrb.gmra.mxu3 %vm363_vm3, %v3594_v44 }
 0x25f   :  { %494 = vmatpush.msra.mxu3 %v3023_v49 }
 0x261   :  { %495 = vmatpush.msra.mxu3 %v3024_v51 }
 0x262   :  { %v650_v52 = vpop.permute.xlu1 %649 }
 0x263   :  { %2871 = vmatpush.xpose.msk.msrb.mxu3 %vm363_vm3, %v650_v52 }
 0x266   :  { %2862 = vmatmul.msk.f32.gmra.mxu3 %vm363_vm3, %v3588_v43 }
 0x26a   :  { %v646_v53 = vpop.permute.xlu1 %645 }
 0x272   :  { %v689_v54 = vpop.permute.xlu1 %688 }
 0x273   :  { %2875 = vmatpush.xpose.msk.msrb.mxu0 %vm363_vm3, %v689_v54 }
 0x2cb   :  { %v389_v55 = vpop.f32.mrf.mxu3 }
 0x2cc   :  { %v432_v56 = vsel %vm120_vm0, %v389_v55, -inf }
 0x2cd   :  { %433 = vmax.xlane.f32.xlu2 %v432_v56 }
 0x2d3   :  { %v392_v57 = vpop.f32.mrf.mxu3 }
 0x2d4   :  { %v435_v58 = vsel %vm120_vm0, %v392_v57, -inf }
 0x2d5   :  { %436 = vmax.xlane.f32.xlu2 %v435_v58 }
 0x2e1   :  { %v426_v59 = vpop.f32.mrf.mxu3 }
 0x2e2   :  { %v438_v60 = vsel %vm120_vm0, %v426_v59, -inf }
 0x2e3   :  { %439 = vmax.xlane.f32.xlu0 %v438_v60 }
 0x2e9   :  { %v429_v61 = vpop.f32.mrf.mxu3 }
 0x2ea   :  { %v441_v62 = vsel %vm120_vm0, %v429_v61, -inf }
 0x2eb   :  { %442 = vmax.xlane.f32.xlu1 %v441_v62 }
 0x2ed   :  { %647 = vrot.lane.b32.xlu2 %v3578_v39, %s3412_s9 }
 0x2f5   :  { %3026 = vrot.lane.b32.xlu2 %v3628_v63, %s3410_s16 }
 0x2f7   :  { %938 = vrot.lane.b32.xlu0 %v3574_v38, %s3413_s17 }
 0x2fd   :  { %686 = vrot.lane.b32.xlu2 %v3594_v44, %s3412_s9 }
 0x2ff   :  { %936 = vrot.lane.b32.xlu0 %v3578_v39, %s3413_s17 }
 0x305   :  { %682 = vrot.lane.b32.xlu2 %v3594_v44, %s3411_s5 }
 0x307   :  { %934 = vrot.lane.b32.xlu0 %v3574_v38, %s3414_s18 }
 0x340   :  { %v434_v0 = vpop.xlane.xlu2 %433 }
 0x341   :  { %v444_v1 = vsub.f32 %v389_v55, %v434_v0 }
 0x343   :  { %v448_v2 = vmul.f32 1.442695, %v444_v1 }
 0x345   :  { %3122 = vpow2.f32 %v448_v2 }
 0x348   :  { %v437_v4 = vpop.xlane.xlu2 %436 }
 0x349   :  { %v445_v5 = vsub.f32 %v392_v57, %v437_v4 }
 0x34b   :  { %v3123_v6 = vpop.eup %3122  ;;  %v450_v7 = vmul.f32 1.442695, %v445_v5 }
 0x34c   :  { %2863 = vmatmul.msk.f32.vlgmr.msra.gmra.mxu3 %vm120_vm0, %v3123_v6  ;;  %v456_v46 = vsel %vm120_vm0, %v3123_v6, 0.0 }
 0x34d   :  { %3124 = vpow2.f32 %v450_v7 }
 0x350   :  { %v648_v9 = vpop.permute.xlu2 %647 }
 0x351   :  { %2872 = vmatpush.xpose.msk.msrb.mxu3 %vm363_vm3, %v648_v9 }
 0x353   :  { %v3125_v10 = vpop.eup %3124 }
 0x354   :  { %2864 = vmatmul.msk.f32.gmra.mxu3 %vm120_vm0, %v3125_v10  ;;  %v459_v11 = vsel %vm120_vm0, %v3125_v10, 0.0 }
 0x355   :  { %460 = vadd.xlane.f32.xlu0 %v459_v11 }
 0x356   :  { %v440_v12 = vpop.xlane.xlu0 %439 }
 0x357   :  { %v446_v13 = vsub.f32 %v426_v59, %v440_v12 }
 0x358   :  { %v3027_v14 = vpop.permute.xlu2 %3026 }
 0x359   :  { %v452_v15 = vmul.f32 1.442695, %v446_v13  ;;  %v3028_v16 = vunpack.i.l.bf16 %v3027_v14  ;;  %v3029_v17 = vunpack.i.h.bf16 %v3027_v14 }
 0x35b   :  { %3126 = vpow2.f32 %v452_v15  ;;  %529 = vmatpush.msrb.mxu1 %v3028_v16 }
 0x35c   :  { %2873 = vmatmul.msk.f32.vlgmr.msrb.gmra.mxu3 %vm363_vm3, %v644_v3 }
 0x35d   :  { %530 = vmatpush.msrb.mxu1 %v3029_v17 }
 0x35e   :  { %v443_v18 = vpop.xlane.xlu1 %442 }
 0x35f   :  { %v447_v19 = vsub.f32 %v429_v61, %v443_v18 }
 0x360   :  { %v687_v20 = vpop.permute.xlu2 %686 }
 0x361   :  { %v3127_v21 = vpop.eup %3126  ;;  %v454_v23 = vmul.f32 1.442695, %v447_v19  ;;  %2876 = vmatpush.xpose.msk.msrb.mxu0 %vm363_vm3, %v687_v20 }
 0x362   :  { %2865 = vmatmul.msk.f32.vlgmr.msrb.gmra.mxu1 %vm120_vm0, %v3127_v21  ;;  %v462_v47 = vsel %vm120_vm0, %v3127_v21, 0.0 }
 0x363   :  { %3128 = vpow2.f32 %v454_v23 }
 0x364   :  { %2874 = vmatmul.msk.f32.gmra.mxu3 %vm363_vm3, %v646_v53 }
 0x368   :  { %v683_v24 = vpop.permute.xlu2 %682 }
 0x369   :  { %v3129_v26 = vpop.eup %3128  ;;  %2877 = vmatmul.msk.f32.vlgmr.msrb.gmra.mxu0 %vm363_vm3, %v683_v24  ;;  %v939_v48 = vpop.permute.xlu0 %938 }
 0x36a   :  { %2866 = vmatmul.msk.f32.gmra.mxu1 %vm120_vm0, %v3129_v26  ;;  %v465_v42 = vsel %vm120_vm0, %v3129_v26, 0.0 }
 0x371   :  { %2878 = vmatmul.msk.f32.gmra.mxu0 %vm363_vm3, %v685_v8  ;;  %v937_v49 = vpop.permute.xlu0 %936 }
 0x3cf   :  { %v3653_v27 = vpop.f32.mrf.mxu3 }
 0x3d7   :  { %v3655_v28 = vpop.f32.mrf.mxu3 }
 0x3df   :  { %v676_v31 = vpop.f32.mrf.mxu3 }
 0x3e0   :  { %v721_v32 = vsel %vm120_vm0, %v676_v31, -inf }
 0x3e1   :  { %722 = vmax.xlane.f32.xlu2 %v721_v32 }
 0x3e6   :  { %v3658_v33 = vpop.f32.mrf.mxu0 }
 0x3e7   :  { %v679_v35 = vpop.f32.mrf.mxu3  ;;  %v727_v45 = vsel %vm120_vm0, %v3658_v33, -inf }
 0x3e8   :  { %v724_v36 = vsel %vm120_vm0, %v679_v35, -inf }
 0x3e9   :  { %725 = vmax.xlane.f32.xlu1 %v724_v36 }
 0x3ee   :  { %v718_v37 = vpop.f32.mrf.mxu0 }
 0x3ef   :  { %v730_v40 = vsel %vm120_vm0, %v718_v37, -inf }
 0x3f0   :  { %731 = vmax.xlane.f32.xlu0 %v730_v40 }
 0x3f8   :  { %466 = vadd.xlane.f32.xlu0 %v465_v42 }
 0x3f9   :  { %932 = vrot.lane.b32.xlu2 %v3578_v39, %s3414_s18 }
 0x402   :  { %3031 = vrot.lane.b32.xlu1 %v3584_v41, %s3415_s19 }
 0x40c   :  { %977 = vrot.lane.b32.xlu0 %v3588_v43, %s3413_s17 }
 0x414   :  { %971 = vrot.lane.b32.xlu0 %v3594_v44, %s3414_s18 }
 0x41c   :  { %1227 = vrot.lane.b32.xlu0 %v3574_v38, %s3416_s20 }
 0x422   :  { %728 = vmax.xlane.f32.xlu2 %v727_v45 }
 0x424   :  { %1223 = vrot.lane.b32.xlu0 %v3574_v38, %s3417_s21  ;;  %v935_v38 = vpop.permute.xlu0 %934 }
 0x42c   :  { %457 = vadd.xlane.f32.xlu1 %v456_v46  ;;  %v3687_v51 = vpop.xlane.xlu0 %460 }
 0x42d   :  { %v564_v46 = vand.u32 2147483648, %v3687_v51  ;;  %vm558_vm10 = vweird.f32 %v3687_v51 }
 0x434   :  { %463 = vadd.xlane.f32.xlu1 %v462_v47 }
 0x43a   :  { %975 = vrot.lane.b32.xlu2 %v3594_v44, %s3413_s17 }
 0x44d   :  { %3036 = vrot.lane.b32.xlu1 %v3628_v63, %s3415_s19 }
 0x454   :  { %v723_v52 = vpop.xlane.xlu2 %722 }
 0x455   :  { %3041 = vrot.lane.b32.xlu1 %v3584_v41, %s3418_s22  ;;  %v733_v53 = vsub.f32 %v676_v31, %v723_v52 }
 0x457   :  { %v737_v56 = vmul.f32 1.442695, %v733_v53 }
 0x459   :  { %3130 = vpow2.f32 %v737_v56 }
 0x45c   :  { %v726_v54 = vpop.xlane.xlu1 %725  ;;  %v933_v4 = vpop.permute.xlu2 %932 }
 0x45d   :  { %973 = vrot.lane.b32.xlu1 %v3588_v43, %s3414_s18  ;;  %v734_v57 = vsub.f32 %v679_v35, %v726_v54  ;;  %v565_v54 = vor.u32 1.1754944e-38, %v564_v46 }
 0x45f   :  { %v739_v61 = vmul.f32 1.442695, %v734_v57  ;;  %v3131_v0 = vpop.eup %3130 }
 0x460   :  { %v745_v6 = vsel %vm120_vm0, %v3131_v0, 0.0 }
 0x461   :  { %3132 = vpow2.f32 %v739_v61 }
 0x463   :  { %v732_v55 = vpop.xlane.xlu0 %731 }
 0x464   :  { %v736_v3 = vsub.f32 %v718_v37, %v732_v55 }
 0x465   :  { %1225 = vrot.lane.b32.xlu1 %v3578_v39, %s3416_s20 }
 0x466   :  { %v743_v5 = vmul.f32 1.442695, %v736_v3 }
 0x467   :  { %v3697_v2 = vpop.eup %3132 }
 0x468   :  { %3134 = vpow2.f32 %v743_v5 }
 0x469   :  { %3136 = vrcp.f32 %v3687_v51 }
 0x46b   :  { %v3691_v60 = vpop.xlane.xlu0 %466 }
 0x46e   :  { %v3704_v7 = vpop.eup %3134 }
 0x46f   :  { %v754_v10 = vsel %vm120_vm0, %v3704_v7, 0.0  ;;  %v3137_v13 = vpop.eup %3136 }
 0x470   :  { %v554_v17 = vmul.f32 %v3137_v13, %v3687_v51  ;;  %vm559_vm7 = vweird.f32 %v3137_v13 }
 0x471   :  { %vm560_vm11 = vmor %vm558_vm10, %vm559_vm7 }
 0x472   :  { %v555_v19 = vsub.f32 1.0, %v554_v17 }
 0x474   :  { %v3032_v58 = vpop.permute.xlu1 %3031  ;;  %v556_v26 = vmul.f32 %v3137_v13, %v555_v19 }
 0x475   :  { %v3033_v59 = vunpack.i.l.bf16 %v3032_v58  ;;  %v3034_v62 = vunpack.i.h.bf16 %v3032_v58 }
 0x476   :  { %v557_v37 = vadd.f32 %v3137_v13, %v556_v26 }
 0x477   :  { %783 = vmatpush.msra.mxu1 %v3033_v59 }
 0x479   :  { %784 = vmatpush.msra.mxu1 %v3034_v62 }
 0x47a   :  { %2879 = vmatmul.msk.f32.vlgmr.msra.gmra.mxu1 %vm120_vm0, %v3131_v0  ;;  %v532_v0 = vpop.f32.mrf.mxu1 }
 0x47b   :  { %2887 = vmatpush.xpose.msk.msrb.mxu1 %vm363_vm3, %v939_v48  ;;  %v562_v48 = vand.u32 2147483647, %v3687_v51 }
 0x47d   :  { %vm563_vm12 = vcmp.eq.f32.partialorder %v562_v48, 8.507059e+37 }
 0x47e   :  { %v978_v1 = vpop.permute.xlu0 %977 }
 0x47f   :  { %2888 = vmatpush.xpose.msk.msrb.mxu1 %vm363_vm3, %v937_v49  ;;  %2891 = vmatpush.xpose.msk.msrb.mxu2 %vm363_vm3, %v978_v1 }
 0x482   :  { %2880 = vmatmul.msk.f32.gmra.mxu1 %vm120_vm0, %v3697_v2 }
 0x48a   :  { %2889 = vmatmul.msk.f32.vlgmr.msrb.gmra.mxu1 %vm363_vm3, %v933_v4  ;;  %v594_v4 = vand.u32 2147483648, %v3691_v60 }
 0x48f   :  { %746 = vadd.xlane.f32.xlu1 %v745_v6  ;;  %v592_v6 = vand.u32 2147483647, %v3691_v60 }
 0x491   :  { %vm593_vm7 = vcmp.eq.f32.partialorder %v592_v6, 8.507059e+37 }
 0x492   :  { %2890 = vmatmul.msk.f32.gmra.mxu1 %vm363_vm3, %v935_v38  ;;  %v561_v38 = vsel %vm560_vm11, %v3137_v13, %v557_v37 }
 0x493   :  { %v566_v55 = vsel %vm563_vm12, %v565_v54, %v561_v38  ;;  %v353_v54 = vadd.f32 %v3561_v29, %v3550_v22 }
 0x495   :  { %v729_v8 = vpop.xlane.xlu2 %728 }
 0x496   :  { %v735_v9 = vsub.f32 %v3658_v33, %v729_v8 }
 0x497   :  { %755 = vadd.xlane.f32.xlu1 %v754_v10 }
 0x498   :  { %v741_v11 = vmul.f32 1.442695, %v735_v9  ;;  %v972_v9 = vpop.permute.xlu0 %971 }
 0x49a   :  { %3138 = vpow2.f32 %v741_v11  ;;  %v595_v11 = vor.u32 1.1754944e-38, %v594_v4 }
 0x49d   :  { %v976_v12 = vpop.permute.xlu2 %975 }
 0x49e   :  { %2892 = vmatpush.xpose.msk.msrb.mxu2 %vm363_vm3, %v976_v12 }
 0x49f   :  { %v458_v14 = vpop.xlane.xlu1 %457 }
 0x4a0   :  { %v3711_v15 = vpop.eup %3138  ;;  %3140 = vrcp.f32 %v458_v14  ;;  %v549_v24 = vand.u32 2147483648, %v458_v14  ;;  %v547_v32 = vand.u32 2147483647, %v458_v14  ;;  %vm543_vm6 = vweird.f32 %v458_v14 }
 0x4a1   :  { %v751_v16 = vsel %vm120_vm0, %v3711_v15, 0.0 }
 0x4a2   :  { %752 = vadd.xlane.f32.xlu0 %v751_v16  ;;  %v550_v36 = vor.u32 1.1754944e-38, %v549_v24  ;;  %vm548_vm9 = vcmp.eq.f32.partialorder %v547_v32, 8.507059e+37 }
 0x4a6   :  { %v3141_v18 = vpop.eup %3140 }
 0x4a7   :  { %v539_v20 = vmul.f32 %v3141_v18, %v458_v14  ;;  %v464_v21 = vpop.xlane.xlu1 %463  ;;  %vm544_vm4 = vweird.f32 %v3141_v18  ;;  %v535_v14 = vpop.f32.mrf.mxu1 }
 0x4a8   :  { %3142 = vrcp.f32 %v464_v21  ;;  %vm545_vm8 = vmor %vm543_vm6, %vm544_vm4  ;;  %v579_v51 = vand.u32 2147483648, %v464_v21  ;;  %vm573_vm14 = vweird.f32 %v464_v21  ;;  %v577_v58 = vand.u32 2147483647, %v464_v21 }
 0x4a9   :  { %v540_v23 = vsub.f32 1.0, %v539_v20  ;;  %3144 = vrcp.f32 %v3691_v60  ;;  %vm588_vm4 = vweird.f32 %v3691_v60  ;;  %v346_v20 = vld [vmem:[#allocation8 + $0x8] sm:$0xff] }
 0x4aa   :  { %v580_v62 = vor.u32 1.1754944e-38, %v579_v51  ;;  %vm578_vm1 = vcmp.eq.f32.partialorder %v577_v58, 8.507059e+37  ;;  %914 = vmatpush.msra.mxu0 %v346_v20  ;;  %v354_v58 = vadd.f32 %v3561_v29, %v3554_v25 }
 0x4ab   :  { %v541_v31 = vmul.f32 %v3141_v18, %v540_v23 }
 0x4ad   :  { %v542_v33 = vadd.f32 %v3141_v18, %v541_v31 }
 0x4ae   :  { %v3143_v35 = vpop.eup %3142 }
 0x4af   :  { %v546_v40 = vsel %vm545_vm8, %v3141_v18, %v542_v33  ;;  %v569_v42 = vmul.f32 %v3143_v35, %v464_v21  ;;  %v3145_v45 = vpop.eup %3144  ;;  %vm574_vm13 = vweird.f32 %v3143_v35  ;;  %v1228_v18 = vpop.permute.xlu0 %1227 }
 0x4b0   :  { %v551_v47 = vsel %vm548_vm9, %v550_v36, %v546_v40  ;;  %1260 = vrot.lane.b32.xlu1 %v3594_v44, %s3417_s21  ;;  %v584_v52 = vmul.f32 %v3145_v45, %v3691_v60  ;;  %vm575_vm15 = vmor %vm573_vm14, %vm574_vm13  ;;  %vm589_vm2 = vweird.f32 %v3145_v45 }
 0x4b1   :  { %v570_v49 = vsub.f32 1.0, %v569_v42  ;;  %v552_v50 = vmul.f32 %v551_v47, %v3653_v27  ;;  %v567_v27 = vmul.f32 %v566_v55, %v3655_v28  ;;  %vm590_vm6 = vmor %vm588_vm4, %vm589_vm2 }
 0x4b2   :  { %v585_v56 = vsub.f32 1.0, %v584_v52 }
 0x4b3   :  { %v571_v53 = vmul.f32 %v3143_v35, %v570_v49  ;;  %2867 = vmatmul.msk.f32.vlgmr.msra.gmra.mxu2 %vm363_vm3, %v552_v50 }
 0x4b4   :  { %v586_v59 = vmul.f32 %v3145_v45, %v585_v56 }
 0x4b5   :  { %v572_v57 = vadd.f32 %v3143_v35, %v571_v53 }
 0x4b6   :  { %1264 = vrot.lane.b32.xlu0 %v3594_v44, %s3416_s20  ;;  %v587_v3 = vadd.f32 %v3145_v45, %v586_v59 }
 0x4b7   :  { %v576_v61 = vsel %vm575_vm15, %v3143_v35, %v572_v57  ;;  %v1224_v50 = vpop.permute.xlu0 %1223 }
 0x4b8   :  { %v581_v44 = vsel %vm578_vm1, %v580_v62, %v576_v61  ;;  %v591_v10 = vsel %vm590_vm6, %v3145_v45, %v587_v3 }
 0x4b9   :  { %v582_v5 = vmul.f32 %v581_v44, %v532_v0  ;;  %v596_v12 = vsel %vm593_vm7, %v595_v11, %v591_v10  ;;  %v748_v44 = vsel %vm120_vm0, %v3697_v2, 0.0 }
 0x4ba   :  { %v597_v16 = vmul.f32 %v596_v12, %v535_v14 }
 0x4bb   :  { %2868 = vmatmul.msk.f32.gmra.mxu2 %vm363_vm3, %v567_v27 }
 0x4be   :  { %1262 = vrot.lane.b32.xlu0 %v3588_v43, %s3417_s21 }
 0x4bf   :  { %v3037_v1 = vpop.permute.xlu1 %3036 }
 0x4c0   :  { %v3038_v28 = vunpack.i.l.bf16 %v3037_v1  ;;  %v3039_v8 = vunpack.i.h.bf16 %v3037_v1 }
 0x4c2   :  { %818 = vmatpush.msra.mxu3 %v3038_v28 }
 0x4c3   :  { %2869 = vmatmul.msk.f32.gmra.mxu2 %vm363_vm3, %v582_v5 }
 0x4c4   :  { %819 = vmatpush.msra.mxu3 %v3039_v8 }
 0x4c5   :  { %2881 = vmatmul.msk.f32.vlgmr.msra.gmra.mxu3 %vm120_vm0, %v3711_v15 }
 0x4c6   :  { %3046 = vrot.lane.b32.xlu0 %v3628_v63, %s3418_s22 }
 0x4c7   :  { %v3042_v13 = vpop.permute.xlu1 %3041 }
 0x4c8   :  { %v3043_v60 = vunpack.i.l.bf16 %v3042_v13  ;;  %v3044_v17 = vunpack.i.h.bf16 %v3042_v13 }
 0x4ca   :  { %1072 = vmatpush.msrb.mxu3 %v3043_v60 }
 0x4cb   :  { %2870 = vmatmul.msk.f32.gmra.mxu2 %vm363_vm3, %v597_v16 }
 0x4cc   :  { %1073 = vmatpush.msrb.mxu3 %v3044_v17 }
 0x4cd   :  { %2882 = vmatmul.msk.f32.gmra.mxu3 %vm120_vm0, %v3704_v7 }
 0x4ce   :  { %2903 = vmatpush.xpose.msk.msra.mxu3 %vm363_vm3, %v1228_v18 }
 0x4cf   :  { %v974_v15 = vpop.permute.xlu1 %973 }
 0x4d3   :  { %2893 = vmatmul.msk.f32.vlgmr.msrb.gmra.mxu2 %vm363_vm3, %v972_v9 }
 0x4d7   :  { %v1226_v19 = vpop.permute.xlu1 %1225 }
 0x4d8   :  { %2904 = vmatpush.xpose.msk.msra.mxu3 %vm363_vm3, %v1226_v19 }
 0x4db   :  { %2894 = vmatmul.msk.f32.gmra.mxu2 %vm363_vm3, %v974_v15 }
 0x4f7   :  { %v786_v21 = vpop.f32.mrf.mxu1 }
 0x4ff   :  { %v3747_v23 = vpop.f32.mrf.mxu1 }
 0x502   :  { %v747_v24 = vpop.xlane.xlu1 %746 }
 0x503   :  { %3146 = vrcp.f32 %v747_v24  ;;  %v838_v35 = vand.u32 2147483648, %v747_v24  ;;  %v836_v37 = vand.u32 2147483647, %v747_v24  ;;  %vm832_vm9 = vweird.f32 %v747_v24 }
 0x505   :  { %v839_v46 = vor.u32 1.1754944e-38, %v838_v35  ;;  %vm837_vm11 = vcmp.eq.f32.partialorder %v836_v37, 8.507059e+37 }
 0x507   :  { %v965_v26 = vpop.f32.mrf.mxu1 }
 0x508   :  { %v1010_v7 = vsel %vm120_vm0, %v965_v26, -inf }
 0x509   :  { %v3147_v31 = vpop.eup %3146  ;;  %1011 = vmax.xlane.f32.xlu2 %v1010_v7 }
 0x50a   :  { %v828_v32 = vmul.f32 %v3147_v31, %v747_v24  ;;  %vm833_vm8 = vweird.f32 %v3147_v31  ;;  %v756_v9 = vpop.xlane.xlu1 %755 }
 0x50b   :  { %vm834_vm10 = vmor %vm832_vm9, %vm833_vm8  ;;  %vm877_vm8 = vweird.f32 %v756_v9 }
 0x50c   :  { %v829_v33 = vsub.f32 1.0, %v828_v32 }
 0x50e   :  { %v830_v36 = vmul.f32 %v3147_v31, %v829_v33 }
 0x50f   :  { %v968_v40 = vpop.f32.mrf.mxu1 }
 0x510   :  { %v831_v42 = vadd.f32 %v3147_v31, %v830_v36  ;;  %v1013_v45 = vsel %vm120_vm0, %v968_v40, -inf }
 0x511   :  { %1014 = vmax.xlane.f32.xlu2 %v1013_v45 }
 0x512   :  { %v835_v47 = vsel %vm834_vm10, %v3147_v31, %v831_v42 }
 0x513   :  { %v840_v48 = vsel %vm837_vm11, %v839_v46, %v835_v47 }
 0x514   :  { %v841_v49 = vmul.f32 %v840_v48, %v786_v21 }
 0x515   :  { %v3752_v38 = vpop.xlane.xlu0 %752 }
 0x516   :  { %2883 = vmatmul.msk.f32.vlgmr.msra.gmra.mxu0 %vm363_vm3, %v841_v49  ;;  %v868_v36 = vand.u32 2147483648, %v3752_v38  ;;  %vm862_vm2 = vweird.f32 %v3752_v38  ;;  %v866_v37 = vand.u32 2147483647, %v3752_v38 }
 0x518   :  { %v869_v47 = vor.u32 1.1754944e-38, %v868_v36  ;;  %vm867_vm6 = vcmp.eq.f32.partialorder %v866_v37, 8.507059e+37 }
 0x522   :  { %v1261_v42 = vpop.permute.xlu1 %1260 }
 0x528   :  { %v1265_v52 = vpop.permute.xlu0 %1264 }
 0x529   :  { %1221 = vrot.lane.b32.xlu2 %v3578_v39, %s3417_s21 }
 0x530   :  { %v3756_v53 = vpop.permute.xlu0 %1262 }
 0x536   :  { %v627_v55 = vpop.f32.mrf.mxu2 }
 0x537   :  { %v3760_v56 = vadd.f32 %v627_v55, %v353_v54 }
 0x538   :  { %v3047_v57 = vpop.permute.xlu0 %3046 }
 0x539   :  { %v3048_v51 = vunpack.i.l.bf16 %v3047_v57  ;;  %v3049_v27 = vunpack.i.h.bf16 %v3047_v57 }
 0x53b   :  { %1107 = vmatpush.msra.mxu1 %v3048_v51 }
 0x53d   :  { %1108 = vmatpush.msra.mxu1 %v3049_v27 }
 0x53e   :  { %v630_v59 = vpop.f32.mrf.mxu2 }
 0x53f   :  { %v3764_v61 = vadd.f32 %v630_v59, %v354_v58 }
 0x546   :  { %v633_v39 = vpop.f32.mrf.mxu2 }
 0x547   :  { %v3767_v62 = vadd.f32 %v633_v39, %v3565_v30 }
 0x54e   :  { %v636_v0 = vpop.f32.mrf.mxu2 }
 0x54f   :  { %v3770_v22 = vadd.f32 %v636_v0, %v3569_v34 }
 0x552   :  { %749 = vadd.xlane.f32.xlu2 %v748_v44 }
 0x556   :  { %v3774_v1 = vpop.f32.mrf.mxu2 }
 0x55e   :  { %v3776_v3 = vpop.f32.mrf.mxu2 }
 0x55f   :  { %v1019_v25 = vsel %vm120_vm0, %v3776_v3, -inf }
 0x560   :  { %1020 = vmax.xlane.f32.xlu1 %v1019_v25 }
 0x56a   :  { %1266 = vrot.lane.b32.xlu2 %v3588_v43, %s3416_s20 }
 0x579   :  { %3051 = vrot.lane.b32.xlu1 %v3584_v41, %s3419_s23  ;;  %v1016_v41 = vsel %vm120_vm0, %v3774_v1, -inf }
 0x57c   :  { %v1012_v29 = vpop.xlane.xlu2 %1011 }
 0x57d   :  { %v1022_v30 = vsub.f32 %v965_v26, %v1012_v29 }
 0x57f   :  { %v1026_v34 = vmul.f32 1.442695, %v1022_v30 }
 0x581   :  { %3148 = vpow2.f32 %v1026_v34 }
 0x584   :  { %v1015_v2 = vpop.xlane.xlu2 %1014 }
 0x585   :  { %v1023_v4 = vsub.f32 %v968_v40, %v1015_v2  ;;  %v821_v40 = vpop.f32.mrf.mxu3 }
 0x587   :  { %v3784_v28 = vpop.eup %3148  ;;  %v1028_v5 = vmul.f32 1.442695, %v1023_v4 }
 0x588   :  { %2895 = vmatmul.msk.f32.vlgmr.msrb.gmra.mxu3 %vm120_vm0, %v3784_v28 }
 0x589   :  { %3150 = vpow2.f32 %v1028_v5 }
 0x58a   :  { %3152 = vrcp.f32 %v3752_v38 }
 0x58c   :  { %v1222_v43 = vpop.permute.xlu2 %1221 }
 0x58d   :  { %v824_v55 = vpop.f32.mrf.mxu3 }
 0x58f   :  { %v3788_v6 = vpop.eup %3150 }
 0x590   :  { %2896 = vmatmul.msk.f32.gmra.mxu3 %vm120_vm0, %v3788_v6  ;;  %v3153_v10 = vpop.eup %3152 }
 0x591   :  { %v858_v11 = vmul.f32 %v3153_v10, %v3752_v38  ;;  %vm863_vm1 = vweird.f32 %v3153_v10 }
 0x592   :  { %vm864_vm4 = vmor %vm862_vm2, %vm863_vm1 }
 0x593   :  { %1017 = vmax.xlane.f32.xlu2 %v1016_v41  ;;  %v859_v60 = vsub.f32 1.0, %v858_v11 }
 0x595   :  { %v860_v21 = vmul.f32 %v3153_v10, %v859_v60 }
 0x597   :  { %v861_v33 = vadd.f32 %v3153_v10, %v860_v21 }
 0x598   :  { %2905 = vmatmul.msk.f32.vlgmr.msra.gmra.mxu3 %vm363_vm3, %v1222_v43  ;;  %v3820_v43 = vpop.f32.mrf.mxu0 }
 0x599   :  { %v865_v45 = vsel %vm864_vm4, %v3153_v10, %v861_v33 }
 0x59a   :  { %v870_v48 = vsel %vm867_vm6, %v869_v47, %v865_v45 }
 0x59b   :  { %v871_v49 = vmul.f32 %v870_v48, %v821_v40 }
 0x5a0   :  { %2906 = vmatmul.msk.f32.gmra.mxu3 %vm363_vm3, %v1224_v50 }
 0x5c5   :  { %v750_v8 = vpop.xlane.xlu2 %749 }
 0x5c6   :  { %3154 = vrcp.f32 %v750_v8  ;;  %v853_v18 = vand.u32 2147483648, %v750_v8  ;;  %v851_v19 = vand.u32 2147483647, %v750_v8  ;;  %vm847_vm13 = vweird.f32 %v750_v8 }
 0x5c7   :  { %3156 = vrcp.f32 %v756_v9 }
 0x5c8   :  { %v854_v26 = vor.u32 1.1754944e-38, %v853_v18  ;;  %vm852_vm15 = vcmp.eq.f32.partialorder %v851_v19, 8.507059e+37 }
 0x5cc   :  { %v3155_v12 = vpop.eup %3154 }
 0x5cd   :  { %v843_v13 = vmul.f32 %v3155_v12, %v750_v8  ;;  %v1267_v14 = vpop.permute.xlu2 %1266  ;;  %v3157_v17 = vpop.eup %3156  ;;  %vm848_vm12 = vweird.f32 %v3155_v12 }
 0x5ce   :  { %2907 = vmatpush.xpose.msk.msrb.mxu0 %vm363_vm3, %v1267_v14  ;;  %v873_v20 = vmul.f32 %v3157_v17, %v756_v9  ;;  %vm849_vm14 = vmor %vm847_vm13, %vm848_vm12  ;;  %vm878_vm7 = vweird.f32 %v3157_v17 }
 0x5cf   :  { %v844_v16 = vsub.f32 1.0, %v843_v13  ;;  %vm879_vm9 = vmor %vm877_vm8, %vm878_vm7 }
 0x5d0   :  { %v874_v32 = vsub.f32 1.0, %v873_v20 }
 0x5d1   :  { %v845_v15 = vmul.f32 %v3155_v12, %v844_v16 }
 0x5d2   :  { %2908 = vmatpush.xpose.msk.msrb.mxu0 %vm363_vm3, %v1265_v52  ;;  %v875_v46 = vmul.f32 %v3157_v17, %v874_v32  ;;  %v881_v52 = vand.u32 2147483647, %v756_v9 }
 0x5d3   :  { %v846_v24 = vadd.f32 %v3155_v12, %v845_v15  ;;  %v1021_v54 = vpop.xlane.xlu1 %1020 }
 0x5d4   :  { %v876_v50 = vadd.f32 %v3157_v17, %v875_v46  ;;  %vm882_vm10 = vcmp.eq.f32.partialorder %v881_v52, 8.507059e+37  ;;  %v1025_v29 = vsub.f32 %v3776_v3, %v1021_v54 }
 0x5d5   :  { %v850_v7 = vsel %vm849_vm14, %v3155_v12, %v846_v24 }
 0x5d6   :  { %v855_v31 = vsel %vm852_vm15, %v854_v26, %v850_v7  ;;  %v880_v38 = vsel %vm879_vm9, %v3157_v17, %v876_v50  ;;  %v1032_v34 = vmul.f32 1.442695, %v1025_v29 }
 0x5d7   :  { %v856_v35 = vmul.f32 %v855_v31, %v3747_v23  ;;  %v883_v23 = vand.u32 2147483648, %v756_v9 }
 0x5d9   :  { %2884 = vmatmul.msk.f32.gmra.mxu0 %vm363_vm3, %v856_v35  ;;  %v884_v57 = vor.u32 1.1754944e-38, %v883_v23  ;;  %v347_v35 = vld [vmem:[#allocation8 + $0x10] sm:$0xff] }
 0x5da   :  { %1203 = vmatpush.msra.mxu2 %v347_v35 }
 0x5db   :  { %v885_v51 = vsel %vm882_vm10, %v884_v57, %v880_v38 }
 0x5dc   :  { %v886_v27 = vmul.f32 %v885_v51, %v824_v55 }
 0x5e1   :  { %2885 = vmatmul.msk.f32.gmra.mxu0 %vm363_vm3, %v871_v49 }
 0x5e9   :  { %2886 = vmatmul.msk.f32.gmra.mxu0 %vm363_vm3, %v886_v27 }
 0x5eb   :  { %v3052_v58 = vpop.permute.xlu1 %3051 }
 0x5ec   :  { %v3053_v59 = vunpack.i.l.bf16 %v3052_v58  ;;  %v3054_v39 = vunpack.i.h.bf16 %v3052_v58 }
 0x5ee   :  { %1361 = vmatpush.msrb.mxu1 %v3053_v59 }
 0x5f0   :  { %1362 = vmatpush.msrb.mxu1 %v3054_v39 }
 0x5f1   :  { %2909 = vmatmul.msk.f32.vlgmr.msrb.gmra.mxu0 %vm363_vm3, %v1261_v42 }
 0x5f9   :  { %2910 = vmatmul.msk.f32.gmra.mxu0 %vm363_vm3, %v3756_v53 }
 0x606   :  { %v1018_v0 = vpop.xlane.xlu2 %1017 }
 0x607   :  { %v1024_v44 = vsub.f32 %v3774_v1, %v1018_v0 }
 0x609   :  { %v1030_v25 = vmul.f32 1.442695, %v1024_v44 }
 0x60b   :  { %3158 = vpow2.f32 %v1030_v25  ;;  %v3812_v30 = vpop.f32.mrf.mxu3  ;;  %v348_v25 = vld [vmem:[#allocation8 + $0x18] sm:$0xff] }
 0x60c   :  { %3160 = vpow2.f32 %v1032_v34  ;;  %1492 = vmatpush.msra.mxu0 %v348_v25 }
 0x611   :  { %v3159_v2 = vpop.eup %3158 }
 0x612   :  { %2897 = vmatmul.msk.f32.vlgmr.msra.gmra.mxu1 %vm120_vm0, %v3159_v2  ;;  %v3161_v5 = vpop.eup %3160  ;;  %v1040_v7 = vsel %vm120_vm0, %v3159_v2, 0.0 }
 0x613   :  { %v3815_v4 = vpop.f32.mrf.mxu3 }
 0x61a   :  { %2898 = vmatmul.msk.f32.gmra.mxu1 %vm120_vm0, %v3161_v5 }
 0x61b   :  { %v1254_v53 = vpop.f32.mrf.mxu3 }
 0x61c   :  { %v1299_v41 = vsel %vm120_vm0, %v1254_v53, -inf }
 0x61d   :  { %1300 = vmax.xlane.f32.xlu0 %v1299_v41 }
 0x623   :  { %v1257_v1 = vpop.f32.mrf.mxu3 }
 0x624   :  { %v1302_v3 = vsel %vm120_vm0, %v1257_v1, -inf }
 0x625   :  { %1303 = vmax.xlane.f32.xlu2 %v1302_v3 }
 0x656   :  { %v919_v8 = vpop.f32.mrf.mxu0 }
 0x657   :  { %v3823_v9 = vadd.f32 %v919_v8, %v3764_v61  ;;  %v1034_v61 = vsel %vm120_vm0, %v3784_v28, 0.0 }
 0x65e   :  { %v922_v10 = vpop.f32.mrf.mxu0 }
 0x65f   :  { %v3826_v11 = vadd.f32 %v922_v10, %v3767_v62  ;;  %v1037_v62 = vsel %vm120_vm0, %v3788_v6, 0.0 }
 0x666   :  { %v925_v12 = vpop.f32.mrf.mxu0 }
 0x667   :  { %v3829_v13 = vadd.f32 %v925_v12, %v3770_v22 }
 0x66e   :  { %v1293_v14 = vpop.f32.mrf.mxu0 }
 0x66f   :  { %v1305_v60 = vsel %vm120_vm0, %v1293_v14, -inf }
 0x670   :  { %1306 = vmax.xlane.f32.xlu2 %v1305_v60 }
 0x676   :  { %v1296_v16 = vpop.f32.mrf.mxu0 }
 0x677   :  { %v1308_v17 = vsel %vm120_vm0, %v1296_v16, -inf }
 0x678   :  { %1309 = vmax.xlane.f32.xlu0 %v1308_v17 }
 0x680   :  { %1035 = vadd.xlane.f32.xlu0 %v1034_v61 }
 0x688   :  { %1038 = vadd.xlane.f32.xlu0 %v1037_v62  ;;  %3056 = vrot.lane.b32.xlu2 %v3628_v63, %s3419_s23  ;;  %v1043_v63 = vsel %vm120_vm0, %v3161_v5, 0.0 }
 0x68f   :  { %v3851_v12 = vpop.f32.mrf.mxu1 }
 0x690   :  { %v1301_v22 = vpop.xlane.xlu0 %1300 }
 0x691   :  { %v1311_v18 = vsub.f32 %v1254_v53, %v1301_v22 }
 0x693   :  { %v1315_v15 = vmul.f32 1.442695, %v1311_v18 }
 0x695   :  { %3162 = vpow2.f32 %v1315_v15 }
 0x698   :  { %v1304_v19 = vpop.xlane.xlu2 %1303 }
 0x699   :  { %v1312_v20 = vsub.f32 %v1257_v1, %v1304_v19 }
 0x69b   :  { %v3163_v21 = vpop.eup %3162  ;;  %v1317_v24 = vmul.f32 1.442695, %v1312_v20 }
 0x69c   :  { %2911 = vmatmul.msk.f32.vlgmr.msrb.gmra.mxu1 %vm120_vm0, %v3163_v21  ;;  %v1323_v28 = vsel %vm120_vm0, %v3163_v21, 0.0 }
 0x69d   :  { %3164 = vpow2.f32 %v1317_v24  ;;  %1324 = vadd.xlane.f32.xlu1 %v1323_v28 }
 0x6a3   :  { %v3165_v26 = vpop.eup %3164 }
 0x6a4   :  { %2912 = vmatmul.msk.f32.gmra.mxu1 %vm120_vm0, %v3165_v26  ;;  %v1326_v6 = vsel %vm120_vm0, %v3165_v26, 0.0 }
 0x6a5   :  { %1327 = vadd.xlane.f32.xlu0 %v1326_v6 }
 0x6ad   :  { %1044 = vadd.xlane.f32.xlu0 %v1043_v63 }
 0x6b1   :  { %1041 = vadd.xlane.f32.xlu2 %v1040_v7 }
 0x6e3   :  { %v1307_v31 = vpop.xlane.xlu2 %1306 }
 0x6e4   :  { %v1313_v32 = vsub.f32 %v1293_v14, %v1307_v31 }
 0x6e6   :  { %v1319_v33 = vmul.f32 1.442695, %v1313_v32 }
 0x6e8   :  { %3166 = vpow2.f32 %v1319_v33 }
 0x6eb   :  { %v1310_v36 = vpop.xlane.xlu0 %1309  ;;  %v3057_v37 = vpop.permute.xlu2 %3056 }
 0x6ec   :  { %v1314_v40 = vsub.f32 %v1296_v16, %v1310_v36  ;;  %v3058_v42 = vunpack.i.l.bf16 %v3057_v37  ;;  %v3059_v47 = vunpack.i.h.bf16 %v3057_v37  ;;  %v3855_v16 = vpop.f32.mrf.mxu1 }
 0x6ee   :  { %v3167_v45 = vpop.eup %3166  ;;  %v1321_v46 = vmul.f32 1.442695, %v1314_v40  ;;  %1396 = vmatpush.msrb.mxu3 %v3058_v42 }
 0x6ef   :  { %v1329_v48 = vsel %vm120_vm0, %v3167_v45, 0.0 }
 0x6f0   :  { %3168 = vpow2.f32 %v1321_v46  ;;  %1397 = vmatpush.msrb.mxu3 %v3059_v47  ;;  %1330 = vadd.xlane.f32.xlu0 %v1329_v48 }
 0x6f1   :  { %2913 = vmatmul.msk.f32.vlgmr.msrb.gmra.mxu3 %vm120_vm0, %v3167_v45 }
 0x6f3   :  { %v1036_v49 = vpop.xlane.xlu0 %1035 }
 0x6f4   :  { %3170 = vrcp.f32 %v1036_v49  ;;  %v1127_v57 = vand.u32 2147483648, %v1036_v49  ;;  %v1125_v27 = vand.u32 2147483647, %v1036_v49  ;;  %vm1121_vm12 = vweird.f32 %v1036_v49 }
 0x6f6   :  { %v3169_v50 = vpop.eup %3168  ;;  %v1128_v39 = vor.u32 1.1754944e-38, %v1127_v57  ;;  %vm1126_vm14 = vcmp.eq.f32.partialorder %v1125_v27, 8.507059e+37 }
 0x6f7   :  { %v1332_v23 = vsel %vm120_vm0, %v3169_v50, 0.0 }
 0x6f8   :  { %1333 = vadd.xlane.f32.xlu0 %v1332_v23 }
 0x6f9   :  { %2914 = vmatmul.msk.f32.gmra.mxu3 %vm120_vm0, %v3169_v50 }
 0x6fa   :  { %v3171_v52 = vpop.eup %3170 }
 0x6fb   :  { %v1117_v38 = vmul.f32 %v3171_v52, %v1036_v49  ;;  %v1039_v54 = vpop.xlane.xlu0 %1038  ;;  %vm1122_vm11 = vweird.f32 %v3171_v52 }
 0x6fc   :  { %3172 = vrcp.f32 %v1039_v54  ;;  %vm1123_vm13 = vmor %vm1121_vm12, %vm1122_vm11  ;;  %v1142_v5 = vand.u32 2147483648, %v1039_v54  ;;  %v1140_v41 = vand.u32 2147483647, %v1039_v54  ;;  %vm1136_vm1 = vweird.f32 %v1039_v54 }
 0x6fd   :  { %v1118_v55 = vsub.f32 1.0, %v1117_v38 }
 0x6fe   :  { %v1143_v3 = vor.u32 1.1754944e-38, %v1142_v5  ;;  %vm1141_vm4 = vcmp.eq.f32.partialorder %v1140_v41, 8.507059e+37 }
 0x6ff   :  { %v1119_v51 = vmul.f32 %v3171_v52, %v1118_v55 }
 0x701   :  { %v1120_v58 = vadd.f32 %v3171_v52, %v1119_v51 }
 0x702   :  { %v3173_v59 = vpop.eup %3172 }
 0x703   :  { %v1124_v0 = vsel %vm1123_vm13, %v3171_v52, %v1120_v58  ;;  %v1132_v44 = vmul.f32 %v3173_v59, %v1039_v54  ;;  %vm1137_vm15 = vweird.f32 %v3173_v59 }
 0x704   :  { %v1129_v29 = vsel %vm1126_vm14, %v1128_v39, %v1124_v0  ;;  %vm1138_vm2 = vmor %vm1136_vm1, %vm1137_vm15 }
 0x705   :  { %v1133_v34 = vsub.f32 1.0, %v1132_v44  ;;  %v1130_v2 = vmul.f32 %v1129_v29, %v3812_v30 }
 0x707   :  { %v1134_v53 = vmul.f32 %v3173_v59, %v1133_v34  ;;  %2899 = vmatmul.msk.f32.vlgmr.msra.gmra.mxu2 %vm363_vm3, %v1130_v2 }
 0x709   :  { %v1135_v1 = vadd.f32 %v3173_v59, %v1134_v53 }
 0x70b   :  { %v1139_v8 = vsel %vm1138_vm2, %v3173_v59, %v1135_v1 }
 0x70c   :  { %v1144_v10 = vsel %vm1141_vm4, %v1143_v3, %v1139_v8 }
 0x70d   :  { %v1145_v14 = vmul.f32 %v1144_v10, %v3815_v4 }
 0x70f   :  { %2900 = vmatmul.msk.f32.gmra.mxu2 %vm363_vm3, %v1145_v14 }
 0x710   :  { %v1325_v30 = vpop.xlane.xlu1 %1324 }
 0x711   :  { %3174 = vrcp.f32 %v1325_v30  ;;  %v1416_v22 = vand.u32 2147483648, %v1325_v30  ;;  %v1414_v15 = vand.u32 2147483647, %v1325_v30  ;;  %vm1410_vm7 = vweird.f32 %v1325_v30 }
 0x713   :  { %v1417_v4 = vor.u32 1.1754944e-38, %v1416_v22  ;;  %vm1415_vm9 = vcmp.eq.f32.partialorder %v1414_v15, 8.507059e+37  ;;  %v1512_v22 = vld [vmem:[#allocation10 + $0x10] sm:$0xff] }
 0x717   :  { %v3175_v60 = vpop.eup %3174 }
 0x718   :  { %v1406_v17 = vmul.f32 %v3175_v60, %v1325_v30  ;;  %v1328_v61 = vpop.xlane.xlu0 %1327  ;;  %vm1411_vm6 = vweird.f32 %v3175_v60 }
 0x719   :  { %3176 = vrcp.f32 %v1328_v61  ;;  %v1364_v21 = vpop.f32.mrf.mxu1  ;;  %vm1412_vm8 = vmor %vm1410_vm7, %vm1411_vm6  ;;  %v1431_v31 = vand.u32 2147483648, %v1328_v61  ;;  %v1429_v33 = vand.u32 2147483647, %v1328_v61  ;;  %vm1425_vm11 = vweird.f32 %v1328_v61 }
 0x71a   :  { %v1407_v62 = vsub.f32 1.0, %v1406_v17 }
 0x71b   :  { %v1432_v40 = vor.u32 1.1754944e-38, %v1431_v31  ;;  %vm1430_vm13 = vcmp.eq.f32.partialorder %v1429_v33, 8.507059e+37  ;;  %v1510_v33 = vld [vmem:[#allocation10] sm:$0xff] }
 0x71c   :  { %v1408_v18 = vmul.f32 %v3175_v60, %v1407_v62  ;;  %v1513_v62 = vld [vmem:[#allocation10 + $0x18] sm:$0xff] }
 0x71d   :  { %1538 = vmatpush.msra.mxu1 %v1513_v62 }
 0x71e   :  { %v1409_v19 = vadd.f32 %v3175_v60, %v1408_v18 }
 0x71f   :  { %v3177_v20 = vpop.eup %3176  ;;  %1539 = vmatpush.msra.mxu1 %v1512_v22 }
 0x720   :  { %v1421_v24 = vmul.f32 %v3177_v20, %v1328_v61  ;;  %v1413_v28 = vsel %vm1412_vm8, %v3175_v60, %v1409_v19  ;;  %v1045_v26 = vpop.xlane.xlu0 %1044  ;;  %vm1426_vm10 = vweird.f32 %v3177_v20 }
 0x721   :  { %v1418_v6 = vsel %vm1415_vm9, %v1417_v4, %v1413_v28  ;;  %3178 = vrcp.f32 %v1045_v26  ;;  %vm1427_vm12 = vmor %vm1425_vm11, %vm1426_vm10  ;;  %v1367_v46 = vpop.f32.mrf.mxu1  ;;  %v1172_v39 = vand.u32 2147483648, %v1045_v26  ;;  %vm1166_vm6 = vweird.f32 %v1045_v26 }
 0x722   :  { %v1422_v63 = vsub.f32 1.0, %v1421_v24  ;;  %v1419_v7 = vmul.f32 %v1418_v6, %v1364_v21  ;;  %v1170_v25 = vand.u32 2147483647, %v1045_v26 }
 0x723   :  { %v1173_v34 = vor.u32 1.1754944e-38, %v1172_v39 }
 0x724   :  { %v1423_v32 = vmul.f32 %v3177_v20, %v1422_v63  ;;  %v1042_v35 = vpop.xlane.xlu2 %1041  ;;  %2915 = vmatmul.msk.f32.vlgmr.msra.gmra.mxu0 %vm363_vm3, %v1419_v7  ;;  %vm1171_vm8 = vcmp.eq.f32.partialorder %v1170_v25, 8.507059e+37  ;;  %v3104_v25 = vld [vmem:[%s4200_s6 + $0x1] ss:$0 sm:$0xff] }
 0x725   :  { %3180 = vrcp.f32 %v1042_v35  ;;  %v1157_v38 = vand.u32 2147483648, %v1042_v35  ;;  %v1155_v57 = vand.u32 2147483647, %v1042_v35  ;;  %vm1151_vm15 = vweird.f32 %v1042_v35 }
 0x726   :  { %v1424_v36 = vadd.f32 %v3177_v20, %v1423_v32  ;;  %v1511_v32 = vld [vmem:[#allocation10 + $0x8] sm:$0xff] }
 0x727   :  { %v3179_v37 = vpop.eup %3178  ;;  %v1158_v27 = vor.u32 1.1754944e-38, %v1157_v38  ;;  %vm1156_vm2 = vcmp.eq.f32.partialorder %v1155_v57, 8.507059e+37  ;;  %1540 = vmatpush.msra.mxu1 %v1511_v32  ;;  %v1557_v57 = vld [vmem:[#allocation7 + $0x28] sm:$0xff] }
 0x728   :  { %v1162_v42 = vmul.f32 %v3179_v37, %v1045_v26  ;;  %v1428_v45 = vsel %vm1427_vm12, %v3177_v20, %v1424_v36  ;;  %vm1167_vm4 = vweird.f32 %v3179_v37  ;;  %v928_v36 = vadd.f32 %v3820_v43, %v3760_v56 }
 0x729   :  { %v1433_v47 = vsel %vm1430_vm13, %v1432_v40, %v1428_v45  ;;  %vm1168_vm7 = vmor %vm1166_vm6, %vm1167_vm4  ;;  %1541 = vmatpush.msra.mxu1 %v1510_v33 }
 0x72a   :  { %v1434_v48 = vmul.f32 %v1433_v47, %v1367_v46  ;;  %v1163_v50 = vsub.f32 1.0, %v1162_v42 }
 0x72b   :  { %v3181_v49 = vpop.eup %3180 }
 0x72c   :  { %v1147_v23 = vmul.f32 %v3181_v49, %v1042_v35  ;;  %2916 = vmatmul.msk.f32.gmra.mxu0 %vm363_vm3, %v1434_v48  ;;  %v1164_v54 = vmul.f32 %v3179_v37, %v1163_v50  ;;  %vm1152_vm14 = vweird.f32 %v3181_v49  ;;  %v1558_v50 = vld [vmem:[#allocation7 + $0x30] sm:$0xff] }
 0x72d   :  { %vm1153_vm1 = vmor %vm1151_vm15, %vm1152_vm14 }
 0x72e   :  { %v1148_v52 = vsub.f32 1.0, %v1147_v23  ;;  %v1165_v59 = vadd.f32 %v3179_v37, %v1164_v54 }
 0x730   :  { %v1149_v55 = vmul.f32 %v3181_v49, %v1148_v52  ;;  %v1169_v29 = vsel %vm1168_vm7, %v3179_v37, %v1165_v59 }
 0x731   :  { %v1174_v2 = vsel %vm1171_vm8, %v1173_v34, %v1169_v29 }
 0x732   :  { %v1150_v51 = vadd.f32 %v3181_v49, %v1149_v55  ;;  %v1175_v5 = vmul.f32 %v1174_v2, %v3855_v16 }
 0x734   :  { %v1154_v58 = vsel %vm1153_vm1, %v3181_v49, %v1150_v51  ;;  %v1559_v49 = vld [vmem:[#allocation7 + $0x38] sm:$0xff]  ;;  %v1556_v51 = vld [vmem:[#allocation7 + $0x20] sm:$0xff] }
 0x735   :  { %v1159_v0 = vsel %vm1156_vm2, %v1158_v27, %v1154_v58  ;;  %1589 = vmatpush.msrb.mxu2 %v1559_v49 }
 0x736   :  { %v1160_v44 = vmul.f32 %v1159_v0, %v3851_v12 }
 0x737   :  { %1590 = vmatpush.msrb.mxu2 %v1558_v50 }
 0x738   :  { %2901 = vmatmul.msk.f32.gmra.mxu2 %vm363_vm3, %v1160_v44 }
 0x739   :  { %1591 = vmatpush.msrb.mxu2 %v1557_v57 }
 0x73b   :  { %1592 = vmatpush.msrb.mxu2 %v1556_v51 }
 0x740   :  { %2902 = vmatmul.msk.f32.gmra.mxu2 %vm363_vm3, %v1175_v5 }
 0x763   :  { %v1331_v53 = vpop.xlane.xlu0 %1330 }
 0x764   :  { %3182 = vrcp.f32 %v1331_v53  ;;  %v1446_v10 = vand.u32 2147483648, %v1331_v53  ;;  %v1444_v14 = vand.u32 2147483647, %v1331_v53  ;;  %vm1440_vm10 = vweird.f32 %v1331_v53 }
 0x766   :  { %v1447_v17 = vor.u32 1.1754944e-38, %v1446_v10  ;;  %vm1445_vm12 = vcmp.eq.f32.partialorder %v1444_v14, 8.507059e+37 }
 0x76a   :  { %v3183_v41 = vpop.eup %3182 }
 0x76b   :  { %v1436_v1 = vmul.f32 %v3183_v41, %v1331_v53  ;;  %v1334_v3 = vpop.xlane.xlu0 %1333  ;;  %vm1441_vm9 = vweird.f32 %v3183_v41 }
 0x76c   :  { %3184 = vrcp.f32 %v1334_v3  ;;  %vm1442_vm11 = vmor %vm1440_vm10, %vm1441_vm9  ;;  %v1461_v21 = vand.u32 2147483648, %v1334_v3  ;;  %v1459_v24 = vand.u32 2147483647, %v1334_v3  ;;  %vm1455_vm14 = vweird.f32 %v1334_v3 }
 0x76d   :  { %v1437_v8 = vsub.f32 1.0, %v1436_v1 }
 0x76e   :  { %v1462_v26 = vor.u32 1.1754944e-38, %v1461_v21  ;;  %vm1460_vm1 = vcmp.eq.f32.partialorder %v1459_v24, 8.507059e+37 }
 0x76f   :  { %v1438_v12 = vmul.f32 %v3183_v41, %v1437_v8 }
 0x771   :  { %v1439_v30 = vadd.f32 %v3183_v41, %v1438_v12 }
 0x772   :  { %v3185_v60 = vpop.eup %3184 }
 0x773   :  { %v1451_v61 = vmul.f32 %v3185_v60, %v1334_v3  ;;  %v1443_v16 = vsel %vm1442_vm11, %v3183_v41, %v1439_v30  ;;  %vm1456_vm13 = vweird.f32 %v3185_v60 }
 0x774   :  { %v1399_v18 = vpop.f32.mrf.mxu3  ;;  %v1448_v15 = vsel %vm1445_vm12, %v1447_v17, %v1443_v16  ;;  %vm1457_vm15 = vmor %vm1455_vm14, %vm1456_vm13 }
 0x775   :  { %v1452_v19 = vsub.f32 1.0, %v1451_v61  ;;  %v1449_v20 = vmul.f32 %v1448_v15, %v1399_v18 }
 0x777   :  { %2917 = vmatmul.msk.f32.gmra.mxu0 %vm363_vm3, %v1449_v20  ;;  %v1453_v4 = vmul.f32 %v3185_v60, %v1452_v19 }
 0x779   :  { %v1454_v28 = vadd.f32 %v3185_v60, %v1453_v4 }
 0x77b   :  { %v1458_v6 = vsel %vm1457_vm15, %v3185_v60, %v1454_v28 }
 0x77c   :  { %v1402_v63 = vpop.f32.mrf.mxu3  ;;  %v1463_v7 = vsel %vm1460_vm1, %v1462_v26, %v1458_v6 }
 0x77d   :  { %v1464_v31 = vmul.f32 %v1463_v7, %v1402_v63 }
 0x77f   :  { %2918 = vmatmul.msk.f32.gmra.mxu0 %vm363_vm3, %v1464_v31 }
 0x78a   :  { %v1205_v35 = vpop.f32.mrf.mxu2 }
 0x78b   :  { %v1217_v37 = vadd.f32 %v1205_v35, %v928_v36 }
 0x792   :  { %v1208_v45 = vpop.f32.mrf.mxu2 }
 0x793   :  { %v1218_v46 = vadd.f32 %v1208_v45, %v3823_v9 }
 0x7a1   :  { %v1494_v40 = vpop.f32.mrf.mxu0 }
 0x7a2   :  { %v1506_v42 = vadd.f32 %v1494_v40, %v1217_v37 }
 0x7a4   :  { %2919 = vmatmul.msk.f32.vlgmr.msra.gmra.mxu1 %vm242_vm5, %v1506_v42 }
 0x7a9   :  { %v1497_v47 = vpop.f32.mrf.mxu0 }
 0x7aa   :  { %v1507_v48 = vadd.f32 %v1497_v47, %v1218_v46 }
 0x7ac   :  { %2920 = vmatmul.msk.f32.gmra.mxu1 %vm242_vm5, %v1507_v48 }
 0x7bb   :  { %v1211_v23 = vpop.f32.mrf.mxu2 }
 0x7bc   :  { %v1219_v52 = vadd.f32 %v1211_v23, %v3826_v11 }
 0x7c3   :  { %v1214_v38 = vpop.f32.mrf.mxu2 }
 0x7c4   :  { %v1220_v54 = vadd.f32 %v1214_v38, %v3829_v13 }
 0x7f4   :  { %v1500_v56 = vpop.f32.mrf.mxu0 }
 0x7f5   :  { %v1508_v43 = vadd.f32 %v1500_v56, %v1219_v52 }
 0x7f7   :  { %2921 = vmatmul.msk.f32.gmra.mxu1 %vm242_vm5, %v1508_v43 }
 0x7fc   :  { %v1503_v55 = vpop.f32.mrf.mxu0 }
 0x7fd   :  { %v1509_v9 = vadd.f32 %v1503_v55, %v1220_v54 }
 0x7ff   :  { %2922 = vmatmul.msk.f32.gmra.mxu1 %vm242_vm5, %v1509_v9 }
 0x821   :  { %v1543_v27 = vpop.f32.mrf.mxu1 }
 0x822   :  { %v3874_v58 = vadd.f32 %v1543_v27, %v1506_v42 }
 0x824   :  { %2924 = vmatmul.msk.f32.vlgmr.msrb.gmra.mxu2 %vm242_vm5, %v3874_v58 }
 0x829   :  { %v1546_v11 = vpop.f32.mrf.mxu1 }
 0x82a   :  { %v3878_v59 = vadd.f32 %v1546_v11, %v1507_v48 }
 0x82c   :  { %2925 = vmatmul.msk.f32.gmra.mxu2 %vm242_vm5, %v3878_v59 }
 0x874   :  { %v1549_v13 = vpop.f32.mrf.mxu1 }
 0x875   :  { %v3882_v39 = vadd.f32 %v1549_v13, %v1508_v43 }
 0x877   :  { %2926 = vmatmul.msk.f32.gmra.mxu2 %vm242_vm5, %v3882_v39 }
 0x87c   :  { %v1552_v0 = vpop.f32.mrf.mxu1 }
 0x87d   :  { %v3886_v44 = vadd.f32 %v1552_v0, %v1509_v9 }
 0x87f   :  { %2927 = vmatmul.msk.f32.gmra.mxu2 %vm242_vm5, %v3886_v44 }
 0x8a7   :  { %v1594_v29 = vpop.f32.mrf.mxu2 }
 0x8a8   :  { %v3893_v34 = vadd.f32 %v3104_v25, %v1594_v29 }
 0x8aa   :  { %1622 = vrot.lane.b32.xlu1 %v3893_v34, %s3409_s15 }
 0x8af   :  { %v1597_v2 = vpop.f32.mrf.mxu2 }
 0x8b0   :  { %v3897_v5 = vadd.f32 %v3104_v25, %v1597_v2 }
 0x8b2   :  { %1911 = vrot.lane.b32.xlu1 %v3897_v5, %s3412_s9  ;;  %1624 = vrot.lane.b32.xlu0 %v3897_v5, %s3409_s15  ;;  %v3907_v53 = vpack.i.bf16 %v3893_v34, %v3897_v5 }
 0x8ba   :  { %1907 = vrot.lane.b32.xlu1 %v3897_v5, %s3411_s5 }
 0x8c2   :  { %3061 = vrot.lane.b32.xlu1 %v3907_v53, %s3410_s16 }
 0x8fa   :  { %v1600_v41 = vpop.f32.mrf.mxu2 }
 0x8fb   :  { %v3911_v1 = vadd.f32 %v3104_v25, %v1600_v41 }
 0x8fd   :  { %1659 = vrot.lane.b32.xlu0 %v3911_v1, %s3409_s15 }
 0x902   :  { %v1603_v3 = vpop.f32.mrf.mxu2 }
 0x903   :  { %v3915_v8 = vadd.f32 %v3104_v25, %v1603_v3 }
 0x905   :  { %1909 = vrot.lane.b32.xlu0 %v3893_v34, %s3412_s9  ;;  %1950 = vrot.lane.b32.xlu1 %v3915_v8, %s3412_s9  ;;  %v3933_v12 = vpack.i.bf16 %v3911_v1, %v3915_v8 }
 0x906   :  { %1661 = vrot.lane.b32.xlu2 %v3915_v8, %s3409_s15 }
 0x90d   :  { %1948 = vrot.lane.b32.xlu1 %v3911_v1, %s3412_s9 }
 0x90e   :  { %1905 = vrot.lane.b32.xlu2 %v3893_v34, %s3411_s5 }
 0x915   :  { %1944 = vrot.lane.b32.xlu1 %v3911_v1, %s3411_s5 }
 0x91c   :  { %v1623_v10 = vpop.permute.xlu1 %1622 }
 0x91d   :  { %1946 = vrot.lane.b32.xlu1 %v3915_v8, %s3411_s5 }
 0x924   :  { %v1912_v14 = vpop.permute.xlu1 %1911  ;;  %v1625_v30 = vpop.permute.xlu0 %1624 }
 0x925   :  { %2929 = vmatpush.xpose.msk.msra.mxu3 %vm363_vm3, %v1625_v30  ;;  %3066 = vrot.lane.b32.xlu1 %v3933_v12, %s3410_s16 }
 0x929   :  { %2930 = vmatpush.xpose.msk.msra.mxu3 %vm363_vm3, %v1623_v10 }
 0x92c   :  { %v1908_v60 = vpop.permute.xlu1 %1907  ;;  %2931 = vmatmul.msk.f32.vlgmr.msra.gmra.mxu3 %vm363_vm3, %v3893_v34 }
 0x92d   :  { %3071 = vrot.lane.b32.xlu1 %v3907_v53, %s3415_s19 }
 0x934   :  { %v3062_v17 = vpop.permute.xlu1 %3061  ;;  %2932 = vmatmul.msk.f32.gmra.mxu3 %vm363_vm3, %v3897_v5 }
 0x935   :  { %v3063_v61 = vunpack.i.l.bf16 %v3062_v17  ;;  %2194 = vrot.lane.b32.xlu1 %v3893_v34, %s3414_s18  ;;  %v3064_v16 = vunpack.i.h.bf16 %v3062_v17 }
 0x937   :  { %1756 = vmatpush.msrb.mxu0 %v3063_v61 }
 0x939   :  { %1757 = vmatpush.msrb.mxu0 %v3064_v16 }
 0x93d   :  { %2196 = vrot.lane.b32.xlu1 %v3897_v5, %s3414_s18 }
 0x960   :  { %v1662_v62 = vpop.permute.xlu2 %1661 }
 0x961   :  { %2933 = vmatpush.xpose.msk.msrb.mxu3 %vm363_vm3, %v1662_v62 }
 0x968   :  { %v1906_v20 = vpop.permute.xlu2 %1905 }
 0x96f   :  { %v1660_v22 = vpop.permute.xlu0 %1659 }
 0x970   :  { %2934 = vmatpush.xpose.msk.msrb.mxu3 %vm363_vm3, %v1660_v22 }
 0x973   :  { %2935 = vmatmul.msk.f32.vlgmr.msrb.gmra.mxu3 %vm363_vm3, %v3911_v1 }
 0x974   :  { %2945 = vmatpush.xpose.msk.msra.mxu3 %vm363_vm3, %v1912_v14 }
 0x977   :  { %v1910_v18 = vpop.permute.xlu0 %1909  ;;  %v1951_v15 = vpop.permute.xlu1 %1950 }
 0x978   :  { %2946 = vmatpush.xpose.msk.msra.mxu3 %vm363_vm3, %v1910_v18  ;;  %2949 = vmatpush.xpose.msk.msra.mxu0 %vm363_vm3, %v1951_v15 }
 0x97b   :  { %2936 = vmatmul.msk.f32.gmra.mxu3 %vm363_vm3, %v3915_v8 }
 0x97f   :  { %v1949_v19 = vpop.permute.xlu1 %1948 }
 0x980   :  { %2950 = vmatpush.xpose.msk.msra.mxu0 %vm363_vm3, %v1949_v19 }
 0x983   :  { %2947 = vmatmul.msk.f32.vlgmr.msra.gmra.mxu3 %vm363_vm3, %v1906_v20 }
 0x987   :  { %v1945_v21 = vpop.permute.xlu1 %1944 }
 0x98b   :  { %2948 = vmatmul.msk.f32.gmra.mxu3 %vm363_vm3, %v1908_v60 }
 0x98f   :  { %v1947_v4 = vpop.permute.xlu1 %1946 }
 0x997   :  { %v3067_v24 = vpop.permute.xlu1 %3066 }
 0x998   :  { %v3068_v28 = vunpack.i.l.bf16 %v3067_v24  ;;  %v3069_v26 = vunpack.i.h.bf16 %v3067_v24  ;;  %v1607_v24 = vld [vmem:[#allocation8 + $0x20] sm:$0xff] }
 0x999   :  { %1887 = vmatpush.msra.mxu2 %v1607_v24 }
 0x99a   :  { %1791 = vmatpush.msrb.mxu1 %v3068_v28 }
 0x99c   :  { %1792 = vmatpush.msrb.mxu1 %v3069_v26 }
 0x99f   :  { %v3072_v6 = vpop.permute.xlu1 %3071 }
 0x9a0   :  { %v3073_v63 = vunpack.i.l.bf16 %v3072_v6  ;;  %v3074_v7 = vunpack.i.h.bf16 %v3072_v6 }
 0x9a2   :  { %2045 = vmatpush.msra.mxu1 %v3073_v63 }
 0x9a4   :  { %2046 = vmatpush.msra.mxu1 %v3074_v7 }
 0x9a7   :  { %v2195_v22 = vpop.permute.xlu1 %2194 }
 0x9af   :  { %v1651_v31 = vpop.f32.mrf.mxu3  ;;  %v2197_v19 = vpop.permute.xlu1 %2196 }
 0x9b0   :  { %v1694_v32 = vsel %vm120_vm0, %v1651_v31, -inf }
 0x9b1   :  { %1695 = vmax.xlane.f32.xlu0 %v1694_v32 }
 0x9b7   :  { %v1654_v33 = vpop.f32.mrf.mxu3 }
 0x9b8   :  { %v1697_v35 = vsel %vm120_vm0, %v1654_v33, -inf }
 0x9b9   :  { %1698 = vmax.xlane.f32.xlu2 %v1697_v35 }
 0x9f6   :  { %v1688_v36 = vpop.f32.mrf.mxu3 }
 0x9f7   :  { %v1700_v37 = vsel %vm120_vm0, %v1688_v36, -inf }
 0x9f8   :  { %1701 = vmax.xlane.f32.xlu0 %v1700_v37 }
 0x9fe   :  { %v1691_v40 = vpop.f32.mrf.mxu3 }
 0x9ff   :  { %v1703_v42 = vsel %vm120_vm0, %v1691_v40, -inf }
 0xa00   :  { %1704 = vmax.xlane.f32.xlu2 %v1703_v42 }
 0xa06   :  { %v1938_v45 = vpop.f32.mrf.mxu3 }
 0xa07   :  { %v1983_v46 = vsel %vm120_vm0, %v1938_v45, -inf }
 0xa08   :  { %1984 = vmax.xlane.f32.xlu0 %v1983_v46 }
 0xa0e   :  { %v1941_v47 = vpop.f32.mrf.mxu3 }
 0xa0f   :  { %v1986_v48 = vsel %vm120_vm0, %v1941_v47, -inf }
 0xa10   :  { %1987 = vmax.xlane.f32.xlu2 %v1986_v48 }
 0xa1c   :  { %2200 = vrot.lane.b32.xlu0 %v3897_v5, %s3413_s17 }
 0xa24   :  { %v1696_v49 = vpop.xlane.xlu0 %1695 }
 0xa25   :  { %v1706_v50 = vsub.f32 %v1651_v31, %v1696_v49 }
 0xa27   :  { %v1710_v23 = vmul.f32 1.442695, %v1706_v50 }
 0xa28   :  { %2198 = vrot.lane.b32.xlu2 %v3893_v34, %s3413_s17 }
 0xa29   :  { %3186 = vpow2.f32 %v1710_v23 }
 0xa2c   :  { %v1699_v52 = vpop.xlane.xlu2 %1698 }
 0xa2d   :  { %v1707_v56 = vsub.f32 %v1654_v33, %v1699_v52 }
 0xa2f   :  { %v3187_v43 = vpop.eup %3186  ;;  %v1712_v38 = vmul.f32 1.442695, %v1707_v56 }
 0xa30   :  { %2937 = vmatmul.msk.f32.vlgmr.msrb.gmra.mxu0 %vm120_vm0, %v3187_v43  ;;  %3076 = vrot.lane.b32.xlu2 %v3933_v12, %s3415_s19  ;;  %v1718_v55 = vsel %vm120_vm0, %v3187_v43, 0.0 }
 0xa31   :  { %3188 = vpow2.f32 %v1712_v38 }
 0xa37   :  { %v3189_v54 = vpop.eup %3188 }
 0xa38   :  { %2938 = vmatmul.msk.f32.gmra.mxu0 %vm120_vm0, %v3189_v54  ;;  %v1721_v63 = vsel %vm120_vm0, %v3189_v54, 0.0 }
 0xa40   :  { %2951 = vmatmul.msk.f32.vlgmr.msra.gmra.mxu0 %vm363_vm3, %v1945_v21 }
 0xa48   :  { %2952 = vmatmul.msk.f32.gmra.mxu0 %vm363_vm3, %v1947_v4 }
 0xa59   :  { %1719 = vadd.xlane.f32.xlu2 %v1718_v55 }
 0xa6b   :  { %v1702_v9 = vpop.xlane.xlu0 %1701 }
 0xa6c   :  { %v1708_v57 = vsub.f32 %v1688_v36, %v1702_v9 }
 0xa6e   :  { %v1714_v51 = vmul.f32 1.442695, %v1708_v57 }
 0xa70   :  { %3190 = vpow2.f32 %v1714_v51 }
 0xa73   :  { %v1705_v27 = vpop.xlane.xlu2 %1704 }
 0xa74   :  { %v1709_v11 = vsub.f32 %v1691_v40, %v1705_v27 }
 0xa76   :  { %v3191_v13 = vpop.eup %3190  ;;  %v1716_v0 = vmul.f32 1.442695, %v1709_v11 }
 0xa77   :  { %2939 = vmatmul.msk.f32.vlgmr.msrb.gmra.mxu1 %vm120_vm0, %v3191_v13  ;;  %v1724_v31 = vsel %vm120_vm0, %v3191_v13, 0.0 }
 0xa78   :  { %3192 = vpow2.f32 %v1716_v0 }
 0xa7b   :  { %v1985_v25 = vpop.xlane.xlu0 %1984 }
 0xa7c   :  { %v1995_v29 = vsub.f32 %v1938_v45, %v1985_v25  ;;  %v1608_v25 = vld [vmem:[#allocation8 + $0x28] sm:$0xff] }
 0xa7d   :  { %2176 = vmatpush.msrb.mxu0 %v1608_v25 }
 0xa7e   :  { %v3193_v2 = vpop.eup %3192  ;;  %v1999_v41 = vmul.f32 1.442695, %v1995_v29 }
 0xa7f   :  { %2940 = vmatmul.msk.f32.gmra.mxu1 %vm120_vm0, %v3193_v2  ;;  %v1727_v32 = vsel %vm120_vm0, %v3193_v2, 0.0 }
 0xa80   :  { %3194 = vpow2.f32 %v1999_v41 }
 0xa83   :  { %v1988_v3 = vpop.xlane.xlu2 %1987 }
 0xa84   :  { %v1996_v10 = vsub.f32 %v1941_v47, %v1988_v3 }
 0xa86   :  { %v3195_v14 = vpop.eup %3194  ;;  %v2001_v30 = vmul.f32 1.442695, %v1996_v10 }
 0xa87   :  { %2953 = vmatmul.msk.f32.vlgmr.msra.gmra.mxu1 %vm120_vm0, %v3195_v14  ;;  %v2007_v37 = vsel %vm120_vm0, %v3195_v14, 0.0 }
 0xa88   :  { %3196 = vpow2.f32 %v2001_v30 }
 0xa8b   :  { %v2199_v60 = vpop.permute.xlu2 %2198 }
 0xa8e   :  { %v3197_v17 = vpop.eup %3196  ;;  %v2201_v61 = vpop.permute.xlu0 %2200 }
 0xa8f   :  { %2954 = vmatmul.msk.f32.gmra.mxu1 %vm120_vm0, %v3197_v17  ;;  %v2010_v16 = vsel %vm120_vm0, %v3197_v17, 0.0 }
 0xa90   :  { %2961 = vmatpush.xpose.msk.msrb.mxu1 %vm363_vm3, %v2201_v61  ;;  %2011 = vadd.xlane.f32.xlu2 %v2010_v16 }
 0xa93   :  { %v3077_v62 = vpop.permute.xlu2 %3076 }
 0xa94   :  { %2962 = vmatpush.xpose.msk.msrb.mxu1 %vm363_vm3, %v2199_v60  ;;  %v3078_v18 = vunpack.i.l.bf16 %v3077_v62  ;;  %v3079_v15 = vunpack.i.h.bf16 %v3077_v62 }
 0xa96   :  { %2080 = vmatpush.msrb.mxu3 %v3078_v18 }
 0xa97   :  { %2963 = vmatmul.msk.f32.vlgmr.msrb.gmra.mxu1 %vm363_vm3, %v2195_v22 }
 0xa98   :  { %2081 = vmatpush.msrb.mxu3 %v3079_v15 }
 0xa9f   :  { %2964 = vmatmul.msk.f32.gmra.mxu1 %vm363_vm3, %v2197_v19 }
 0xaa8   :  { %2237 = vrot.lane.b32.xlu2 %v3911_v1, %s3413_s17 }
 0xaad   :  { %v1759_v20 = vpop.f32.mrf.mxu0 }
 0xab5   :  { %v3989_v21 = vpop.f32.mrf.mxu0 }
 0xabd   :  { %v1977_v4 = vpop.f32.mrf.mxu0 }
 0xabe   :  { %v1989_v28 = vsel %vm120_vm0, %v1977_v4, -inf }
 0xabf   :  { %1990 = vmax.xlane.f32.xlu0 %v1989_v28 }
 0xac5   :  { %v1980_v26 = vpop.f32.mrf.mxu0 }
 0xac6   :  { %v1992_v6 = vsel %vm120_vm0, %v1980_v26, -inf }
 0xac7   :  { %1993 = vmax.xlane.f32.xlu1 %v1992_v6  ;;  %1722 = vadd.xlane.f32.xlu0 %v1721_v63 }
 0xacc   :  { %v1720_v7 = vpop.xlane.xlu2 %1719 }
 0xacd   :  { %3198 = vrcp.f32 %v1720_v7  ;;  %v1811_v40 = vand.u32 2147483648, %v1720_v7  ;;  %v1809_v45 = vand.u32 2147483647, %v1720_v7  ;;  %vm1805_vm4 = vweird.f32 %v1720_v7 }
 0xacf   :  { %1725 = vadd.xlane.f32.xlu1 %v1724_v31  ;;  %1728 = vadd.xlane.f32.xlu0 %v1727_v32  ;;  %v1812_v47 = vor.u32 1.1754944e-38, %v1811_v40  ;;  %vm1810_vm7 = vcmp.eq.f32.partialorder %v1809_v45, 8.507059e+37 }
 0xad3   :  { %v3199_v33 = vpop.eup %3198 }
 0xad4   :  { %v1801_v35 = vmul.f32 %v3199_v33, %v1720_v7  ;;  %vm1806_vm2 = vweird.f32 %v3199_v33 }
 0xad5   :  { %vm1807_vm6 = vmor %vm1805_vm4, %vm1806_vm2 }
 0xad6   :  { %v1802_v36 = vsub.f32 1.0, %v1801_v35 }
 0xad7   :  { %2008 = vadd.xlane.f32.xlu1 %v2007_v37 }
 0xad8   :  { %v1803_v42 = vmul.f32 %v3199_v33, %v1802_v36 }
 0xada   :  { %v1804_v46 = vadd.f32 %v3199_v33, %v1803_v42 }
 0xadc   :  { %v1808_v48 = vsel %vm1807_vm6, %v3199_v33, %v1804_v46 }
 0xadd   :  { %v1813_v49 = vsel %vm1810_vm7, %v1812_v47, %v1808_v48 }
 0xade   :  { %v1814_v50 = vmul.f32 %v1813_v49, %v1759_v20 }
 0xae0   :  { %2941 = vmatmul.msk.f32.vlgmr.msra.gmra.mxu2 %vm363_vm3, %v1814_v50 }
 0xae3   :  { %3081 = vrot.lane.b32.xlu0 %v3907_v53, %s3418_s22 }
 0xaf0   :  { %2239 = vrot.lane.b32.xlu1 %v3915_v8, %s3413_s17 }
 0xaf4   :  { %v4002_v23 = vpop.f32.mrf.mxu1 }
 0xaf8   :  { %2233 = vrot.lane.b32.xlu1 %v3911_v1, %s3414_s18 }
 0xafc   :  { %v4006_v52 = vpop.f32.mrf.mxu1 }
 0xb03   :  { %v4026_v3 = vpop.xlane.xlu2 %2011 }
 0xb04   :  { %v4008_v56 = vpop.f32.mrf.mxu1 }
 0xb0c   :  { %v4010_v43 = vpop.f32.mrf.mxu1 }
 0xb14   :  { %v4012_v38 = vpop.f32.mrf.mxu1 }
 0xb15   :  { %v2272_v54 = vsel %vm120_vm0, %v4012_v38, -inf }
 0xb16   :  { %2273 = vmax.xlane.f32.xlu0 %v2272_v54 }
 0xb1c   :  { %v4016_v55 = vpop.f32.mrf.mxu1 }
 0xb1d   :  { %v2275_v9 = vsel %vm120_vm0, %v4016_v55, -inf }
 0xb1e   :  { %2276 = vmax.xlane.f32.xlu0 %v2275_v9 }
 0xb32   :  { %v1991_v57 = vpop.xlane.xlu0 %1990  ;;  %2235 = vrot.lane.b32.xlu0 %v3915_v8, %s3414_s18 }
 0xb33   :  { %v1997_v51 = vsub.f32 %v1977_v4, %v1991_v57 }
 0xb35   :  { %v2003_v27 = vmul.f32 1.442695, %v1997_v51 }
 0xb37   :  { %3200 = vpow2.f32 %v2003_v27 }
 0xb3a   :  { %v1994_v11 = vpop.xlane.xlu1 %1993  ;;  %v1723_v13 = vpop.xlane.xlu0 %1722  ;;  %2487 = vrot.lane.b32.xlu0 %v3893_v34, %s3416_s20 }
 0xb3b   :  { %v1998_v0 = vsub.f32 %v1980_v26, %v1994_v11  ;;  %3202 = vrcp.f32 %v1723_v13  ;;  %v1826_v62 = vand.u32 2147483648, %v1723_v13  ;;  %v1824_v18 = vand.u32 2147483647, %v1723_v13 }
 0xb3c   :  { %vm1820_vm9 = vweird.f32 %v1723_v13 }
 0xb3d   :  { %v3201_v29 = vpop.eup %3200  ;;  %v2005_v2 = vmul.f32 1.442695, %v1998_v0  ;;  %v1827_v24 = vor.u32 1.1754944e-38, %v1826_v62  ;;  %vm1825_vm11 = vcmp.eq.f32.partialorder %v1824_v18, 8.507059e+37 }
 0xb3e   :  { %2955 = vmatmul.msk.f32.vlgmr.msrb.gmra.mxu3 %vm120_vm0, %v3201_v29  ;;  %v2013_v41 = vsel %vm120_vm0, %v3201_v29, 0.0 }
 0xb3f   :  { %3204 = vpow2.f32 %v2005_v2  ;;  %2014 = vadd.xlane.f32.xlu2 %v2013_v41 }
 0xb40   :  { %3206 = vrcp.f32 %v4026_v3 }
 0xb41   :  { %v3203_v10 = vpop.eup %3202 }
 0xb42   :  { %v1816_v14 = vmul.f32 %v3203_v10, %v1723_v13  ;;  %v1726_v30 = vpop.xlane.xlu1 %1725  ;;  %v4029_v60 = vpop.xlane.xlu0 %1728  ;;  %2485 = vrot.lane.b32.xlu0 %v3897_v5, %s3417_s21  ;;  %vm1821_vm8 = vweird.f32 %v3203_v10 }
 0xb43   :  { %3208 = vrcp.f32 %v1726_v30  ;;  %vm1822_vm10 = vmor %vm1820_vm9, %vm1821_vm8  ;;  %v1841_v33 = vand.u32 2147483648, %v1726_v30  ;;  %v1839_v40 = vand.u32 2147483647, %v1726_v30  ;;  %vm1835_vm13 = vweird.f32 %v1726_v30 }
 0xb44   :  { %v1817_v17 = vsub.f32 1.0, %v1816_v14  ;;  %3210 = vrcp.f32 %v4029_v60  ;;  %v1856_v9 = vand.u32 2147483648, %v4029_v60  ;;  %vm1850_vm2 = vweird.f32 %v4029_v60 }
 0xb45   :  { %v3205_v61 = vpop.eup %3204  ;;  %v1842_v48 = vor.u32 1.1754944e-38, %v1841_v33  ;;  %vm1840_vm15 = vcmp.eq.f32.partialorder %v1839_v40, 8.507059e+37  ;;  %v1854_v0 = vand.u32 2147483647, %v4029_v60 }
 0xb46   :  { %v1818_v16 = vmul.f32 %v3203_v10, %v1817_v17  ;;  %2956 = vmatmul.msk.f32.gmra.mxu3 %vm120_vm0, %v3205_v61  ;;  %v2016_v22 = vsel %vm120_vm0, %v3205_v61, 0.0  ;;  %v4036_v15 = vpop.eup %3206 }
 0xb47   :  { %2017 = vadd.xlane.f32.xlu1 %v2016_v22  ;;  %v2105_v32 = vmul.f32 %v4036_v15, %v4026_v3  ;;  %vm2110_vm8 = vweird.f32 %v4036_v15  ;;  %v2113_v22 = vand.u32 2147483647, %v4026_v3 }
 0xb48   :  { %v1819_v19 = vadd.f32 %v3203_v10, %v1818_v16  ;;  %v2115_v16 = vand.u32 2147483648, %v4026_v3 }
 0xb49   :  { %v3209_v20 = vpop.eup %3208  ;;  %v2106_v47 = vsub.f32 1.0, %v2105_v32 }
 0xb4a   :  { %v4038_v4 = vpop.eup %3210  ;;  %v1831_v28 = vmul.f32 %v3209_v20, %v1726_v30  ;;  %v2009_v26 = vpop.xlane.xlu1 %2008  ;;  %2526 = vrot.lane.b32.xlu0 %v3911_v1, %s3416_s20  ;;  %v1823_v6 = vsel %vm1822_vm10, %v3203_v10, %v1819_v19  ;;  %vm1836_vm12 = vweird.f32 %v3209_v20  ;;  %v1857_v10 = vor.u32 1.1754944e-38, %v1856_v9 }
 0xb4b   :  { %v1846_v63 = vmul.f32 %v4038_v4, %v4029_v60  ;;  %3212 = vrcp.f32 %v2009_v26  ;;  %v1828_v31 = vsel %vm1825_vm11, %v1827_v24, %v1823_v6  ;;  %vm1837_vm14 = vmor %vm1835_vm13, %vm1836_vm12  ;;  %vm1851_vm1 = vweird.f32 %v4038_v4 }
 0xb4c   :  { %v1832_v7 = vsub.f32 1.0, %v1831_v28  ;;  %v1829_v36 = vmul.f32 %v1828_v31, %v3989_v21  ;;  %v2107_v27 = vmul.f32 %v4036_v15, %v2106_v47  ;;  %v2100_v11 = vand.u32 2147483648, %v2009_v26  ;;  %vm4058_vm6 = vmor %vm1850_vm2, %vm1851_vm1 }
 0xb4d   :  { %v1847_v35 = vsub.f32 1.0, %v1846_v63  ;;  %v2098_v29 = vand.u32 2147483647, %v2009_v26  ;;  %vm2094_vm7 = vweird.f32 %v2009_v26  ;;  %vm1855_vm10 = vcmp.eq.f32.partialorder %v1854_v0, 8.507059e+37 }
 0xb4e   :  { %v1833_v37 = vmul.f32 %v3209_v20, %v1832_v7  ;;  %2942 = vmatmul.msk.f32.gmra.mxu2 %vm363_vm3, %v1829_v36  ;;  %v2101_v60 = vor.u32 1.1754944e-38, %v2100_v11  ;;  %v2108_v17 = vadd.f32 %v4036_v15, %v2107_v27  ;;  %vm2109_vm12 = vweird.f32 %v4026_v3 }
 0xb4f   :  { %v1848_v42 = vmul.f32 %v4038_v4, %v1847_v35  ;;  %vm2099_vm11 = vcmp.eq.f32.partialorder %v2098_v29, 8.507059e+37  ;;  %vm2111_vm13 = vmor %vm2109_vm12, %vm2110_vm8 }
 0xb50   :  { %v1834_v45 = vadd.f32 %v3209_v20, %v1833_v37 }
 0xb51   :  { %v3213_v46 = vpop.eup %3212  ;;  %v1849_v54 = vadd.f32 %v4038_v4, %v1848_v42 }
 0xb52   :  { %v2090_v49 = vmul.f32 %v3213_v46, %v2009_v26  ;;  %2524 = vrot.lane.b32.xlu0 %v3915_v8, %s3417_s21  ;;  %v1838_v50 = vsel %vm1837_vm14, %v3209_v20, %v1834_v45  ;;  %vm2095_vm4 = vweird.f32 %v3213_v46  ;;  %v2112_v20 = vsel %vm2111_vm13, %v4036_v15, %v2108_v17 }
 0xb53   :  { %v1843_v21 = vsel %vm1840_vm15, %v1842_v48, %v1838_v50  ;;  %vm2096_vm9 = vmor %vm2094_vm7, %vm2095_vm4  ;;  %vm2114_vm14 = vcmp.eq.f32.partialorder %v2113_v22, 8.507059e+37 }
 0xb54   :  { %v2091_v57 = vsub.f32 1.0, %v2090_v49  ;;  %v1844_v51 = vmul.f32 %v1843_v21, %v4002_v23  ;;  %v1853_v23 = vsel %vm4058_vm6, %v4038_v4, %v1849_v54  ;;  %v2116_v4 = vor.u32 1.1754944e-38, %v2115_v16 }
 0xb55   :  { %v3082_v13 = vpop.permute.xlu0 %3081 }
 0xb56   :  { %v2092_v25 = vmul.f32 %v3213_v46, %v2091_v57  ;;  %v3083_v2 = vunpack.i.l.bf16 %v3082_v13  ;;  %2943 = vmatmul.msk.f32.gmra.mxu2 %vm363_vm3, %v1844_v51  ;;  %v3084_v30 = vunpack.i.h.bf16 %v3082_v13  ;;  %v2117_v3 = vsel %vm2114_vm14, %v2116_v4, %v2112_v20 }
 0xb57   :  { %2489 = vrot.lane.b32.xlu2 %v3897_v5, %s3416_s20  ;;  %v1858_v5 = vsel %vm1855_vm10, %v1857_v10, %v1853_v23 }
 0xb58   :  { %v2093_v14 = vadd.f32 %v3213_v46, %v2092_v25  ;;  %2334 = vmatpush.msra.mxu3 %v3083_v2  ;;  %v1859_v19 = vmul.f32 %v1858_v5, %v4006_v52  ;;  %v2118_v52 = vmul.f32 %v2117_v3, %v4010_v43 }
 0xb5a   :  { %v2097_v61 = vsel %vm2096_vm9, %v3213_v46, %v2093_v14  ;;  %2335 = vmatpush.msra.mxu3 %v3084_v30 }
 0xb5b   :  { %v2102_v62 = vsel %vm2099_vm11, %v2101_v60, %v2097_v61  ;;  %v3105_v60 = vld [vmem:[%s4202_s8 + $0x1] ss:$0 sm:$0xff]  ;;  %s3420_s8 = smov [#allocation11]  }
 0xb5c   :  { %v2103_v18 = vmul.f32 %v2102_v62, %v4008_v56  ;;  %v2238_v56 = vpop.permute.xlu2 %2237  ;;  %v1617_v17 = vadd.f32 %v3105_v60, %v3878_v59  ;;  %v1618_v20 = vadd.f32 %v3105_v60, %v3882_v39  ;;  %s2826_s27 = sshll.u32 %s3420_s8, 4  ;;  %s2827_s27 = int_to_ptr.vmem [resolvable:$true] %s2826_s27 }
 0xb5e   :  { %2957 = vmatmul.msk.f32.vlgmr.msrb.gmra.mxu0 %vm363_vm3, %v2103_v18  ;;  %2944 = vmatmul.msk.f32.gmra.mxu2 %vm363_vm3, %v1859_v19  ;;  %v1616_v19 = vadd.f32 %v3105_v60, %v3874_v58 }
 0xb5f   :  { %2483 = vrot.lane.b32.xlu2 %v3893_v34, %s3417_s21 }
 0xb60   :  { %3086 = vrot.lane.b32.xlu1 %v3933_v12, %s3418_s22 }
 0xb62   :  { %v2240_v24 = vpop.permute.xlu1 %2239 }
 0xb63   :  { %2965 = vmatpush.xpose.msk.msrb.mxu2 %vm363_vm3, %v2240_v24  ;;  %v1889_v29 = vpop.f32.mrf.mxu2 }
 0xb64   :  { %v1901_v4 = vadd.f32 %v1889_v29, %v1616_v19 }
 0xb66   :  { %2958 = vmatmul.msk.f32.gmra.mxu0 %vm363_vm3, %v2118_v52 }
 0xb67   :  { %2528 = vrot.lane.b32.xlu2 %v3915_v8, %s3416_s20  ;;  %2966 = vmatpush.xpose.msk.msrb.mxu2 %vm363_vm3, %v2238_v56 }
 0xb6a   :  { %v2234_v15 = vpop.permute.xlu1 %2233 }
 0xb6b   :  { %2967 = vmatmul.msk.f32.vlgmr.msrb.gmra.mxu2 %vm363_vm3, %v2234_v15  ;;  %v1619_v15 = vadd.f32 %v3105_v60, %v3886_v44 }
 0xb6f   :  { %2522 = vrot.lane.b32.xlu2 %v3911_v1, %s3417_s21 }
 0xb89   :  { %v2274_v34 = vpop.xlane.xlu0 %2273 }
 0xb8a   :  { %v2284_v28 = vsub.f32 %v4012_v38, %v2274_v34 }
 0xb8c   :  { %v2288_v26 = vmul.f32 1.442695, %v2284_v28 }
 0xb8e   :  { %3214 = vpow2.f32 %v2288_v26 }
 0xb91   :  { %v2277_v43 = vpop.xlane.xlu0 %2276 }
 0xb92   :  { %v2285_v6 = vsub.f32 %v4016_v55, %v2277_v43 }
 0xb94   :  { %v4093_v63 = vpop.eup %3214  ;;  %v2290_v7 = vmul.f32 1.442695, %v2285_v6 }
 0xb95   :  { %2969 = vmatmul.msk.f32.vlgmr.msra.gmra.mxu3 %vm120_vm0, %v4093_v63 }
 0xb96   :  { %3216 = vpow2.f32 %v2290_v7 }
 0xb9c   :  { %v4097_v8 = vpop.eup %3216 }
 0xb9d   :  { %2970 = vmatmul.msk.f32.gmra.mxu3 %vm120_vm0, %v4097_v8 }
 0xba4   :  { %v2236_v1 = vpop.permute.xlu0 %2235 }
 0xba5   :  { %2968 = vmatmul.msk.f32.gmra.mxu2 %vm363_vm3, %v2236_v1 }
 0xbac   :  { %v2488_v32 = vpop.permute.xlu0 %2487 }
 0xbb2   :  { %v2015_v38 = vpop.xlane.xlu2 %2014 }
 0xbb3   :  { %3218 = vrcp.f32 %v2015_v38  ;;  %v2130_v37 = vand.u32 2147483648, %v2015_v38  ;;  %v2128_v42 = vand.u32 2147483647, %v2015_v38  ;;  %vm2124_vm1 = vweird.f32 %v2015_v38 }
 0xbb4   :  { %v2486_v9 = vpop.permute.xlu0 %2485 }
 0xbb5   :  { %v2131_v48 = vor.u32 1.1754944e-38, %v2130_v37  ;;  %vm2129_vm4 = vcmp.eq.f32.partialorder %v2128_v42, 8.507059e+37 }
 0xbb9   :  { %v3219_v31 = vpop.eup %3218 }
 0xbba   :  { %v2120_v55 = vmul.f32 %v3219_v31, %v2015_v38  ;;  %v2018_v33 = vpop.xlane.xlu1 %2017  ;;  %v2490_v35 = vpop.permute.xlu2 %2489  ;;  %vm2125_vm15 = vweird.f32 %v3219_v31 }
 0xbbb   :  { %3220 = vrcp.f32 %v2018_v33  ;;  %2977 = vmatpush.xpose.msk.msrb.mxu3 %vm363_vm3, %v2490_v35  ;;  %vm2126_vm2 = vmor %vm2124_vm1, %vm2125_vm15  ;;  %v2145_v27 = vand.u32 2147483648, %v2018_v33  ;;  %v2143_v13 = vand.u32 2147483647, %v2018_v33  ;;  %vm2139_vm7 = vweird.f32 %v2018_v33 }
 0xbbc   :  { %v2121_v36 = vsub.f32 1.0, %v2120_v55  ;;  %v2527_v30 = vpop.permute.xlu0 %2526 }
 0xbbd   :  { %v2146_v25 = vor.u32 1.1754944e-38, %v2145_v27  ;;  %vm2144_vm9 = vcmp.eq.f32.partialorder %v2143_v13, 8.507059e+37 }
 0xbbe   :  { %v2122_v40 = vmul.f32 %v3219_v31, %v2121_v36  ;;  %v2299_v36 = vsel %vm120_vm0, %v4097_v8, 0.0 }
 0xbbf   :  { %2978 = vmatpush.xpose.msk.msrb.mxu3 %vm363_vm3, %v2488_v32 }
 0xbc0   :  { %v2123_v45 = vadd.f32 %v3219_v31, %v2122_v40 }
 0xbc1   :  { %v3221_v46 = vpop.eup %3220  ;;  %v2083_v47 = vpop.f32.mrf.mxu3 }
 0xbc2   :  { %v2135_v49 = vmul.f32 %v3221_v46, %v2018_v33  ;;  %v2127_v50 = vsel %vm2126_vm2, %v3219_v31, %v2123_v45  ;;  %v2484_v21 = vpop.permute.xlu2 %2483  ;;  %vm2140_vm6 = vweird.f32 %v3221_v46 }
 0xbc3   :  { %v2132_v54 = vsel %vm2129_vm4, %v2131_v48, %v2127_v50  ;;  %2979 = vmatmul.msk.f32.vlgmr.msrb.gmra.mxu3 %vm363_vm3, %v2484_v21  ;;  %vm2141_vm8 = vmor %vm2139_vm7, %vm2140_vm6 }
 0xbc4   :  { %v2136_v57 = vsub.f32 1.0, %v2135_v49  ;;  %v2133_v51 = vmul.f32 %v2132_v54, %v2083_v47  ;;  %v2525_v56 = vpop.permute.xlu0 %2524  ;;  %v2296_v49 = vsel %vm120_vm0, %v4093_v63, 0.0 }
 0xbc6   :  { %2959 = vmatmul.msk.f32.gmra.mxu0 %vm363_vm3, %v2133_v51  ;;  %v2137_v11 = vmul.f32 %v3221_v46, %v2136_v57 }
 0xbc8   :  { %v2138_v0 = vadd.f32 %v3221_v46, %v2137_v11 }
 0xbc9   :  { %v2086_v23 = vpop.f32.mrf.mxu3 }
 0xbca   :  { %v2142_v2 = vsel %vm2141_vm8, %v3221_v46, %v2138_v0  ;;  %v2529_v41 = vpop.permute.xlu2 %2528 }
 0xbcb   :  { %v2147_v10 = vsel %vm2144_vm9, %v2146_v25, %v2142_v2  ;;  %2980 = vmatmul.msk.f32.gmra.mxu3 %vm363_vm3, %v2486_v9  ;;  %2981 = vmatpush.xpose.msk.msra.mxu0 %vm363_vm3, %v2529_v41 }
 0xbcc   :  { %v2148_v14 = vmul.f32 %v2147_v10, %v2086_v23 }
 0xbce   :  { %2960 = vmatmul.msk.f32.gmra.mxu0 %vm363_vm3, %v2148_v14 }
 0xbcf   :  { %2982 = vmatpush.xpose.msk.msra.mxu0 %vm363_vm3, %v2527_v30 }
 0xbd1   :  { %v1892_v61 = vpop.f32.mrf.mxu2 }
 0xbd2   :  { %v3087_v5 = vpop.permute.xlu1 %3086  ;;  %v4114_v16 = vadd.f32 %v1892_v61, %v1617_v17  ;;  %v2523_v18 = vpop.permute.xlu2 %2522  ;;  %v1609_v17 = vld [vmem:[#allocation8 + $0x30] sm:$0xff] }
 0xbd3   :  { %v3088_v62 = vunpack.i.l.bf16 %v3087_v5  ;;  %v3089_v22 = vunpack.i.h.bf16 %v3087_v5  ;;  %2465 = vmatpush.msra.mxu2 %v1609_v17 }
 0xbd5   :  { %2369 = vmatpush.msra.mxu1 %v3088_v62 }
 0xbd6   :  { %2983 = vmatmul.msk.f32.vlgmr.msra.gmra.mxu0 %vm363_vm3, %v2523_v18 }
 0xbd7   :  { %2370 = vmatpush.msra.mxu1 %v3089_v22 }
 0xbd9   :  { %v1895_v3 = vpop.f32.mrf.mxu2 }
 0xbda   :  { %v1903_v24 = vadd.f32 %v1895_v3, %v1618_v20 }
 0xbdb   :  { %v2178_v52 = vpop.f32.mrf.mxu0 }
 0xbdc   :  { %v4119_v59 = vadd.f32 %v2178_v52, %v1901_v4 }
 0xbde   :  { %2984 = vmatmul.msk.f32.gmra.mxu0 %vm363_vm3, %v2525_v56 }
 0xbe1   :  { %v1898_v34 = vpop.f32.mrf.mxu2 }
 0xbe2   :  { %v1904_v28 = vadd.f32 %v1898_v34, %v1619_v15 }
 0xbe3   :  { %v4127_v7 = vpop.f32.mrf.mxu0 }
 0xbee   :  { %v2266_v26 = vpop.f32.mrf.mxu2 }
 0xbef   :  { %v2278_v43 = vsel %vm120_vm0, %v2266_v26, -inf }
 0xbf0   :  { %2279 = vmax.xlane.f32.xlu2 %v2278_v43 }
 0xc18   :  { %v4125_v6 = vpop.f32.mrf.mxu3 }
 0xc20   :  { %v4129_v1 = vpop.f32.mrf.mxu3 }
 0xc28   :  { %v2269_v58 = vpop.f32.mrf.mxu2 }
 0xc29   :  { %v2281_v39 = vsel %vm120_vm0, %v2269_v58, -inf }
 0xc2a   :  { %2282 = vmax.xlane.f32.xlu0 %v2281_v39 }
 0xc3e   :  { %3091 = vrot.lane.b32.xlu0 %v3907_v53, %s3419_s23 }
 0xc43   :  { %v2184_v44 = vpop.f32.mrf.mxu0 }
 0xc44   :  { %v4133_v38 = vadd.f32 %v2184_v44, %v1903_v24 }
 0xc46   :  { %v2516_v31 = vpop.f32.mrf.mxu3 }
 0xc47   :  { %v2561_v32 = vsel %vm120_vm0, %v2516_v31, -inf }
 0xc48   :  { %2562 = vmax.xlane.f32.xlu1 %v2561_v32 }
 0xc4b   :  { %v2187_v55 = vpop.f32.mrf.mxu0 }
 0xc4c   :  { %v4136_v33 = vadd.f32 %v2187_v55, %v1904_v28 }
 0xc4e   :  { %v2519_v35 = vpop.f32.mrf.mxu3 }
 0xc4f   :  { %v2564_v37 = vsel %vm120_vm0, %v2519_v35, -inf }
 0xc50   :  { %2300 = vadd.xlane.f32.xlu1 %v2299_v36  ;;  %2565 = vmax.xlane.f32.xlu2 %v2564_v37 }
 0xc53   :  { %v2555_v40 = vpop.f32.mrf.mxu0 }
 0xc54   :  { %v2567_v53 = vsel %vm120_vm0, %v2555_v40, -inf }
 0xc58   :  { %2568 = vmax.xlane.f32.xlu2 %v2567_v53 }
 0xc5b   :  { %v2558_v42 = vpop.f32.mrf.mxu0 }
 0xc5c   :  { %v2570_v45 = vsel %vm120_vm0, %v2558_v42, -inf }
 0xc60   :  { %2571 = vmax.xlane.f32.xlu2 %v2570_v45 }
 0xc63   :  { %v2280_v46 = vpop.xlane.xlu2 %2279 }
 0xc64   :  { %v2286_v47 = vsub.f32 %v2266_v26, %v2280_v46 }
 0xc66   :  { %v2292_v48 = vmul.f32 1.442695, %v2286_v47 }
 0xc68   :  { %3222 = vpow2.f32 %v2292_v48  ;;  %2297 = vadd.xlane.f32.xlu0 %v2296_v49 }
 0xc6e   :  { %v3223_v8 = vpop.eup %3222 }
 0xc6f   :  { %2971 = vmatmul.msk.f32.vlgmr.msra.gmra.mxu1 %vm120_vm0, %v3223_v8  ;;  %v2302_v50 = vsel %vm120_vm0, %v3223_v8, 0.0 }
 0xc70   :  { %2303 = vadd.xlane.f32.xlu1 %v2302_v50 }
 0xc78   :  { %3096 = vrot.lane.b32.xlu2 %v3933_v12, %s3419_s23 }
 0xc9d   :  { %v2283_v21 = vpop.xlane.xlu0 %2282 }
 0xc9e   :  { %v2287_v54 = vsub.f32 %v2269_v58, %v2283_v21 }
 0xca0   :  { %v2294_v9 = vmul.f32 1.442695, %v2287_v54 }
 0xca2   :  { %3224 = vpow2.f32 %v2294_v9 }
 0xca8   :  { %v3225_v57 = vpop.eup %3224 }
 0xca9   :  { %2972 = vmatmul.msk.f32.gmra.mxu1 %vm120_vm0, %v3225_v57  ;;  %v2305_v60 = vsel %vm120_vm0, %v3225_v57, 0.0 }
 0xcb0   :  { %v3092_v51 = vpop.permute.xlu0 %3091 }
 0xcb1   :  { %v3093_v63 = vunpack.i.l.bf16 %v3092_v51  ;;  %v3094_v27 = vunpack.i.h.bf16 %v3092_v51 }
 0xcb3   :  { %2623 = vmatpush.msrb.mxu1 %v3093_v63 }
 0xcb5   :  { %2624 = vmatpush.msrb.mxu1 %v3094_v27 }
 0xcbb   :  { %v2563_v11 = vpop.xlane.xlu1 %2562 }
 0xcbc   :  { %v2573_v13 = vsub.f32 %v2516_v31, %v2563_v11 }
 0xcbe   :  { %v2577_v0 = vmul.f32 1.442695, %v2573_v13 }
 0xcc0   :  { %3226 = vpow2.f32 %v2577_v0 }
 0xcc3   :  { %v2566_v25 = vpop.xlane.xlu2 %2565  ;;  %v2301_v5 = vpop.xlane.xlu1 %2300 }
 0xcc4   :  { %v2574_v29 = vsub.f32 %v2519_v35, %v2566_v25  ;;  %v2404_v46 = vand.u32 2147483648, %v2301_v5  ;;  %vm2398_vm15 = vweird.f32 %v2301_v5  ;;  %v2402_v48 = vand.u32 2147483647, %v2301_v5 }
 0xcc6   :  { %v3227_v2 = vpop.eup %3226  ;;  %v2579_v12 = vmul.f32 1.442695, %v2574_v29  ;;  %v2405_v54 = vor.u32 1.1754944e-38, %v2404_v46  ;;  %vm2403_vm2 = vcmp.eq.f32.partialorder %v2402_v48, 8.507059e+37  ;;  %v1610_v29 = vld [vmem:[#allocation8 + $0x38] sm:$0xff] }
 0xcc7   :  { %2985 = vmatmul.msk.f32.vlgmr.msrb.gmra.mxu1 %vm120_vm0, %v3227_v2  ;;  %v2585_v41 = vsel %vm120_vm0, %v3227_v2, 0.0  ;;  %2754 = vmatpush.msrb.mxu0 %v1610_v29 }
 0xcc8   :  { %2586 = vadd.xlane.f32.xlu1 %v2585_v41  ;;  %3228 = vpow2.f32 %v2579_v12 }
 0xccb   :  { %v2569_v23 = vpop.xlane.xlu2 %2568 }
 0xccc   :  { %v2575_v10 = vsub.f32 %v2555_v40, %v2569_v23 }
 0xcce   :  { %v2581_v14 = vmul.f32 1.442695, %v2575_v10  ;;  %v3229_v30 = vpop.eup %3228 }
 0xccf   :  { %2986 = vmatmul.msk.f32.gmra.mxu1 %vm120_vm0, %v3229_v30  ;;  %v2588_v61 = vsel %vm120_vm0, %v3229_v30, 0.0 }
 0xcd0   :  { %3230 = vpow2.f32 %v2581_v14  ;;  %2306 = vadd.xlane.f32.xlu1 %v2305_v60  ;;  %2589 = vadd.xlane.f32.xlu2 %v2588_v61 }
 0xcd1   :  { %3232 = vrcp.f32 %v2301_v5 }
 0xcd3   :  { %v2572_v62 = vpop.xlane.xlu2 %2571 }
 0xcd4   :  { %v2576_v22 = vsub.f32 %v2558_v42, %v2572_v62 }
 0xcd6   :  { %v3231_v18 = vpop.eup %3230  ;;  %v2583_v19 = vmul.f32 1.442695, %v2576_v22 }
 0xcd7   :  { %v2591_v20 = vsel %vm120_vm0, %v3231_v18, 0.0  ;;  %v3233_v24 = vpop.eup %3232 }
 0xcd8   :  { %3234 = vpow2.f32 %v2583_v19  ;;  %2592 = vadd.xlane.f32.xlu1 %v2591_v20  ;;  %v2394_v15 = vmul.f32 %v3233_v24, %v2301_v5  ;;  %vm2399_vm12 = vweird.f32 %v3233_v24 }
 0xcd9   :  { %vm2400_vm1 = vmor %vm2398_vm15, %vm2399_vm12 }
 0xcda   :  { %v2395_v43 = vsub.f32 1.0, %v2394_v15 }
 0xcdb   :  { %v2298_v4 = vpop.xlane.xlu0 %2297  ;;  %v3097_v3 = vpop.permute.xlu2 %3096 }
 0xcdc   :  { %3236 = vrcp.f32 %v2298_v4  ;;  %v3098_v52 = vunpack.i.l.bf16 %v3097_v3  ;;  %v3099_v34 = vunpack.i.h.bf16 %v3097_v3  ;;  %v2389_v31 = vand.u32 2147483648, %v2298_v4 }
 0xcdd   :  { %v2396_v32 = vmul.f32 %v3233_v24, %v2395_v43  ;;  %v2387_v35 = vand.u32 2147483647, %v2298_v4  ;;  %vm2383_vm11 = vweird.f32 %v2298_v4 }
 0xcde   :  { %v3235_v56 = vpop.eup %3234  ;;  %2658 = vmatpush.msra.mxu3 %v3098_v52  ;;  %v2390_v40 = vor.u32 1.1754944e-38, %v2389_v31 }
 0xcdf   :  { %v2594_v28 = vsel %vm120_vm0, %v3235_v56, 0.0  ;;  %v2397_v53 = vadd.f32 %v3233_v24, %v2396_v32  ;;  %vm2388_vm14 = vcmp.eq.f32.partialorder %v2387_v35, 8.507059e+37 }
 0xce0   :  { %2595 = vadd.xlane.f32.xlu0 %v2594_v28  ;;  %2659 = vmatpush.msra.mxu3 %v3099_v34 }
 0xce1   :  { %2987 = vmatmul.msk.f32.vlgmr.msra.gmra.mxu3 %vm120_vm0, %v3231_v18  ;;  %v2401_v21 = vsel %vm2400_vm1, %v3233_v24, %v2397_v53 }
 0xce2   :  { %v3237_v26 = vpop.eup %3236  ;;  %v2406_v9 = vsel %vm2403_vm2, %v2405_v54, %v2401_v21 }
 0xce3   :  { %v2379_v58 = vmul.f32 %v3237_v26, %v2298_v4  ;;  %v2304_v39 = vpop.xlane.xlu1 %2303  ;;  %vm2384_vm10 = vweird.f32 %v3237_v26  ;;  %v2407_v27 = vmul.f32 %v2406_v9, %v4129_v1 }
 0xce4   :  { %3238 = vrcp.f32 %v2304_v39  ;;  %vm2385_vm13 = vmor %vm2383_vm11, %vm2384_vm10  ;;  %v2419_v51 = vand.u32 2147483648, %v2304_v39  ;;  %vm2413_vm4 = vweird.f32 %v2304_v39  ;;  %v2417_v63 = vand.u32 2147483647, %v2304_v39 }
 0xce5   :  { %v2380_v44 = vsub.f32 1.0, %v2379_v58 }
 0xce6   :  { %vm2418_vm7 = vcmp.eq.f32.partialorder %v2417_v63, 8.507059e+37 }
 0xce7   :  { %v2381_v55 = vmul.f32 %v3237_v26, %v2380_v44 }
 0xce9   :  { %v2382_v36 = vadd.f32 %v3237_v26, %v2381_v55  ;;  %2988 = vmatmul.msk.f32.gmra.mxu3 %vm120_vm0, %v3235_v56 }
 0xcea   :  { %v3239_v37 = vpop.eup %3238 }
 0xceb   :  { %v2386_v42 = vsel %vm2385_vm13, %v3237_v26, %v2382_v36  ;;  %v2409_v45 = vmul.f32 %v3239_v37, %v2304_v39  ;;  %vm2414_vm0 = vweird.f32 %v3239_v37 }
 0xcec   :  { %v2391_v47 = vsel %vm2388_vm14, %v2390_v40, %v2386_v42  ;;  %vm2415_vm6 = vmor %vm2413_vm4, %vm2414_vm0  ;;  %v2372_v0 = vpop.f32.mrf.mxu1 }
 0xced   :  { %v2392_v49 = vmul.f32 %v2391_v47, %v4125_v6  ;;  %v2410_v8 = vsub.f32 1.0, %v2409_v45  ;;  %v2420_v6 = vor.u32 1.1754944e-38, %v2419_v51 }
 0xcef   :  { %v2411_v50 = vmul.f32 %v3239_v37, %v2410_v8  ;;  %2973 = vmatmul.msk.f32.vlgmr.msra.gmra.mxu2 %vm363_vm3, %v2392_v49 }
 0xcf1   :  { %v2412_v57 = vadd.f32 %v3239_v37, %v2411_v50 }
 0xcf3   :  { %v2416_v11 = vsel %vm2415_vm6, %v3239_v37, %v2412_v57 }
 0xcf4   :  { %v2421_v13 = vsel %vm2418_vm7, %v2420_v6, %v2416_v11 }
 0xcf5   :  { %v2422_v25 = vmul.f32 %v2421_v13, %v2372_v0  ;;  %v2776_v13 = vld [vmem:[#allocation10 + $0x38] sm:$0xff]  ;;  %v2775_v0 = vld [vmem:[#allocation10 + $0x30] sm:$0xff] }
 0xcf6   :  { %2801 = vmatpush.msra.mxu1 %v2776_v13 }
 0xcf7   :  { %2974 = vmatmul.msk.f32.gmra.mxu2 %vm363_vm3, %v2407_v27 }
 0xcf8   :  { %2802 = vmatpush.msra.mxu1 %v2775_v0 }
 0xcff   :  { %2975 = vmatmul.msk.f32.gmra.mxu2 %vm363_vm3, %v2422_v25 }
 0xd26   :  { %v2375_v41 = vpop.f32.mrf.mxu1 }
 0xd3b   :  { %v2587_v2 = vpop.xlane.xlu1 %2586 }
 0xd3c   :  { %3240 = vrcp.f32 %v2587_v2  ;;  %v2678_v30 = vand.u32 2147483648, %v2587_v2  ;;  %v2676_v17 = vand.u32 2147483647, %v2587_v2  ;;  %vm2672_vm9 = vweird.f32 %v2587_v2 }
 0xd3e   :  { %v2679_v62 = vor.u32 1.1754944e-38, %v2678_v30  ;;  %vm2677_vm11 = vcmp.eq.f32.partialorder %v2676_v17, 8.507059e+37  ;;  %v2774_v17 = vld [vmem:[#allocation10 + $0x28] sm:$0xff] }
 0xd3f   :  { %2803 = vmatpush.msra.mxu1 %v2774_v17 }
 0xd42   :  { %v3241_v12 = vpop.eup %3240 }
 0xd43   :  { %v2668_v23 = vmul.f32 %v3241_v12, %v2587_v2  ;;  %v2307_v10 = vpop.xlane.xlu1 %2306  ;;  %v2590_v1 = vpop.xlane.xlu2 %2589  ;;  %vm2673_vm8 = vweird.f32 %v3241_v12 }
 0xd44   :  { %3242 = vrcp.f32 %v2307_v10  ;;  %vm2674_vm10 = vmor %vm2672_vm9, %vm2673_vm8  ;;  %v2626_v19 = vpop.f32.mrf.mxu1  ;;  %v2434_v28 = vand.u32 2147483648, %v2307_v10  ;;  %v2693_v26 = vand.u32 2147483648, %v2590_v1  ;;  %v2432_v43 = vand.u32 2147483647, %v2307_v10 }
 0xd45   :  { %v2669_v14 = vsub.f32 1.0, %v2668_v23  ;;  %3244 = vrcp.f32 %v2590_v1  ;;  %v2691_v39 = vand.u32 2147483647, %v2590_v1  ;;  %vm2428_vm14 = vweird.f32 %v2307_v10 }
 0xd46   :  { %vm2687_vm1 = vweird.f32 %v2590_v1  ;;  %v2435_v35 = vor.u32 1.1754944e-38, %v2434_v28  ;;  %v2694_v37 = vor.u32 1.1754944e-38, %v2693_v26  ;;  %vm2433_vm0 = vcmp.eq.f32.partialorder %v2432_v43, 8.507059e+37 }
 0xd47   :  { %v2670_v60 = vmul.f32 %v3241_v12, %v2669_v14  ;;  %vm2692_vm4 = vcmp.eq.f32.partialorder %v2691_v39, 8.507059e+37 }
 0xd49   :  { %v2671_v61 = vadd.f32 %v3241_v12, %v2670_v60 }
 0xd4a   :  { %v3243_v5 = vpop.eup %3242 }
 0xd4b   :  { %v3245_v22 = vpop.eup %3244  ;;  %v2424_v18 = vmul.f32 %v3243_v5, %v2307_v10  ;;  %v2675_v20 = vsel %vm2674_vm10, %v3241_v12, %v2671_v61  ;;  %v2593_v4 = vpop.xlane.xlu1 %2592  ;;  %vm2429_vm12 = vweird.f32 %v3243_v5  ;;  %v2773_v61 = vld [vmem:[#allocation10 + $0x20] sm:$0xff] }
 0xd4c   :  { %v2683_v3 = vmul.f32 %v3245_v22, %v2590_v1  ;;  %v2680_v24 = vsel %vm2677_vm11, %v2679_v62, %v2675_v20  ;;  %3246 = vrcp.f32 %v2593_v4  ;;  %vm2688_vm13 = vweird.f32 %v3245_v22  ;;  %vm4165_vm15 = vmor %vm2428_vm14, %vm2429_vm12  ;;  %v2629_v45 = vpop.f32.mrf.mxu1  ;;  %2804 = vmatpush.msra.mxu1 %v2773_v61 }
 0xd4d   :  { %v2425_v52 = vsub.f32 1.0, %v2424_v18  ;;  %v2681_v56 = vmul.f32 %v2680_v24, %v2626_v19  ;;  %vm2689_vm2 = vmor %vm2687_vm1, %vm2688_vm13  ;;  %v2708_v51 = vand.u32 2147483648, %v2593_v4  ;;  %vm2702_vm7 = vweird.f32 %v2593_v4 }
 0xd4e   :  { %v2684_v15 = vsub.f32 1.0, %v2683_v3  ;;  %v2706_v63 = vand.u32 2147483647, %v2593_v4  ;;  %v2191_v20 = vadd.f32 %v4127_v7, %v4114_v16 }
 0xd4f   :  { %v2426_v34 = vmul.f32 %v3243_v5, %v2425_v52  ;;  %2989 = vmatmul.msk.f32.vlgmr.msrb.gmra.mxu0 %vm363_vm3, %v2681_v56  ;;  %v2709_v6 = vor.u32 1.1754944e-38, %v2708_v51 }
 0xd50   :  { %v2685_v58 = vmul.f32 %v3245_v22, %v2684_v15  ;;  %vm2707_vm9 = vcmp.eq.f32.partialorder %v2706_v63, 8.507059e+37 }
 0xd51   :  { %v2427_v44 = vadd.f32 %v3243_v5, %v2426_v34 }
 0xd52   :  { %v3247_v31 = vpop.eup %3246  ;;  %v2686_v55 = vadd.f32 %v3245_v22, %v2685_v58 }
 0xd53   :  { %v2698_v36 = vmul.f32 %v3247_v31, %v2593_v4  ;;  %v2596_v40 = vpop.xlane.xlu0 %2595  ;;  %v2431_v53 = vsel %vm4165_vm15, %v3243_v5, %v2427_v44  ;;  %vm2703_vm6 = vweird.f32 %v3247_v31 }
 0xd54   :  { %v2690_v42 = vsel %vm2689_vm2, %v3245_v22, %v2686_v55  ;;  %3248 = vrcp.f32 %v2596_v40  ;;  %v2436_v47 = vsel %vm2433_vm0, %v2435_v35, %v2431_v53  ;;  %vm2704_vm8 = vmor %vm2702_vm7, %vm2703_vm6  ;;  %vm2717_vm11 = vweird.f32 %v2596_v40 }
 0xd55   :  { %v2695_v46 = vsel %vm2692_vm4, %v2694_v37, %v2690_v42  ;;  %v2699_v48 = vsub.f32 1.0, %v2698_v36  ;;  %v2437_v8 = vmul.f32 %v2436_v47, %v2375_v41  ;;  %v2723_v41 = vand.u32 2147483648, %v2596_v40 }
 0xd56   :  { %v2696_v49 = vmul.f32 %v2695_v46, %v2629_v45  ;;  %v2721_v23 = vand.u32 2147483647, %v2596_v40 }
 0xd57   :  { %2976 = vmatmul.msk.f32.gmra.mxu2 %vm363_vm3, %v2437_v8  ;;  %v2700_v21 = vmul.f32 %v3247_v31, %v2699_v48  ;;  %v2724_v1 = vor.u32 1.1754944e-38, %v2723_v41 }
 0xd58   :  { %2990 = vmatmul.msk.f32.gmra.mxu0 %vm363_vm3, %v2696_v49  ;;  %vm2722_vm13 = vcmp.eq.f32.partialorder %v2721_v23, 8.507059e+37 }
 0xd59   :  { %v2701_v57 = vadd.f32 %v3247_v31, %v2700_v21 }
 0xd5a   :  { %v3249_v50 = vpop.eup %3248 }
 0xd5b   :  { %v2713_v54 = vmul.f32 %v3249_v50, %v2596_v40  ;;  %v2705_v11 = vsel %vm2704_vm8, %v3247_v31, %v2701_v57  ;;  %vm2718_vm10 = vweird.f32 %v3249_v50 }
 0xd5c   :  { %v2710_v29 = vsel %vm2707_vm9, %v2709_v6, %v2705_v11  ;;  %vm2719_vm12 = vmor %vm2717_vm11, %vm2718_vm10 }
 0xd5d   :  { %v2714_v9 = vsub.f32 1.0, %v2713_v54 }
 0xd5f   :  { %v2715_v27 = vmul.f32 %v3249_v50, %v2714_v9 }
 0xd61   :  { %v2716_v12 = vadd.f32 %v3249_v50, %v2715_v27 }
 0xd63   :  { %v2720_v10 = vsel %vm2719_vm12, %v3249_v50, %v2716_v12 }
 0xd64   :  { %v2661_v25 = vpop.f32.mrf.mxu3  ;;  %v2725_v30 = vsel %vm2722_vm13, %v2724_v1, %v2720_v10 }
 0xd65   :  { %v2711_v2 = vmul.f32 %v2710_v29, %v2661_v25 }
 0xd67   :  { %2991 = vmatmul.msk.f32.gmra.mxu0 %vm363_vm3, %v2711_v2 }
 0xd6c   :  { %v2664_v14 = vpop.f32.mrf.mxu3 }
 0xd6d   :  { %v2726_v60 = vmul.f32 %v2725_v30, %v2664_v14 }
 0xd6f   :  { %2992 = vmatmul.msk.f32.gmra.mxu0 %vm363_vm3, %v2726_v60 }
 0xd72   :  { %v2467_v5 = vpop.f32.mrf.mxu2 }
 0xd73   :  { %v2479_v62 = vadd.f32 %v2467_v5, %v4119_v59 }
 0xd7a   :  { %v2470_v19 = vpop.f32.mrf.mxu2 }
 0xd7b   :  { %v2480_v4 = vadd.f32 %v2470_v19, %v2191_v20 }
 0xd82   :  { %v2473_v52 = vpop.f32.mrf.mxu2 }
 0xd83   :  { %v2481_v56 = vadd.f32 %v2473_v52, %v4133_v38 }
 0xdcc   :  { %v2756_v22 = vpop.f32.mrf.mxu0 }
 0xdcd   :  { %v2768_v18 = vadd.f32 %v2756_v22, %v2479_v62 }
 0xdcf   :  { %2993 = vmatmul.msk.f32.vlgmr.msra.gmra.mxu1 %vm242_vm5, %v2768_v18 }
 0xdd5   :  { %v2759_v3 = vpop.f32.mrf.mxu0 }
 0xdd6   :  { %v2769_v24 = vadd.f32 %v2759_v3, %v2480_v4 }
 0xdd8   :  { %2994 = vmatmul.msk.f32.gmra.mxu1 %vm242_vm5, %v2769_v24 }
 0xdda   :  { %v2476_v59 = vpop.f32.mrf.mxu2 }
 0xddb   :  { %v2482_v28 = vadd.f32 %v2476_v59, %v4136_v33 }
 0xde4   :  { %v2762_v15 = vpop.f32.mrf.mxu0 }
 0xde5   :  { %v2770_v34 = vadd.f32 %v2762_v15, %v2481_v56 }
 0xde7   :  { %2995 = vmatmul.msk.f32.gmra.mxu1 %vm242_vm5, %v2770_v34 }
 0xdec   :  { %v2765_v26 = vpop.f32.mrf.mxu0 }
 0xded   :  { %v2771_v43 = vadd.f32 %v2765_v26, %v2482_v28 }
 0xdef   :  { %2996 = vmatmul.msk.f32.gmra.mxu1 %vm242_vm5, %v2771_v43 }
 0xe4c   :  { %v2806_v16 = vpop.f32.mrf.mxu1 }
 0xe4d   :  { %v2807_v7 = vadd.f32 %v2806_v16, %v2768_v18 }
 0xe4f   :  { %2818 = vst.msk [vmem:[#allocation11] sm:$0xff] %vm242_vm5, %v2807_v7 }
 0xe55   :  { %v2809_v58 = vpop.f32.mrf.mxu1 }
 0xe56   :  { %v2810_v39 = vadd.f32 %v2809_v58, %v2769_v24 }
 0xe58   :  { %2819 = vst.msk [vmem:[#allocation11 + $0x8] sm:$0xff] %vm242_vm5, %v2810_v39 }
 0xe64   :  { %v2812_v38 = vpop.f32.mrf.mxu1 }
 0xe65   :  { %v2813_v44 = vadd.f32 %v2812_v38, %v2770_v34 }
 0xe67   :  { %2820 = vst.msk [vmem:[#allocation11 + $0x10] sm:$0xff] %vm242_vm5, %v2813_v44 }
 0xe6c   :  { %v2815_v33 = vpop.f32.mrf.mxu1 }
 0xe6d   :  { %v2816_v31 = vadd.f32 %v2815_v33, %v2771_v43 }
 0xe6f   :  { %2821 = vst.msk [vmem:[#allocation11 + $0x18] sm:$0xff] %vm242_vm5, %v2816_v31 }
 0xe70   :  { %2834 = dma.vmem_to_hbm [thread:$0]  %s2827_s27, 512, %s2829_s7, [#allocation4], %s3404_s4, %s3404_s4, %s3405_s26  }
 0xe71   :  { %3400 = dma.done.wait [#allocation4], 512  }
 0xe72   :  { %3401 = vsyncadd [#allocation4], 4294966784 }
 0xe73   :  { %2839 = vsyncpa [#allocation3], 1 }
 0xe74   :  { %2840 = vsyncpa [#allocation6], 1 }
 0xe75   :  { %2841 = vsyncpa [#allocation9], 1 }
 0xe76   :  { %2842 = vsyncpa [#allocation4], 1 }

</bundles_post_ra>
